<compile_context>
chip_gen: v5e
topology: v5e:2x2
jax: 0.10.0
libtpu: 0.0.40
codegen_flags: <defaults>
</compile_context>

<pallas_src>
import jax
import jax.numpy as jnp
from jax import lax
from jax.experimental import pallas as pl
from jax.experimental.pallas import tpu as pltpu

HIGHEST = lax.Precision.HIGHEST


def _round_up(x, m):
    return ((x + m - 1) // m) * m


def _const_spec(arr):
    """Whole-array block with a constant index_map (fetched once, not per step)."""
    zeros = (0,) * arr.ndim
    return pl.BlockSpec(arr.shape, lambda i, _z=zeros: _z)


# ---------------------------------------------------------------------------
# Fused per-batch-tile forward kernel.  Per grid step (one batch tile of Bt):
#   p1:   (12, 1024*Bt)  im2col patches; sublanes = (c, kh1, kw1),
#         lanes = (a1, b1, kh2, kw2, a2, b2, r, s, b) -- batch INNERMOST
#   xT:   (5, Bt)        tabular features, batch on lanes
#   w1:(16,12) b1:(16,1) w2s:(4,32,16) b2:(32,1)
#   wimg: (32, 16)       fc2[:, :30] @ fc1_w reshaped to (channel, r*4+s)
#   l1w/l1b, l2w/l2b:    tabular MLP, used feature-major (out, in)
#   wtab: (16, 1)        fc2[:, 30:] as a column (VPU reduce, no M=1 matmul)
#   tbias:(1, 1)         fc2[:, :30] @ fc1_b + fc2_b
#   out:  (1, Bt)
# ---------------------------------------------------------------------------
def fused_forward_kernel(p1_ref, xT_ref, w1_ref, b1_ref, w2s_ref, b2_ref,
                         wimg_ref, l1w_ref, l1b_ref, l2w_ref, l2b_ref,
                         wtab_ref, tbias_ref, o_ref):
    f32 = jnp.float32
    Bt = o_ref.shape[-1]
    n1 = p1_ref.shape[1] // 4      # 256*Bt  stage-1 pooled pixels * Bt
    n2 = n1 // 4                   # 64*Bt   stage-2 pre-pool pixels * Bt
    n3 = n2 // 4                   # 16*Bt   stage-2 pooled pixels * Bt

    # ---- stage 1: conv1 per pool tap with a running max (smaller peak VMEM),
    #      bias+ReLU applied after the pool (monotone => identical numerics).
    w1 = w1_ref[...]
    y1 = jnp.dot(w1, p1_ref[:, 0:n1], preferred_element_type=f32)
    for t in range(1, 4):                                     # taps (a1, b1)
        y1 = jnp.maximum(
            y1, jnp.dot(w1, p1_ref[:, t * n1:(t + 1) * n1],
                        preferred_element_type=f32))
    y1 = jnp.maximum(y1 + b1_ref[...], 0.0)                   # (16, 256*Bt)

    # ---- stage 2: conv2 = 4 accumulated matmuls over kernel taps (kh2, kw2),
    #      2x2 pool as 4 static lane slices, then bias+ReLU.
    s2 = jnp.dot(w2s_ref[0], y1[:, 0:n2], preferred_element_type=f32)
    for t in range(1, 4):
        s2 = s2 + jnp.dot(w2s_ref[t], y1[:, t * n2:(t + 1) * n2],
                          preferred_element_type=f32)
    y2 = jnp.maximum(jnp.maximum(s2[:, 0:n3], s2[:, n3:2 * n3]),
                     jnp.maximum(s2[:, 2 * n3:3 * n3], s2[:, 3 * n3:4 * n3]))
    y2 = jnp.maximum(y2 + b2_ref[...], 0.0)                   # (32, 16*Bt), lanes (r,s,b)

    # ---- image head: fc1 folded into fc2.  Batch innermost => the 16 spatial
    #      positions are 16 static Bt-wide lane slices: VPU FMAs + one sublane
    #      reduce.  No selector matrix, no MXU pass.
    wimg = wimg_ref[...]                                      # (32, 16)
    acc = wimg[:, 0:1] * y2[:, 0:Bt]
    for k in range(1, 16):
        acc = acc + wimg[:, k:k + 1] * y2[:, k * Bt:(k + 1) * Bt]
    img = jnp.sum(acc, axis=0, keepdims=True)                 # (1, Bt)

    # ---- tabular head (feature-major: weights as (out, in), batch on lanes)
    h = jnp.maximum(jnp.dot(l1w_ref[...], xT_ref[...],
                            preferred_element_type=f32) + l1b_ref[...], 0.0)
    h = jnp.maximum(jnp.dot(l2w_ref[...], h,
                            preferred_element_type=f32) + l2b_ref[...], 0.0)
    tab = jnp.sum(wtab_ref[...] * h, axis=0, keepdims=True)   # (1, Bt)

    o_ref[...] = img + tab + tbias_ref[...]


# ---------------------------------------------------------------------------
# One-time parameter preparation (batch-size independent).
# ---------------------------------------------------------------------------
def prepare_params(params):
    hid_ch = params["conv1_w"].shape[0]          # 16
    out_ch = params["conv2_w"].shape[0]          # 32
    n_img = params["fc1_w"].shape[0]             # 30
    fc2_w = params["fc2_w"]
    fc2_img = fc2_w[:, :n_img]                   # (1, 30)

    # Fold fc1 into fc2's image half (exact: no ReLU between fc1 and fc2).
    w_img = jnp.dot(fc2_img, params["fc1_w"], precision=HIGHEST)   # (1, 512)
    w_img = w_img.reshape(out_ch, 16)                              # (c, r*4+s)
    t_bias = (jnp.dot(fc2_img, params["fc1_b"].reshape(-1, 1),
                      precision=HIGHEST) + params["fc2_b"].reshape(1, 1))

    w2 = params["conv2_w"]                       # (32, 16, 2, 2)
    w2s = jnp.stack([w2[:, :, 0, 0], w2[:, :, 0, 1],
                     w2[:, :, 1, 0], w2[:, :, 1, 1]], axis=0)      # taps (kh2,kw2)

    return {
        "w1": params["conv1_w"].reshape(hid_ch, -1),               # (16, 12) K=(c,kh1,kw1)
        "b1": params["conv1_b"].reshape(-1, 1),
        "w2s": w2s,                                                # (4, 32, 16)
        "b2": params["conv2_b"].reshape(-1, 1),
        "wimg": w_img,                                             # (32, 16)  not batch-tiled
        "l1w": params["l1_w"], "l1b": params["l1_b"].reshape(-1, 1),
        "l2w": params["l2_w"], "l2b": params["l2_b"].reshape(-1, 1),
        "wtab": fc2_w[:, n_img:].reshape(-1, 1),                   # (16, 1)
        "tbias": t_bias,                                           # (1, 1)
    }


# ---------------------------------------------------------------------------
# Forward wrapper: batch padding/tiling, im2col to the batch-innermost lane
# layout (rank<=8 reshape/transpose glue), one gridded pallas_call.
#   image pixel row = 16r + 8a2 + 4kh2 + 2a1 + kh1
#   image pixel col = 16s + 8b2 + 4kw2 + 2b1 + kw1
#   lanes = (a1, b1, kh2, kw2, a2, b2, r, s, b)
# ---------------------------------------------------------------------------
def multimodal_forward(x_image, x, kp, *, batch_tile=64):
    B, C, H, W = x_image.shape
    assert C == 3 and H == 64 and W == 64, "fc1 expects a 32*4*4 flattened image"
    K = C * 4                                    # 12 patch features (c, kh1, kw1)

    # Per-grid-step batch tile (multiple of 8 so all pooling slices are
    # 128-lane aligned; use 128 + a higher vmem limit for fully aligned
    # image-head slices at large B).
    Bt = _round_up(min(batch_tile, _round_up(B, 8)), 8)
    Bp = _round_up(B, Bt)
    nb = Bp // Bt
    if Bp != B:
        x_image = jnp.pad(x_image, ((0, Bp - B), (0, 0), (0, 0), (0, 0)))
        x = jnp.pad(x, ((0, Bp - B), (0, 0)))

    # im2col (wrapper-side XLA copy fusions; rank<=8 only).
    # TODO(synk): fold the patch extraction into the kernel with strided VMEM
    #   slices so the image is read from HBM exactly once even if XLA does not
    #   fuse this chain into a single copy.
    t = x_image.reshape(nb, Bt, C, 32, 2, 32, 2)     # (tile,b,c,i,kh1,j,kw1)
    t = t.transpose(0, 2, 4, 6, 3, 5, 1)              # (tile,c,kh1,kw1,i,j,b)
    t = t.reshape(nb * K, 8, 2, 2, 8, 2, 2, Bt)       # (tK, 2r+a2,kh2,a1, 2s+b2,kw2,b1, b)
    t = t.transpose(0, 3, 6, 2, 5, 1, 4, 7)           # (tK, a1,b1,kh2,kw2, 2r+a2,2s+b2, b)
    t = t.reshape(nb * K * 16, 4, 2, 4, 2, Bt)        # (tKA, r, a2, s, b2, b)
    t = t.transpose(0, 2, 4, 1, 3, 5)                 # (tKA, a2, b2, r, s, b)
    p1 = t.reshape(nb, K, 1024 * Bt)

    xT = x.reshape(nb, Bt, 5).transpose(0, 2, 1)      # (nb, 5, Bt)

    flops = 2 * (16 * 12 * 1024 + 4 * 32 * 16 * 64 + 32 * 16
                 + 16 * 5 + 16 * 16 + 16) * Bp
    bytes_accessed = 4 * (K * 1024 + 5 + 1) * Bp + 16 * 1024

    out = pl.pallas_call(
        fused_forward_kernel,
        out_shape=jax.ShapeDtypeStruct((nb, 1, Bt), jnp.float32),
        grid=(nb,),
        in_specs=[
            pl.BlockSpec((None, K, 1024 * Bt), lambda i: (i, 0, 0)),   # p1
            pl.BlockSpec((None, 5, Bt), lambda i: (i, 0, 0)),          # xT
            _const_spec(kp["w1"]), _const_spec(kp["b1"]),
            _const_spec(kp["w2s"]), _const_spec(kp["b2"]),
            _const_spec(kp["wimg"]),
            _const_spec(kp["l1w"]), _const_spec(kp["l1b"]),
            _const_spec(kp["l2w"]), _const_spec(kp["l2b"]),
            _const_spec(kp["wtab"]), _const_spec(kp["tbias"]),
        ],
        out_specs=pl.BlockSpec((None, 1, Bt), lambda i: (i, 0, 0)),
        compiler_params=pltpu.CompilerParams(
            dimension_semantics=("parallel",),
            vmem_limit_bytes=32 * 1024 * 1024),
        cost_estimate=pl.CostEstimate(flops=flops, transcendentals=0,
                                      bytes_accessed=bytes_accessed),
    )(p1, xT, kp["w1"], kp["b1"], kp["w2s"], kp["b2"], kp["wimg"],
      kp["l1w"], kp["l1b"], kp["l2w"], kp["l2b"], kp["wtab"], kp["tbias"])

    return out.reshape(Bp, 1)[:B]


# ---------------------------------------------------------------------------
# Pure-JAX reference (mirrors the PyTorch module) for validation.
# ---------------------------------------------------------------------------
def reference_forward(x_image, x, params):
    dn = ("NCHW", "OIHW", "NCHW")
    y = lax.conv_general_dilated(x_image, params["conv1_w"], (2, 2), "VALID",
                                 dimension_numbers=dn, precision=HIGHEST)
    y = jnp.maximum(y + params["conv1_b"][None, :, None, None], 0.0)
    y = lax.reduce_window(y, -jnp.inf, lax.max, (1, 1, 2, 2), (1, 1, 2, 2), "VALID")
    y = lax.conv_general_dilated(y, params["conv2_w"], (2, 2), "VALID",
                                 dimension_numbers=dn, precision=HIGHEST)
    y = jnp.maximum(y + params["conv2_b"][None, :, None, None], 0.0)
    y = lax.reduce_window(y, -jnp.inf, lax.max, (1, 1, 2, 2), (1, 1, 2, 2), "VALID")
    y = y.reshape(y.shape[0], -1)
    img = jnp.dot(y, params["fc1_w"].T, precision=HIGHEST) + params["fc1_b"]
    h = jnp.maximum(jnp.dot(x, params["l1_w"].T, precision=HIGHEST)
                    + params["l1_b"], 0.0)
    h = jnp.maximum(jnp.dot(h, params["l2_w"].T, precision=HIGHEST)
                    + params["l2_b"], 0.0)
    cat = jnp.concatenate([img, h], axis=1)
    return jnp.dot(cat, params["fc2_w"].T, precision=HIGHEST) + params["fc2_b"]


def init_params(key, hidden_channels=16, out_channels=32, hidden_features=16):
    ks = jax.random.split(key, 12)
    f32 = jnp.float32
    return {
        "conv1_w": 0.1 * jax.random.normal(ks[0], (hidden_channels, 3, 2, 2), f32),
        "conv1_b": 0.1 * jax.random.normal(ks[1], (hidden_channels,), f32),
        "conv2_w": 0.1 * jax.random.normal(ks[2], (out_channels, hidden_channels, 2, 2), f32),
        "conv2_b": 0.1 * jax.random.normal(ks[3], (out_channels,), f32),
        "l1_w": 0.1 * jax.random.normal(ks[4], (hidden_features, 5), f32),
        "l1_b": 0.1 * jax.random.normal(ks[5], (hidden_features,), f32),
        "l2_w": 0.1 * jax.random.normal(ks[6], (hidden_features, hidden_features), f32),
        "l2_b": 0.1 * jax.random.normal(ks[7], (hidden_features,), f32),
        "fc1_w": 0.05 * jax.random.normal(ks[8], (30, out_channels * 4 * 4), f32),
        "fc1_b": 0.05 * jax.random.normal(ks[9], (30,), f32),
        "fc2_w": 0.1 * jax.random.normal(ks[10], (1, 30 + hidden_features), f32),
        "fc2_b": 0.1 * jax.random.normal(ks[11], (1,), f32),
    }


if __name__ == "__main__":
    key = jax.random.PRNGKey(0)
    k_img, k_x, k_p = jax.random.split(key, 3)

    B = 2
    # fc1 expects out_channels*4*4 = 512 features => image must be 64x64.
    x_image = jax.random.normal(k_img, (B, 3, 64, 64), jnp.float32)
    x = jax.random.normal(k_x, (B, 5), jnp.float32)
    params = init_params(k_p)

    kp = prepare_params(params)               # batch-independent weight packing
    fwd = jax.jit(multimodal_forward)

    out = jax.block_until_ready(fwd(x_image, x, kp))
    ref = reference_forward(x_image, x, params)

    assert out.shape == (B, 1)
    # Kernel matmuls run at DEFAULT precision (single-pass bf16 MXU) per the
    # perf review; the reference is f32/HIGHEST, so allow ~bf16-level error.
    assert jnp.allclose(out, ref, rtol=1e-2, atol=1e-2), (out, ref)

    print("KERNEL_OK")
</pallas_src>

<mosaic_0001>
module attributes {stable_mosaic.version = 11 : i64} {
  func.func @fused_forward_kernel(%arg0: i32, %arg1: memref<1x12x8192xf32, #tpu.memory_space<vmem>>, %arg2: memref<1x5x8xf32, #tpu.memory_space<vmem>>, %arg3: memref<16x12xf32, #tpu.memory_space<vmem>>, %arg4: memref<16x1xf32, #tpu.memory_space<vmem>>, %arg5: memref<4x32x16xf32, #tpu.memory_space<vmem>>, %arg6: memref<32x1xf32, #tpu.memory_space<vmem>>, %arg7: memref<32x16xf32, #tpu.memory_space<vmem>>, %arg8: memref<16x5xf32, #tpu.memory_space<vmem>>, %arg9: memref<16x1xf32, #tpu.memory_space<vmem>>, %arg10: memref<16x16xf32, #tpu.memory_space<vmem>>, %arg11: memref<16x1xf32, #tpu.memory_space<vmem>>, %arg12: memref<16x1xf32, #tpu.memory_space<vmem>>, %arg13: memref<1x1xf32, #tpu.memory_space<vmem>>, %arg14: memref<1x1x8xf32, #tpu.memory_space<vmem>>) attributes {dimension_semantics = [#tpu.dimension_semantics<parallel>], iteration_bounds = array<i64: 1>, scalar_prefetch = 0 : i64, scratch_operands = 0 : i64, tpu.core_type = #tpu.core_type<tc>, window_params = [{transform_indices = @transform_0, window_bounds = array<i64: 1, 12, 8192>}, {transform_indices = @transform_1, window_bounds = array<i64: 1, 5, 8>}, {pipeline_mode = #tpu.pipeline_mode<synchronous>, transform_indices = @transform_2, window_bounds = array<i64: 16, 12>}, {pipeline_mode = #tpu.pipeline_mode<synchronous>, transform_indices = @transform_3, window_bounds = array<i64: 16, 1>}, {pipeline_mode = #tpu.pipeline_mode<synchronous>, transform_indices = @transform_4, window_bounds = array<i64: 4, 32, 16>}, {pipeline_mode = #tpu.pipeline_mode<synchronous>, transform_indices = @transform_5, window_bounds = array<i64: 32, 1>}, {pipeline_mode = #tpu.pipeline_mode<synchronous>, transform_indices = @transform_6, window_bounds = array<i64: 32, 16>}, {pipeline_mode = #tpu.pipeline_mode<synchronous>, transform_indices = @transform_7, window_bounds = array<i64: 16, 5>}, {pipeline_mode = #tpu.pipeline_mode<synchronous>, transform_indices = @transform_8, window_bounds = array<i64: 16, 1>}, {pipeline_mode = #tpu.pipeline_mode<synchronous>, transform_indices = @transform_9, window_bounds = array<i64: 16, 16>}, {pipeline_mode = #tpu.pipeline_mode<synchronous>, transform_indices = @transform_10, window_bounds = array<i64: 16, 1>}, {pipeline_mode = #tpu.pipeline_mode<synchronous>, transform_indices = @transform_11, window_bounds = array<i64: 16, 1>}, {pipeline_mode = #tpu.pipeline_mode<synchronous>, transform_indices = @transform_12, window_bounds = array<i64: 1, 1>}, {transform_indices = @transform_13, window_bounds = array<i64: 1, 1, 8>}]} {
    %c0 = arith.constant 0 : index
    %c0_0 = arith.constant 0 : index
    %0 = vector.load %arg3[%c0, %c0_0] : memref<16x12xf32, #tpu.memory_space<vmem>>, vector<16x12xf32>
    %c0_1 = arith.constant 0 : index
    %c0_2 = arith.constant 0 : index
    %c0_3 = arith.constant 0 : index
    %1 = vector.load %arg1[%c0_1, %c0_2, %c0_3] : memref<1x12x8192xf32, #tpu.memory_space<vmem>>, vector<1x12x2048xf32>
    %2 = vector.shape_cast %1 : vector<1x12x2048xf32> to vector<12x2048xf32>
    %cst = arith.constant dense<0.000000e+00> : vector<16x2048xf32>
    %3 = tpu.matmul %0, %2, %cst {dimension_numbers = #tpu.dot_dimension_numbers<[1], [0], [0], [1], [0, 0, 1, 1], [], []>} : vector<16x12xf32>, vector<12x2048xf32>, vector<16x2048xf32> -> vector<16x2048xf32>
    %c0_4 = arith.constant 0 : index
    %c0_5 = arith.constant 0 : index
    %c2048 = arith.constant 2048 : index
    %4 = vector.load %arg1[%c0_4, %c0_5, %c2048] : memref<1x12x8192xf32, #tpu.memory_space<vmem>>, vector<1x12x2048xf32>
    %5 = vector.shape_cast %4 : vector<1x12x2048xf32> to vector<12x2048xf32>
    %cst_6 = arith.constant dense<0.000000e+00> : vector<16x2048xf32>
    %6 = tpu.matmul %0, %5, %cst_6 {dimension_numbers = #tpu.dot_dimension_numbers<[1], [0], [0], [1], [0, 0, 1, 1], [], []>} : vector<16x12xf32>, vector<12x2048xf32>, vector<16x2048xf32> -> vector<16x2048xf32>
    %7 = arith.maximumf %3, %6 : vector<16x2048xf32>
    %c0_7 = arith.constant 0 : index
    %c0_8 = arith.constant 0 : index
    %c4096 = arith.constant 4096 : index
    %8 = vector.load %arg1[%c0_7, %c0_8, %c4096] : memref<1x12x8192xf32, #tpu.memory_space<vmem>>, vector<1x12x2048xf32>
    %9 = vector.shape_cast %8 : vector<1x12x2048xf32> to vector<12x2048xf32>
    %cst_9 = arith.constant dense<0.000000e+00> : vector<16x2048xf32>
    %10 = tpu.matmul %0, %9, %cst_9 {dimension_numbers = #tpu.dot_dimension_numbers<[1], [0], [0], [1], [0, 0, 1, 1], [], []>} : vector<16x12xf32>, vector<12x2048xf32>, vector<16x2048xf32> -> vector<16x2048xf32>
    %11 = arith.maximumf %7, %10 : vector<16x2048xf32>
    %c0_10 = arith.constant 0 : index
    %c0_11 = arith.constant 0 : index
    %c6144 = arith.constant 6144 : index
    %12 = vector.load %arg1[%c0_10, %c0_11, %c6144] : memref<1x12x8192xf32, #tpu.memory_space<vmem>>, vector<1x12x2048xf32>
    %13 = vector.shape_cast %12 : vector<1x12x2048xf32> to vector<12x2048xf32>
    %cst_12 = arith.constant dense<0.000000e+00> : vector<16x2048xf32>
    %14 = tpu.matmul %0, %13, %cst_12 {dimension_numbers = #tpu.dot_dimension_numbers<[1], [0], [0], [1], [0, 0, 1, 1], [], []>} : vector<16x12xf32>, vector<12x2048xf32>, vector<16x2048xf32> -> vector<16x2048xf32>
    %15 = arith.maximumf %11, %14 : vector<16x2048xf32>
    %c0_13 = arith.constant 0 : index
    %c0_14 = arith.constant 0 : index
    %16 = vector.load %arg4[%c0_13, %c0_14] : memref<16x1xf32, #tpu.memory_space<vmem>>, vector<16x1xf32>
    %17 = vector.broadcast %16 : vector<16x1xf32> to vector<16x2048xf32>
    %18 = arith.addf %15, %17 : vector<16x2048xf32>
    %cst_15 = arith.constant 0.000000e+00 : f32
    %19 = vector.broadcast %cst_15 : f32 to vector<16x2048xf32>
    %20 = arith.maximumf %18, %19 : vector<16x2048xf32>
    %c0_16 = arith.constant 0 : index
    %c0_17 = arith.constant 0 : index
    %c0_18 = arith.constant 0 : index
    %21 = vector.load %arg5[%c0_16, %c0_17, %c0_18] : memref<4x32x16xf32, #tpu.memory_space<vmem>>, vector<1x32x16xf32>
    %22 = vector.shape_cast %21 : vector<1x32x16xf32> to vector<32x16xf32>
    %23 = vector.extract_strided_slice %20 {offsets = [0, 0], sizes = [16, 512], strides = [1, 1]} : vector<16x2048xf32> to vector<16x512xf32>
    %cst_19 = arith.constant dense<0.000000e+00> : vector<32x512xf32>
    %24 = tpu.matmul %22, %23, %cst_19 {dimension_numbers = #tpu.dot_dimension_numbers<[1], [0], [0], [1], [0, 0, 1, 1], [], []>} : vector<32x16xf32>, vector<16x512xf32>, vector<32x512xf32> -> vector<32x512xf32>
    %c1 = arith.constant 1 : index
    %c0_20 = arith.constant 0 : index
    %c0_21 = arith.constant 0 : index
    %25 = vector.load %arg5[%c1, %c0_20, %c0_21] : memref<4x32x16xf32, #tpu.memory_space<vmem>>, vector<1x32x16xf32>
    %26 = vector.shape_cast %25 : vector<1x32x16xf32> to vector<32x16xf32>
    %27 = vector.extract_strided_slice %20 {offsets = [0, 512], sizes = [16, 512], strides = [1, 1]} : vector<16x2048xf32> to vector<16x512xf32>
    %cst_22 = arith.constant dense<0.000000e+00> : vector<32x512xf32>
    %28 = tpu.matmul %26, %27, %cst_22 {dimension_numbers = #tpu.dot_dimension_numbers<[1], [0], [0], [1], [0, 0, 1, 1], [], []>} : vector<32x16xf32>, vector<16x512xf32>, vector<32x512xf32> -> vector<32x512xf32>
    %29 = arith.addf %24, %28 : vector<32x512xf32>
    %c2 = arith.constant 2 : index
    %c0_23 = arith.constant 0 : index
    %c0_24 = arith.constant 0 : index
    %30 = vector.load %arg5[%c2, %c0_23, %c0_24] : memref<4x32x16xf32, #tpu.memory_space<vmem>>, vector<1x32x16xf32>
    %31 = vector.shape_cast %30 : vector<1x32x16xf32> to vector<32x16xf32>
    %32 = vector.extract_strided_slice %20 {offsets = [0, 1024], sizes = [16, 512], strides = [1, 1]} : vector<16x2048xf32> to vector<16x512xf32>
    %cst_25 = arith.constant dense<0.000000e+00> : vector<32x512xf32>
    %33 = tpu.matmul %31, %32, %cst_25 {dimension_numbers = #tpu.dot_dimension_numbers<[1], [0], [0], [1], [0, 0, 1, 1], [], []>} : vector<32x16xf32>, vector<16x512xf32>, vector<32x512xf32> -> vector<32x512xf32>
    %34 = arith.addf %29, %33 : vector<32x512xf32>
    %c3 = arith.constant 3 : index
    %c0_26 = arith.constant 0 : index
    %c0_27 = arith.constant 0 : index
    %35 = vector.load %arg5[%c3, %c0_26, %c0_27] : memref<4x32x16xf32, #tpu.memory_space<vmem>>, vector<1x32x16xf32>
    %36 = vector.shape_cast %35 : vector<1x32x16xf32> to vector<32x16xf32>
    %37 = vector.extract_strided_slice %20 {offsets = [0, 1536], sizes = [16, 512], strides = [1, 1]} : vector<16x2048xf32> to vector<16x512xf32>
    %cst_28 = arith.constant dense<0.000000e+00> : vector<32x512xf32>
    %38 = tpu.matmul %36, %37, %cst_28 {dimension_numbers = #tpu.dot_dimension_numbers<[1], [0], [0], [1], [0, 0, 1, 1], [], []>} : vector<32x16xf32>, vector<16x512xf32>, vector<32x512xf32> -> vector<32x512xf32>
    %39 = arith.addf %34, %38 : vector<32x512xf32>
    %40 = vector.extract_strided_slice %39 {offsets = [0, 0], sizes = [32, 128], strides = [1, 1]} : vector<32x512xf32> to vector<32x128xf32>
    %41 = vector.extract_strided_slice %39 {offsets = [0, 128], sizes = [32, 128], strides = [1, 1]} : vector<32x512xf32> to vector<32x128xf32>
    %42 = arith.maximumf %40, %41 : vector<32x128xf32>
    %43 = vector.extract_strided_slice %39 {offsets = [0, 256], sizes = [32, 128], strides = [1, 1]} : vector<32x512xf32> to vector<32x128xf32>
    %44 = vector.extract_strided_slice %39 {offsets = [0, 384], sizes = [32, 128], strides = [1, 1]} : vector<32x512xf32> to vector<32x128xf32>
    %45 = arith.maximumf %43, %44 : vector<32x128xf32>
    %46 = arith.maximumf %42, %45 : vector<32x128xf32>
    %c0_29 = arith.constant 0 : index
    %c0_30 = arith.constant 0 : index
    %47 = vector.load %arg6[%c0_29, %c0_30] : memref<32x1xf32, #tpu.memory_space<vmem>>, vector<32x1xf32>
    %48 = vector.broadcast %47 : vector<32x1xf32> to vector<32x128xf32>
    %49 = arith.addf %46, %48 : vector<32x128xf32>
    %cst_31 = arith.constant 0.000000e+00 : f32
    %50 = vector.broadcast %cst_31 : f32 to vector<32x128xf32>
    %51 = arith.maximumf %49, %50 : vector<32x128xf32>
    %c0_32 = arith.constant 0 : index
    %c0_33 = arith.constant 0 : index
    %52 = vector.load %arg7[%c0_32, %c0_33] : memref<32x16xf32, #tpu.memory_space<vmem>>, vector<32x16xf32>
    %53 = vector.extract_strided_slice %52 {offsets = [0, 0], sizes = [32, 1], strides = [1, 1]} : vector<32x16xf32> to vector<32x1xf32>
    %54 = vector.extract_strided_slice %51 {offsets = [0, 0], sizes = [32, 8], strides = [1, 1]} : vector<32x128xf32> to vector<32x8xf32>
    %55 = vector.broadcast %53 : vector<32x1xf32> to vector<32x8xf32>
    %56 = arith.mulf %55, %54 : vector<32x8xf32>
    %57 = vector.extract_strided_slice %52 {offsets = [0, 1], sizes = [32, 1], strides = [1, 1]} : vector<32x16xf32> to vector<32x1xf32>
    %58 = vector.extract_strided_slice %51 {offsets = [0, 8], sizes = [32, 8], strides = [1, 1]} : vector<32x128xf32> to vector<32x8xf32>
    %59 = vector.broadcast %57 : vector<32x1xf32> to vector<32x8xf32>
    %60 = arith.mulf %59, %58 : vector<32x8xf32>
    %61 = arith.addf %56, %60 : vector<32x8xf32>
    %62 = vector.extract_strided_slice %52 {offsets = [0, 2], sizes = [32, 1], strides = [1, 1]} : vector<32x16xf32> to vector<32x1xf32>
    %63 = vector.extract_strided_slice %51 {offsets = [0, 16], sizes = [32, 8], strides = [1, 1]} : vector<32x128xf32> to vector<32x8xf32>
    %64 = vector.broadcast %62 : vector<32x1xf32> to vector<32x8xf32>
    %65 = arith.mulf %64, %63 : vector<32x8xf32>
    %66 = arith.addf %61, %65 : vector<32x8xf32>
    %67 = vector.extract_strided_slice %52 {offsets = [0, 3], sizes = [32, 1], strides = [1, 1]} : vector<32x16xf32> to vector<32x1xf32>
    %68 = vector.extract_strided_slice %51 {offsets = [0, 24], sizes = [32, 8], strides = [1, 1]} : vector<32x128xf32> to vector<32x8xf32>
    %69 = vector.broadcast %67 : vector<32x1xf32> to vector<32x8xf32>
    %70 = arith.mulf %69, %68 : vector<32x8xf32>
    %71 = arith.addf %66, %70 : vector<32x8xf32>
    %72 = vector.extract_strided_slice %52 {offsets = [0, 4], sizes = [32, 1], strides = [1, 1]} : vector<32x16xf32> to vector<32x1xf32>
    %73 = vector.extract_strided_slice %51 {offsets = [0, 32], sizes = [32, 8], strides = [1, 1]} : vector<32x128xf32> to vector<32x8xf32>
    %74 = vector.broadcast %72 : vector<32x1xf32> to vector<32x8xf32>
    %75 = arith.mulf %74, %73 : vector<32x8xf32>
    %76 = arith.addf %71, %75 : vector<32x8xf32>
    %77 = vector.extract_strided_slice %52 {offsets = [0, 5], sizes = [32, 1], strides = [1, 1]} : vector<32x16xf32> to vector<32x1xf32>
    %78 = vector.extract_strided_slice %51 {offsets = [0, 40], sizes = [32, 8], strides = [1, 1]} : vector<32x128xf32> to vector<32x8xf32>
    %79 = vector.broadcast %77 : vector<32x1xf32> to vector<32x8xf32>
    %80 = arith.mulf %79, %78 : vector<32x8xf32>
    %81 = arith.addf %76, %80 : vector<32x8xf32>
    %82 = vector.extract_strided_slice %52 {offsets = [0, 6], sizes = [32, 1], strides = [1, 1]} : vector<32x16xf32> to vector<32x1xf32>
    %83 = vector.extract_strided_slice %51 {offsets = [0, 48], sizes = [32, 8], strides = [1, 1]} : vector<32x128xf32> to vector<32x8xf32>
    %84 = vector.broadcast %82 : vector<32x1xf32> to vector<32x8xf32>
    %85 = arith.mulf %84, %83 : vector<32x8xf32>
    %86 = arith.addf %81, %85 : vector<32x8xf32>
    %87 = vector.extract_strided_slice %52 {offsets = [0, 7], sizes = [32, 1], strides = [1, 1]} : vector<32x16xf32> to vector<32x1xf32>
    %88 = vector.extract_strided_slice %51 {offsets = [0, 56], sizes = [32, 8], strides = [1, 1]} : vector<32x128xf32> to vector<32x8xf32>
    %89 = vector.broadcast %87 : vector<32x1xf32> to vector<32x8xf32>
    %90 = arith.mulf %89, %88 : vector<32x8xf32>
    %91 = arith.addf %86, %90 : vector<32x8xf32>
    %92 = vector.extract_strided_slice %52 {offsets = [0, 8], sizes = [32, 1], strides = [1, 1]} : vector<32x16xf32> to vector<32x1xf32>
    %93 = vector.extract_strided_slice %51 {offsets = [0, 64], sizes = [32, 8], strides = [1, 1]} : vector<32x128xf32> to vector<32x8xf32>
    %94 = vector.broadcast %92 : vector<32x1xf32> to vector<32x8xf32>
    %95 = arith.mulf %94, %93 : vector<32x8xf32>
    %96 = arith.addf %91, %95 : vector<32x8xf32>
    %97 = vector.extract_strided_slice %52 {offsets = [0, 9], sizes = [32, 1], strides = [1, 1]} : vector<32x16xf32> to vector<32x1xf32>
    %98 = vector.extract_strided_slice %51 {offsets = [0, 72], sizes = [32, 8], strides = [1, 1]} : vector<32x128xf32> to vector<32x8xf32>
    %99 = vector.broadcast %97 : vector<32x1xf32> to vector<32x8xf32>
    %100 = arith.mulf %99, %98 : vector<32x8xf32>
    %101 = arith.addf %96, %100 : vector<32x8xf32>
    %102 = vector.extract_strided_slice %52 {offsets = [0, 10], sizes = [32, 1], strides = [1, 1]} : vector<32x16xf32> to vector<32x1xf32>
    %103 = vector.extract_strided_slice %51 {offsets = [0, 80], sizes = [32, 8], strides = [1, 1]} : vector<32x128xf32> to vector<32x8xf32>
    %104 = vector.broadcast %102 : vector<32x1xf32> to vector<32x8xf32>
    %105 = arith.mulf %104, %103 : vector<32x8xf32>
    %106 = arith.addf %101, %105 : vector<32x8xf32>
    %107 = vector.extract_strided_slice %52 {offsets = [0, 11], sizes = [32, 1], strides = [1, 1]} : vector<32x16xf32> to vector<32x1xf32>
    %108 = vector.extract_strided_slice %51 {offsets = [0, 88], sizes = [32, 8], strides = [1, 1]} : vector<32x128xf32> to vector<32x8xf32>
    %109 = vector.broadcast %107 : vector<32x1xf32> to vector<32x8xf32>
    %110 = arith.mulf %109, %108 : vector<32x8xf32>
    %111 = arith.addf %106, %110 : vector<32x8xf32>
    %112 = vector.extract_strided_slice %52 {offsets = [0, 12], sizes = [32, 1], strides = [1, 1]} : vector<32x16xf32> to vector<32x1xf32>
    %113 = vector.extract_strided_slice %51 {offsets = [0, 96], sizes = [32, 8], strides = [1, 1]} : vector<32x128xf32> to vector<32x8xf32>
    %114 = vector.broadcast %112 : vector<32x1xf32> to vector<32x8xf32>
    %115 = arith.mulf %114, %113 : vector<32x8xf32>
    %116 = arith.addf %111, %115 : vector<32x8xf32>
    %117 = vector.extract_strided_slice %52 {offsets = [0, 13], sizes = [32, 1], strides = [1, 1]} : vector<32x16xf32> to vector<32x1xf32>
    %118 = vector.extract_strided_slice %51 {offsets = [0, 104], sizes = [32, 8], strides = [1, 1]} : vector<32x128xf32> to vector<32x8xf32>
    %119 = vector.broadcast %117 : vector<32x1xf32> to vector<32x8xf32>
    %120 = arith.mulf %119, %118 : vector<32x8xf32>
    %121 = arith.addf %116, %120 : vector<32x8xf32>
    %122 = vector.extract_strided_slice %52 {offsets = [0, 14], sizes = [32, 1], strides = [1, 1]} : vector<32x16xf32> to vector<32x1xf32>
    %123 = vector.extract_strided_slice %51 {offsets = [0, 112], sizes = [32, 8], strides = [1, 1]} : vector<32x128xf32> to vector<32x8xf32>
    %124 = vector.broadcast %122 : vector<32x1xf32> to vector<32x8xf32>
    %125 = arith.mulf %124, %123 : vector<32x8xf32>
    %126 = arith.addf %121, %125 : vector<32x8xf32>
    %127 = vector.extract_strided_slice %52 {offsets = [0, 15], sizes = [32, 1], strides = [1, 1]} : vector<32x16xf32> to vector<32x1xf32>
    %128 = vector.extract_strided_slice %51 {offsets = [0, 120], sizes = [32, 8], strides = [1, 1]} : vector<32x128xf32> to vector<32x8xf32>
    %129 = vector.broadcast %127 : vector<32x1xf32> to vector<32x8xf32>
    %130 = arith.mulf %129, %128 : vector<32x8xf32>
    %131 = arith.addf %126, %130 : vector<32x8xf32>
    %cst_34 = arith.constant dense<0.000000e+00> : vector<8xf32>
    %132 = vector.multi_reduction <add>, %131, %cst_34 [0] : vector<32x8xf32> to vector<8xf32>
    %133 = vector.shape_cast %132 : vector<8xf32> to vector<1x8xf32>
    %c0_35 = arith.constant 0 : index
    %c0_36 = arith.constant 0 : index
    %134 = vector.load %arg8[%c0_35, %c0_36] : memref<16x5xf32, #tpu.memory_space<vmem>>, vector<16x5xf32>
    %c0_37 = arith.constant 0 : index
    %c0_38 = arith.constant 0 : index
    %c0_39 = arith.constant 0 : index
    %135 = vector.load %arg2[%c0_37, %c0_38, %c0_39] : memref<1x5x8xf32, #tpu.memory_space<vmem>>, vector<1x5x8xf32>
    %136 = vector.shape_cast %135 : vector<1x5x8xf32> to vector<5x8xf32>
    %cst_40 = arith.constant dense<0.000000e+00> : vector<16x8xf32>
    %137 = tpu.matmul %134, %136, %cst_40 {dimension_numbers = #tpu.dot_dimension_numbers<[1], [0], [0], [1], [0, 0, 1, 1], [], []>} : vector<16x5xf32>, vector<5x8xf32>, vector<16x8xf32> -> vector<16x8xf32>
    %c0_41 = arith.constant 0 : index
    %c0_42 = arith.constant 0 : index
    %138 = vector.load %arg9[%c0_41, %c0_42] : memref<16x1xf32, #tpu.memory_space<vmem>>, vector<16x1xf32>
    %139 = vector.broadcast %138 : vector<16x1xf32> to vector<16x8xf32>
    %140 = arith.addf %137, %139 : vector<16x8xf32>
    %cst_43 = arith.constant 0.000000e+00 : f32
    %141 = vector.broadcast %cst_43 : f32 to vector<16x8xf32>
    %142 = arith.maximumf %140, %141 : vector<16x8xf32>
    %c0_44 = arith.constant 0 : index
    %c0_45 = arith.constant 0 : index
    %143 = vector.load %arg10[%c0_44, %c0_45] : memref<16x16xf32, #tpu.memory_space<vmem>>, vector<16x16xf32>
    %cst_46 = arith.constant dense<0.000000e+00> : vector<16x8xf32>
    %144 = tpu.matmul %143, %142, %cst_46 {dimension_numbers = #tpu.dot_dimension_numbers<[1], [0], [0], [1], [0, 0, 1, 1], [], []>} : vector<16x16xf32>, vector<16x8xf32>, vector<16x8xf32> -> vector<16x8xf32>
    %c0_47 = arith.constant 0 : index
    %c0_48 = arith.constant 0 : index
    %145 = vector.load %arg11[%c0_47, %c0_48] : memref<16x1xf32, #tpu.memory_space<vmem>>, vector<16x1xf32>
    %146 = vector.broadcast %145 : vector<16x1xf32> to vector<16x8xf32>
    %147 = arith.addf %144, %146 : vector<16x8xf32>
    %cst_49 = arith.constant 0.000000e+00 : f32
    %148 = vector.broadcast %cst_49 : f32 to vector<16x8xf32>
    %149 = arith.maximumf %147, %148 : vector<16x8xf32>
    %c0_50 = arith.constant 0 : index
    %c0_51 = arith.constant 0 : index
    %150 = vector.load %arg12[%c0_50, %c0_51] : memref<16x1xf32, #tpu.memory_space<vmem>>, vector<16x1xf32>
    %151 = vector.broadcast %150 : vector<16x1xf32> to vector<16x8xf32>
    %152 = arith.mulf %151, %149 : vector<16x8xf32>
    %cst_52 = arith.constant dense<0.000000e+00> : vector<8xf32>
    %153 = vector.multi_reduction <add>, %152, %cst_52 [0] : vector<16x8xf32> to vector<8xf32>
    %154 = vector.shape_cast %153 : vector<8xf32> to vector<1x8xf32>
    %155 = arith.addf %133, %154 : vector<1x8xf32>
    %c0_53 = arith.constant 0 : index
    %c0_54 = arith.constant 0 : index
    %156 = vector.load %arg13[%c0_53, %c0_54] : memref<1x1xf32, #tpu.memory_space<vmem>>, vector<1x1xf32>
    %157 = vector.broadcast %156 : vector<1x1xf32> to vector<1x8xf32>
    %158 = arith.addf %155, %157 : vector<1x8xf32>
    %c0_55 = arith.constant 0 : index
    %c0_56 = arith.constant 0 : index
    %c0_57 = arith.constant 0 : index
    %159 = vector.load %arg14[%c0_55, %c0_56, %c0_57] : memref<1x1x8xf32, #tpu.memory_space<vmem>>, vector<1x1x8xf32>
    %160 = vector.shape_cast %159 : vector<1x1x8xf32> to vector<1x8xf32>
    %161 = vector.shape_cast %158 : vector<1x8xf32> to vector<1x1x8xf32>
    tpu.vector_store %arg14[%c0_55, %c0_56, %c0_57], %161 {strides = array<i32>} : memref<1x1x8xf32, #tpu.memory_space<vmem>>, vector<1x1x8xf32>,
    return
  }
  func.func @transform_0(%arg0: i32) -> (i32, i32, i32) {
    %c0_i32 = arith.constant 0 : i32
    %c0_i32_0 = arith.constant 0 : i32
    %c0_i32_1 = arith.constant 0 : i32
    return %arg0, %c0_i32, %c0_i32_0 : i32, i32, i32
  }
  func.func @transform_1(%arg0: i32) -> (i32, i32, i32) {
    %c0_i32 = arith.constant 0 : i32
    %c0_i32_0 = arith.constant 0 : i32
    %c0_i32_1 = arith.constant 0 : i32
    return %arg0, %c0_i32, %c0_i32_0 : i32, i32, i32
  }
  func.func @transform_2(%arg0: i32) -> (i32, i32) {
    %c0_i32 = arith.constant 0 : i32
    %c0_i32_0 = arith.constant 0 : i32
    %c0_i32_1 = arith.constant 0 : i32
    return %c0_i32, %c0_i32_0 : i32, i32
  }
  func.func @transform_3(%arg0: i32) -> (i32, i32) {
    %c0_i32 = arith.constant 0 : i32
    %c0_i32_0 = arith.constant 0 : i32
    %c0_i32_1 = arith.constant 0 : i32
    return %c0_i32, %c0_i32_0 : i32, i32
  }
  func.func @transform_4(%arg0: i32) -> (i32, i32, i32) {
    %c0_i32 = arith.constant 0 : i32
    %c0_i32_0 = arith.constant 0 : i32
    %c0_i32_1 = arith.constant 0 : i32
    %c0_i32_2 = arith.constant 0 : i32
    return %c0_i32, %c0_i32_0, %c0_i32_1 : i32, i32, i32
  }
  func.func @transform_5(%arg0: i32) -> (i32, i32) {
    %c0_i32 = arith.constant 0 : i32
    %c0_i32_0 = arith.constant 0 : i32
    %c0_i32_1 = arith.constant 0 : i32
    return %c0_i32, %c0_i32_0 : i32, i32
  }
  func.func @transform_6(%arg0: i32) -> (i32, i32) {
    %c0_i32 = arith.constant 0 : i32
    %c0_i32_0 = arith.constant 0 : i32
    %c0_i32_1 = arith.constant 0 : i32
    return %c0_i32, %c0_i32_0 : i32, i32
  }
  func.func @transform_7(%arg0: i32) -> (i32, i32) {
    %c0_i32 = arith.constant 0 : i32
    %c0_i32_0 = arith.constant 0 : i32
    %c0_i32_1 = arith.constant 0 : i32
    return %c0_i32, %c0_i32_0 : i32, i32
  }
  func.func @transform_8(%arg0: i32) -> (i32, i32) {
    %c0_i32 = arith.constant 0 : i32
    %c0_i32_0 = arith.constant 0 : i32
    %c0_i32_1 = arith.constant 0 : i32
    return %c0_i32, %c0_i32_0 : i32, i32
  }
  func.func @transform_9(%arg0: i32) -> (i32, i32) {
    %c0_i32 = arith.constant 0 : i32
    %c0_i32_0 = arith.constant 0 : i32
    %c0_i32_1 = arith.constant 0 : i32
    return %c0_i32, %c0_i32_0 : i32, i32
  }
  func.func @transform_10(%arg0: i32) -> (i32, i32) {
    %c0_i32 = arith.constant 0 : i32
    %c0_i32_0 = arith.constant 0 : i32
    %c0_i32_1 = arith.constant 0 : i32
    return %c0_i32, %c0_i32_0 : i32, i32
  }
  func.func @transform_11(%arg0: i32) -> (i32, i32) {
    %c0_i32 = arith.constant 0 : i32
    %c0_i32_0 = arith.constant 0 : i32
    %c0_i32_1 = arith.constant 0 : i32
    return %c0_i32, %c0_i32_0 : i32, i32
  }
  func.func @transform_12(%arg0: i32) -> (i32, i32) {
    %c0_i32 = arith.constant 0 : i32
    %c0_i32_0 = arith.constant 0 : i32
    %c0_i32_1 = arith.constant 0 : i32
    return %c0_i32, %c0_i32_0 : i32, i32
  }
  func.func @transform_13(%arg0: i32) -> (i32, i32, i32) {
    %c0_i32 = arith.constant 0 : i32
    %c0_i32_0 = arith.constant 0 : i32
    %c0_i32_1 = arith.constant 0 : i32
    return %arg0, %c0_i32, %c0_i32_0 : i32, i32, i32
  }
}

</mosaic_0001>

<bundles_post_ra>
// kernel: multimodal_forward.1
= control target key start
LH: loop header
LB: loop body
LE: loop exit
PB: predicated region body
PF: predicated region fallthrough
CT: control target
= control target key end

     0   :  { %vm87_vm0 = vcmask 1043456   ;;  %vm80_vm1 = vcmask 97280   ;;  %vm2029_vm2 = vcmask 130048   ;;  %vm3292_vm3 = vcmask 1044480   ;;  %s3789_s16 = smov 112   ;;  %s3790_s17 = smov 32   ;;  %s5703_s0 = inlined_call_operand.vmem [shape: f32[1,12,8192], index: 0, kind: input, shape index: {}]   ;;  %s5704_s2 = inlined_call_operand.vmem [shape: f32[16,12], index: 2, kind: input, shape index: {}]   ;;  %s5705_s3 = inlined_call_operand.vmem [shape: f32[16,1], index: 3, kind: input, shape index: {}]   ;;  %s5706_s5 = inlined_call_operand.vmem [shape: f32[32,1], index: 5, kind: input, shape index: {}]   ;;  %s5707_s6 = inlined_call_operand.vmem [shape: f32[32,16], index: 6, kind: input, shape index: {}]   ;;  %s5708_s4 = inlined_call_operand.vmem [shape: f32[4,32,16], index: 4, kind: input, shape index: {}]   ;;  %s5709_s8 = inlined_call_operand.vmem [shape: f32[16,1], index: 8, kind: input, shape index: {}]   ;;  %s5710_s1 = inlined_call_operand.vmem [shape: f32[1,5,8], index: 1, kind: input, shape index: {}]   ;;  %s5711_s7 = inlined_call_operand.vmem [shape: f32[16,5], index: 7, kind: input, shape index: {}]   ;;  %s5712_s9 = inlined_call_operand.vmem [shape: f32[16,16], index: 9, kind: input, shape index: {}]   ;;  %s5713_s10 = inlined_call_operand.vmem [shape: f32[16,1], index: 10, kind: input, shape index: {}]   ;;  %s5714_s11 = inlined_call_operand.vmem [shape: f32[16,1], index: 11, kind: input, shape index: {}]   ;;  %s5715_s12 = inlined_call_operand.<no memory space> [shape: f32[1,1], index: 12, kind: input, shape index: {}]   ;;  %s5716_s13 = inlined_call_operand.vmem [shape: f32[1,1,8], index: 13, kind: output, shape index: {}]  }
   0x1   :  { %v64_v0 = vld [vmem:[%s5703_s0 + $0x200] sm:$0xf]  ;;  %v65_v1 = vld [vmem:[%s5703_s0 + $0x208] sm:$0xf]  ;;  %v66_v6 = vld [vmem:[%s5703_s0 + $0x210] sm:$0xf] }
   0x2   :  { %v48_v2 = vld [vmem:[%s5703_s0] sm:$0xff]  ;;  %3404 = vmatpush.msk.msra.mxu0 %vm87_vm0, %v64_v0  ;;  %3677 = vmatpush.msk.msra.mxu2 %vm87_vm0, %v64_v0  ;;  %v49_v3 = vld [vmem:[%s5703_s0 + $0x8] sm:$0xff]  ;;  %v67_v7 = vld [vmem:[%s5703_s0 + $0x218] sm:$0xf]  ;;  %vm3285_vm4 = vcmask 39936   ;;  %s3791_s18 = smov 104  }
   0x3   :  { %3407 = vmatpush.msk.msra.mxu1 %vm87_vm0, %v65_v1  ;;  %3679 = vmatpush.msk.msra.mxu3 %vm87_vm0, %v65_v1  ;;  %v3890_v4 = vld [vmem:[%s5704_s2] sm:$0xff]  ;;  %v3895_v5 = vld [vmem:[%s5704_s2 + $0x8] sm:$0xff]  ;;  %v50_v10 = vld [vmem:[%s5703_s0 + $0x10] sm:$0xff]  ;;  %s3792_s19 = smov 24   ;;  %s3793_s20 = smov 96   ;;  %vm3256_vm5 = vcmask 64512  }
   0x4   :  { %151 = vmatpush.msra.mxu0 %v48_v2  ;;  %3678 = vmatpush.msra.mxu2 %v48_v2  ;;  %v68_v8 = vld [vmem:[%s5703_s0 + $0x220] sm:$0xf]  ;;  %v69_v9 = vld [vmem:[%s5703_s0 + $0x228] sm:$0xf]  ;;  %v51_v11 = vld [vmem:[%s5703_s0 + $0x18] sm:$0xff]  ;;  %s3794_s21 = smov 16  }
   0x5   :  { %174 = vmatpush.msra.mxu1 %v49_v3  ;;  %3680 = vmatpush.msra.mxu3 %v49_v3  ;;  %v52_v12 = vld [vmem:[%s5703_s0 + $0x20] sm:$0xff]  ;;  %v53_v13 = vld [vmem:[%s5703_s0 + $0x28] sm:$0xff]  ;;  %v70_v14 = vld [vmem:[%s5703_s0 + $0x230] sm:$0xf]  ;;  %s3795_s22 = smov 88   ;;  %s3797_s23 = smov 72  }
   0x6   :  { %3405 = vmatmul.msk.f32.vlgmr.msra.gmra.mxu0 %vm80_vm1, %v3890_v4  ;;  %3406 = vmatmul.msk.f32.vlgmr.msra.gmra.mxu2 %vm80_vm1, %v3895_v5  ;;  %v71_v15 = vld [vmem:[%s5703_s0 + $0x238] sm:$0xf]  ;;  %v72_v16 = vld [vmem:[%s5703_s0 + $0x240] sm:$0xf]  ;;  %v73_v17 = vld [vmem:[%s5703_s0 + $0x248] sm:$0xf] }
   0x7   :  { %3408 = vmatmul.msk.f32.vlgmr.msra.gmra.mxu1 %vm80_vm1, %v3890_v4  ;;  %3409 = vmatmul.msk.f32.vlgmr.msra.gmra.mxu3 %vm80_vm1, %v3895_v5  ;;  %v54_v18 = vld [vmem:[%s5703_s0 + $0x30] sm:$0xff]  ;;  %v55_v19 = vld [vmem:[%s5703_s0 + $0x38] sm:$0xff]  ;;  %v56_v20 = vld [vmem:[%s5703_s0 + $0x40] sm:$0xff]  ;;  %s3798_s2 = smov 64   ;;  %s3799_s24 = smov 56   ;;  %vm3398_vm6 = vcmask 57344  }
   0x8   :  { %3410 = vmatpush.msk.msrb.mxu2 %vm87_vm0, %v66_v6  ;;  %3413 = vmatpush.msk.msrb.mxu3 %vm87_vm0, %v67_v7  ;;  %v57_v21 = vld [vmem:[%s5703_s0 + $0x48] sm:$0xff]  ;;  %v74_v22 = vld [vmem:[%s5703_s0 + $0x250] sm:$0xf]  ;;  %v75_v23 = vld [vmem:[%s5703_s0 + $0x258] sm:$0xf] }
   0x9   :  { %3416 = vmatpush.msk.msrb.mxu0 %vm87_vm0, %v68_v8  ;;  %3419 = vmatpush.msk.msrb.mxu1 %vm87_vm0, %v69_v9  ;;  %v76_v24 = vld [vmem:[%s5703_s0 + $0x260] sm:$0xf]  ;;  %v77_v25 = vld [vmem:[%s5703_s0 + $0x268] sm:$0xf]  ;;  %v58_v26 = vld [vmem:[%s5703_s0 + $0x50] sm:$0xff] }
   0xa   :  { %197 = vmatpush.msrb.mxu2 %v50_v10  ;;  %220 = vmatpush.msrb.mxu3 %v51_v11  ;;  %v59_v27 = vld [vmem:[%s5703_s0 + $0x58] sm:$0xff]  ;;  %v60_v28 = vld [vmem:[%s5703_s0 + $0x60] sm:$0xff]  ;;  %v61_v29 = vld [vmem:[%s5703_s0 + $0x68] sm:$0xff] }
   0xb   :  { %243 = vmatpush.msrb.mxu0 %v52_v12  ;;  %266 = vmatpush.msrb.mxu1 %v53_v13  ;;  %v78_v30 = vld [vmem:[%s5703_s0 + $0x270] sm:$0xf]  ;;  %v79_v31 = vld [vmem:[%s5703_s0 + $0x278] sm:$0xf]  ;;  %v520_v32 = vld [vmem:[%s5703_s0 + $0x280] sm:$0xf] }
   0xc   :  { %3422 = vmatpush.msk.msra.mxu2 %vm87_vm0, %v70_v14  ;;  %3425 = vmatpush.msk.msra.mxu3 %vm87_vm0, %v71_v15  ;;  %v521_v33 = vld [vmem:[%s5703_s0 + $0x288] sm:$0xf]  ;;  %v62_v34 = vld [vmem:[%s5703_s0 + $0x70] sm:$0xff]  ;;  %v63_v35 = vld [vmem:[%s5703_s0 + $0x78] sm:$0xff] }
   0xd   :  { %3428 = vmatpush.msk.msra.mxu0 %vm87_vm0, %v72_v16  ;;  %3431 = vmatpush.msk.msra.mxu1 %vm87_vm0, %v73_v17  ;;  %v504_v36 = vld [vmem:[%s5703_s0 + $0x80] sm:$0xff]  ;;  %v505_v37 = vld [vmem:[%s5703_s0 + $0x88] sm:$0xff]  ;;  %v522_v38 = vld [vmem:[%s5703_s0 + $0x290] sm:$0xf] }
   0xe   :  { %3411 = vmatmul.msk.f32.vlgmr.msrb.gmra.mxu2 %vm80_vm1, %v3890_v4  ;;  %3417 = vmatmul.msk.f32.vlgmr.msrb.gmra.mxu0 %vm80_vm1, %v3890_v4  ;;  %v523_v39 = vld [vmem:[%s5703_s0 + $0x298] sm:$0xf]  ;;  %v524_v40 = vld [vmem:[%s5703_s0 + $0x2a0] sm:$0xf]  ;;  %v525_v41 = vld [vmem:[%s5703_s0 + $0x2a8] sm:$0xf] }
   0xf   :  { %3414 = vmatmul.msk.f32.vlgmr.msrb.gmra.mxu3 %vm80_vm1, %v3890_v4  ;;  %3420 = vmatmul.msk.f32.vlgmr.msrb.gmra.mxu1 %vm80_vm1, %v3890_v4  ;;  %v506_v42 = vld [vmem:[%s5703_s0 + $0x90] sm:$0xff]  ;;  %v507_v43 = vld [vmem:[%s5703_s0 + $0x98] sm:$0xff]  ;;  %v508_v44 = vld [vmem:[%s5703_s0 + $0xa0] sm:$0xff] }
  0x10   :  { %289 = vmatpush.msra.mxu2 %v54_v18  ;;  %312 = vmatpush.msra.mxu3 %v55_v19  ;;  %v509_v45 = vld [vmem:[%s5703_s0 + $0xa8] sm:$0xff]  ;;  %v526_v46 = vld [vmem:[%s5703_s0 + $0x2b0] sm:$0xf]  ;;  %v527_v47 = vld [vmem:[%s5703_s0 + $0x2b8] sm:$0xf] }
  0x11   :  { %335 = vmatpush.msra.mxu0 %v56_v20  ;;  %358 = vmatpush.msra.mxu1 %v57_v21  ;;  %v528_v48 = vld [vmem:[%s5703_s0 + $0x2c0] sm:$0xf]  ;;  %v529_v49 = vld [vmem:[%s5703_s0 + $0x2c8] sm:$0xf]  ;;  %v510_v50 = vld [vmem:[%s5703_s0 + $0xb0] sm:$0xff] }
  0x12   :  { %3434 = vmatpush.msk.msrb.mxu2 %vm87_vm0, %v74_v22  ;;  %3437 = vmatpush.msk.msrb.mxu3 %vm87_vm0, %v75_v23  ;;  %v511_v51 = vld [vmem:[%s5703_s0 + $0xb8] sm:$0xff]  ;;  %v512_v52 = vld [vmem:[%s5703_s0 + $0xc0] sm:$0xff]  ;;  %v513_v53 = vld [vmem:[%s5703_s0 + $0xc8] sm:$0xff] }
  0x13   :  { %3440 = vmatpush.msk.msrb.mxu0 %vm87_vm0, %v76_v24  ;;  %3443 = vmatpush.msk.msrb.mxu1 %vm87_vm0, %v77_v25  ;;  %v530_v54 = vld [vmem:[%s5703_s0 + $0x2d0] sm:$0xf]  ;;  %v531_v55 = vld [vmem:[%s5703_s0 + $0x2d8] sm:$0xf]  ;;  %v532_v56 = vld [vmem:[%s5703_s0 + $0x2e0] sm:$0xf] }
  0x14   :  { %381 = vmatpush.msrb.mxu2 %v58_v26  ;;  %404 = vmatpush.msrb.mxu3 %v59_v27  ;;  %v533_v57 = vld [vmem:[%s5703_s0 + $0x2e8] sm:$0xf]  ;;  %v514_v58 = vld [vmem:[%s5703_s0 + $0xd0] sm:$0xff]  ;;  %v515_v59 = vld [vmem:[%s5703_s0 + $0xd8] sm:$0xff] }
  0x15   :  { %427 = vmatpush.msrb.mxu0 %v60_v28  ;;  %450 = vmatpush.msrb.mxu1 %v61_v29  ;;  %v516_v60 = vld [vmem:[%s5703_s0 + $0xe0] sm:$0xff]  ;;  %v517_v61 = vld [vmem:[%s5703_s0 + $0xe8] sm:$0xff]  ;;  %v534_v62 = vld [vmem:[%s5703_s0 + $0x2f0] sm:$0xf] }
  0x16   :  { %3412 = vmatmul.msk.f32.gmra.mxu2 %vm80_vm1, %v3895_v5  ;;  %3418 = vmatmul.msk.f32.gmra.mxu0 %vm80_vm1, %v3895_v5  ;;  %v535_v63 = vld [vmem:[%s5703_s0 + $0x2f8] sm:$0xf]  ;;  %v1000_v0 = vld [vmem:[%s5703_s0 + $0x300] sm:$0xf]  ;;  %v1001_v1 = vld [vmem:[%s5703_s0 + $0x308] sm:$0xf] }
  0x17   :  { %3415 = vmatmul.msk.f32.gmra.mxu3 %vm80_vm1, %v3895_v5  ;;  %3421 = vmatmul.msk.f32.gmra.mxu1 %vm80_vm1, %v3895_v5  ;;  %v518_v2 = vld [vmem:[%s5703_s0 + $0xf0] sm:$0xff]  ;;  %v519_v3 = vld [vmem:[%s5703_s0 + $0xf8] sm:$0xff]  ;;  %v984_v6 = vld [vmem:[%s5703_s0 + $0x100] sm:$0xff] }
  0x18   :  { %v985_v7 = vld [vmem:[%s5703_s0 + $0x108] sm:$0xff]  ;;  %v1002_v8 = vld [vmem:[%s5703_s0 + $0x310] sm:$0xf]  ;;  %v1003_v9 = vld [vmem:[%s5703_s0 + $0x318] sm:$0xf] }
  0x19   :  { %v1004_v10 = vld [vmem:[%s5703_s0 + $0x320] sm:$0xf]  ;;  %v1005_v11 = vld [vmem:[%s5703_s0 + $0x328] sm:$0xf]  ;;  %v986_v12 = vld [vmem:[%s5703_s0 + $0x110] sm:$0xff] }
  0x1a   :  { %v987_v13 = vld [vmem:[%s5703_s0 + $0x118] sm:$0xff]  ;;  %v988_v14 = vld [vmem:[%s5703_s0 + $0x120] sm:$0xff]  ;;  %v989_v15 = vld [vmem:[%s5703_s0 + $0x128] sm:$0xff] }
  0x1b   :  { %v1006_v16 = vld [vmem:[%s5703_s0 + $0x330] sm:$0xf]  ;;  %v1007_v17 = vld [vmem:[%s5703_s0 + $0x338] sm:$0xf]  ;;  %v1008_v18 = vld [vmem:[%s5703_s0 + $0x340] sm:$0xf] }
  0x1c   :  { %v1009_v19 = vld [vmem:[%s5703_s0 + $0x348] sm:$0xf]  ;;  %v990_v20 = vld [vmem:[%s5703_s0 + $0x130] sm:$0xff]  ;;  %v991_v21 = vld [vmem:[%s5703_s0 + $0x138] sm:$0xff] }
  0x1d   :  { %v992_v22 = vld [vmem:[%s5703_s0 + $0x140] sm:$0xff]  ;;  %v993_v23 = vld [vmem:[%s5703_s0 + $0x148] sm:$0xff] }
  0x1e   :  { %3423 = vmatmul.msk.f32.vlgmr.msra.gmra.mxu2 %vm80_vm1, %v3890_v4  ;;  %3429 = vmatmul.msk.f32.vlgmr.msra.gmra.mxu0 %vm80_vm1, %v3890_v4 }
  0x1f   :  { %3426 = vmatmul.msk.f32.vlgmr.msra.gmra.mxu3 %vm80_vm1, %v3890_v4  ;;  %3432 = vmatmul.msk.f32.vlgmr.msra.gmra.mxu1 %vm80_vm1, %v3890_v4 }
  0x20   :  { %3446 = vmatpush.msk.msra.mxu2 %vm87_vm0, %v78_v30  ;;  %3449 = vmatpush.msk.msra.mxu3 %vm87_vm0, %v79_v31  ;;  %v1010_v30 = vld [vmem:[%s5703_s0 + $0x350] sm:$0xf]  ;;  %v1011_v31 = vld [vmem:[%s5703_s0 + $0x358] sm:$0xf] }
  0x21   :  { %3452 = vmatpush.msk.msra.mxu0 %vm87_vm0, %v520_v32  ;;  %3455 = vmatpush.msk.msra.mxu1 %vm87_vm0, %v521_v33  ;;  %v1012_v32 = vld [vmem:[%s5703_s0 + $0x360] sm:$0xf]  ;;  %v1013_v33 = vld [vmem:[%s5703_s0 + $0x368] sm:$0xf] }
  0x22   :  { %473 = vmatpush.msra.mxu2 %v62_v34  ;;  %496 = vmatpush.msra.mxu3 %v63_v35  ;;  %v994_v34 = vld [vmem:[%s5703_s0 + $0x150] sm:$0xff]  ;;  %v995_v35 = vld [vmem:[%s5703_s0 + $0x158] sm:$0xff] }
  0x23   :  { %599 = vmatpush.msra.mxu0 %v504_v36  ;;  %622 = vmatpush.msra.mxu1 %v505_v37  ;;  %v996_v36 = vld [vmem:[%s5703_s0 + $0x160] sm:$0xff]  ;;  %v997_v37 = vld [vmem:[%s5703_s0 + $0x168] sm:$0xff] }
  0x26   :  { %3424 = vmatmul.msk.f32.gmra.mxu2 %vm80_vm1, %v3895_v5  ;;  %3430 = vmatmul.msk.f32.gmra.mxu0 %vm80_vm1, %v3895_v5 }
  0x27   :  { %3427 = vmatmul.msk.f32.gmra.mxu3 %vm80_vm1, %v3895_v5  ;;  %3433 = vmatmul.msk.f32.gmra.mxu1 %vm80_vm1, %v3895_v5 }
  0x2e   :  { %3435 = vmatmul.msk.f32.vlgmr.msrb.gmra.mxu2 %vm80_vm1, %v3890_v4  ;;  %3441 = vmatmul.msk.f32.vlgmr.msrb.gmra.mxu0 %vm80_vm1, %v3890_v4 }
  0x2f   :  { %3438 = vmatmul.msk.f32.vlgmr.msrb.gmra.mxu3 %vm80_vm1, %v3890_v4  ;;  %3444 = vmatmul.msk.f32.vlgmr.msrb.gmra.mxu1 %vm80_vm1, %v3890_v4 }
  0x30   :  { %3458 = vmatpush.msk.msrb.mxu2 %vm87_vm0, %v522_v38  ;;  %3461 = vmatpush.msk.msrb.mxu3 %vm87_vm0, %v523_v39 }
  0x31   :  { %3464 = vmatpush.msk.msrb.mxu0 %vm87_vm0, %v524_v40  ;;  %3467 = vmatpush.msk.msrb.mxu1 %vm87_vm0, %v525_v41 }
  0x32   :  { %645 = vmatpush.msrb.mxu2 %v506_v42  ;;  %668 = vmatpush.msrb.mxu3 %v507_v43 }
  0x33   :  { %691 = vmatpush.msrb.mxu0 %v508_v44  ;;  %714 = vmatpush.msrb.mxu1 %v509_v45 }
  0x36   :  { %3436 = vmatmul.msk.f32.gmra.mxu2 %vm80_vm1, %v3895_v5  ;;  %3442 = vmatmul.msk.f32.gmra.mxu0 %vm80_vm1, %v3895_v5 }
  0x37   :  { %3439 = vmatmul.msk.f32.gmra.mxu3 %vm80_vm1, %v3895_v5  ;;  %3445 = vmatmul.msk.f32.gmra.mxu1 %vm80_vm1, %v3895_v5 }
  0x3e   :  { %3447 = vmatmul.msk.f32.vlgmr.msra.gmra.mxu2 %vm80_vm1, %v3890_v4  ;;  %3453 = vmatmul.msk.f32.vlgmr.msra.gmra.mxu0 %vm80_vm1, %v3890_v4 }
  0x3f   :  { %3450 = vmatmul.msk.f32.vlgmr.msra.gmra.mxu3 %vm80_vm1, %v3890_v4  ;;  %3456 = vmatmul.msk.f32.vlgmr.msra.gmra.mxu1 %vm80_vm1, %v3890_v4 }
  0x40   :  { %3470 = vmatpush.msk.msra.mxu2 %vm87_vm0, %v526_v46  ;;  %3473 = vmatpush.msk.msra.mxu3 %vm87_vm0, %v527_v47  ;;  %v1014_v46 = vld [vmem:[%s5703_s0 + $0x370] sm:$0xf]  ;;  %v1015_v47 = vld [vmem:[%s5703_s0 + $0x378] sm:$0xf] }
  0x41   :  { %3476 = vmatpush.msk.msra.mxu0 %vm87_vm0, %v528_v48  ;;  %3479 = vmatpush.msk.msra.mxu1 %vm87_vm0, %v529_v49  ;;  %v1480_v48 = vld [vmem:[%s5703_s0 + $0x380] sm:$0xf]  ;;  %v1481_v49 = vld [vmem:[%s5703_s0 + $0x388] sm:$0xf] }
  0x42   :  { %737 = vmatpush.msra.mxu2 %v510_v50  ;;  %760 = vmatpush.msra.mxu3 %v511_v51  ;;  %v998_v50 = vld [vmem:[%s5703_s0 + $0x170] sm:$0xff]  ;;  %v999_v51 = vld [vmem:[%s5703_s0 + $0x178] sm:$0xff] }
  0x43   :  { %783 = vmatpush.msra.mxu0 %v512_v52  ;;  %806 = vmatpush.msra.mxu1 %v513_v53  ;;  %v1464_v52 = vld [vmem:[%s5703_s0 + $0x180] sm:$0xff]  ;;  %v1465_v53 = vld [vmem:[%s5703_s0 + $0x188] sm:$0xff] }
  0x46   :  { %3448 = vmatmul.msk.f32.gmra.mxu2 %vm80_vm1, %v3895_v5  ;;  %3454 = vmatmul.msk.f32.gmra.mxu0 %vm80_vm1, %v3895_v5 }
  0x47   :  { %3451 = vmatmul.msk.f32.gmra.mxu3 %vm80_vm1, %v3895_v5  ;;  %3457 = vmatmul.msk.f32.gmra.mxu1 %vm80_vm1, %v3895_v5 }
  0x4e   :  { %3459 = vmatmul.msk.f32.vlgmr.msrb.gmra.mxu2 %vm80_vm1, %v3890_v4  ;;  %3465 = vmatmul.msk.f32.vlgmr.msrb.gmra.mxu0 %vm80_vm1, %v3890_v4 }
  0x4f   :  { %3462 = vmatmul.msk.f32.vlgmr.msrb.gmra.mxu3 %vm80_vm1, %v3890_v4  ;;  %3468 = vmatmul.msk.f32.vlgmr.msrb.gmra.mxu1 %vm80_vm1, %v3890_v4 }
  0x50   :  { %3482 = vmatpush.msk.msrb.mxu2 %vm87_vm0, %v530_v54  ;;  %3485 = vmatpush.msk.msrb.mxu3 %vm87_vm0, %v531_v55 }
  0x51   :  { %3488 = vmatpush.msk.msrb.mxu0 %vm87_vm0, %v532_v56  ;;  %3491 = vmatpush.msk.msrb.mxu1 %vm87_vm0, %v533_v57 }
  0x52   :  { %829 = vmatpush.msrb.mxu2 %v514_v58  ;;  %852 = vmatpush.msrb.mxu3 %v515_v59 }
  0x53   :  { %875 = vmatpush.msrb.mxu0 %v516_v60  ;;  %898 = vmatpush.msrb.mxu1 %v517_v61  ;;  %v1944_v60 = vld [vmem:[%s5705_s3] sm:$0xff] }
  0x56   :  { %3460 = vmatmul.msk.f32.gmra.mxu2 %vm80_vm1, %v3895_v5  ;;  %3466 = vmatmul.msk.f32.gmra.mxu0 %vm80_vm1, %v3895_v5 }
  0x57   :  { %3463 = vmatmul.msk.f32.gmra.mxu3 %vm80_vm1, %v3895_v5  ;;  %3469 = vmatmul.msk.f32.gmra.mxu1 %vm80_vm1, %v3895_v5 }
  0x5e   :  { %3471 = vmatmul.msk.f32.vlgmr.msra.gmra.mxu2 %vm80_vm1, %v3890_v4  ;;  %3477 = vmatmul.msk.f32.vlgmr.msra.gmra.mxu0 %vm80_vm1, %v3890_v4 }
  0x5f   :  { %3474 = vmatmul.msk.f32.vlgmr.msra.gmra.mxu3 %vm80_vm1, %v3890_v4  ;;  %3480 = vmatmul.msk.f32.vlgmr.msra.gmra.mxu1 %vm80_vm1, %v3890_v4 }
  0x60   :  { %3494 = vmatpush.msk.msra.mxu2 %vm87_vm0, %v534_v62  ;;  %3497 = vmatpush.msk.msra.mxu3 %vm87_vm0, %v535_v63  ;;  %v5717_v62 = vmov 0  }
  0x61   :  { %3500 = vmatpush.msk.msra.mxu0 %vm87_vm0, %v1000_v0  ;;  %3503 = vmatpush.msk.msra.mxu1 %vm87_vm0, %v1001_v1  ;;  %v1482_v0 = vld [vmem:[%s5703_s0 + $0x390] sm:$0xf]  ;;  %v1483_v1 = vld [vmem:[%s5703_s0 + $0x398] sm:$0xf] }
  0x62   :  { %921 = vmatpush.msra.mxu2 %v518_v2  ;;  %944 = vmatpush.msra.mxu3 %v519_v3  ;;  %v1484_v2 = vld [vmem:[%s5703_s0 + $0x3a0] sm:$0xf]  ;;  %v1485_v3 = vld [vmem:[%s5703_s0 + $0x3a8] sm:$0xf] }
  0x63   :  { %1079 = vmatpush.msra.mxu0 %v984_v6  ;;  %1102 = vmatpush.msra.mxu1 %v985_v7  ;;  %v1466_v6 = vld [vmem:[%s5703_s0 + $0x190] sm:$0xff]  ;;  %v1467_v7 = vld [vmem:[%s5703_s0 + $0x198] sm:$0xff] }
  0x64   :  { %3712 = vset.pattern.permute.xlu0 %v5717_v62  ;;  %3713 = vset.pattern.permute.xlu1 %v5717_v62 }
  0x65   :  { %1948 = vperm.xlu0 %3712, %v1944_v60   ;;  %3714 = vset.pattern.permute.xlu2 %v5717_v62  ;;  %v1474_v60 = vld [vmem:[%s5703_s0 + $0x1d0] sm:$0xff] }
  0x66   :  { %3472 = vmatmul.msk.f32.gmra.mxu2 %vm80_vm1, %v3895_v5  ;;  %3478 = vmatmul.msk.f32.gmra.mxu0 %vm80_vm1, %v3895_v5 }
  0x67   :  { %3475 = vmatmul.msk.f32.gmra.mxu3 %vm80_vm1, %v3895_v5  ;;  %3481 = vmatmul.msk.f32.gmra.mxu1 %vm80_vm1, %v3895_v5 }
  0x6e   :  { %3483 = vmatmul.msk.f32.vlgmr.msrb.gmra.mxu2 %vm80_vm1, %v3890_v4  ;;  %3489 = vmatmul.msk.f32.vlgmr.msrb.gmra.mxu0 %vm80_vm1, %v3890_v4 }
  0x6f   :  { %3486 = vmatmul.msk.f32.vlgmr.msrb.gmra.mxu3 %vm80_vm1, %v3890_v4  ;;  %3492 = vmatmul.msk.f32.vlgmr.msrb.gmra.mxu1 %vm80_vm1, %v3890_v4 }
  0x70   :  { %3506 = vmatpush.msk.msrb.mxu2 %vm87_vm0, %v1002_v8  ;;  %3509 = vmatpush.msk.msrb.mxu3 %vm87_vm0, %v1003_v9  ;;  %v1468_v8 = vld [vmem:[%s5703_s0 + $0x1a0] sm:$0xff]  ;;  %v1469_v9 = vld [vmem:[%s5703_s0 + $0x1a8] sm:$0xff] }
  0x71   :  { %3512 = vmatpush.msk.msrb.mxu0 %vm87_vm0, %v1004_v10  ;;  %3515 = vmatpush.msk.msrb.mxu1 %vm87_vm0, %v1005_v11 }
  0x72   :  { %1125 = vmatpush.msrb.mxu2 %v986_v12  ;;  %1148 = vmatpush.msrb.mxu3 %v987_v13  ;;  %v1945_v13 = vld [vmem:[%s5705_s3 + $0x8] sm:$0xff]  ;;  %s3788_s3 = smov 40  }
  0x73   :  { %1171 = vmatpush.msrb.mxu0 %v988_v14  ;;  %1194 = vmatpush.msrb.mxu1 %v989_v15 }
  0x74   :  { %1953 = vperm.xlu0 %3712, %v1945_v13  }
  0x76   :  { %3484 = vmatmul.msk.f32.gmra.mxu2 %vm80_vm1, %v3895_v5  ;;  %3490 = vmatmul.msk.f32.gmra.mxu0 %vm80_vm1, %v3895_v5 }
  0x77   :  { %3487 = vmatmul.msk.f32.gmra.mxu3 %vm80_vm1, %v3895_v5  ;;  %3493 = vmatmul.msk.f32.gmra.mxu1 %vm80_vm1, %v3895_v5 }
  0x7e   :  { %3495 = vmatmul.msk.f32.vlgmr.msra.gmra.mxu2 %vm80_vm1, %v3890_v4  ;;  %3501 = vmatmul.msk.f32.vlgmr.msra.gmra.mxu0 %vm80_vm1, %v3890_v4 }
  0x7f   :  { %3498 = vmatmul.msk.f32.vlgmr.msra.gmra.mxu3 %vm80_vm1, %v3890_v4  ;;  %3504 = vmatmul.msk.f32.vlgmr.msra.gmra.mxu1 %vm80_vm1, %v3890_v4 }
  0x80   :  { %3518 = vmatpush.msk.msra.mxu2 %vm87_vm0, %v1006_v16  ;;  %3521 = vmatpush.msk.msra.mxu3 %vm87_vm0, %v1007_v17 }
  0x81   :  { %3524 = vmatpush.msk.msra.mxu0 %vm87_vm0, %v1008_v18  ;;  %3527 = vmatpush.msk.msra.mxu1 %vm87_vm0, %v1009_v19  ;;  %v1486_v19 = vld [vmem:[%s5703_s0 + $0x3b0] sm:$0xf] }
  0x82   :  { %1217 = vmatpush.msra.mxu2 %v990_v20  ;;  %1240 = vmatpush.msra.mxu3 %v991_v21  ;;  %v1487_v20 = vld [vmem:[%s5703_s0 + $0x3b8] sm:$0xf]  ;;  %v1488_v21 = vld [vmem:[%s5703_s0 + $0x3c0] sm:$0xf] }
  0x83   :  { %v4305_v24 = vpop.f32.mrf.mxu0  ;;  %1263 = vmatpush.msra.mxu0 %v992_v22  ;;  %1286 = vmatpush.msra.mxu1 %v993_v23  ;;  %v1489_v22 = vld [vmem:[%s5703_s0 + $0x3c8] sm:$0xf]  ;;  %v1470_v23 = vld [vmem:[%s5703_s0 + $0x1b0] sm:$0xff] }
  0x84   :  { %v4307_v25 = vpop.f32.mrf.mxu1 }
  0x86   :  { %3496 = vmatmul.msk.f32.gmra.mxu2 %vm80_vm1, %v3895_v5  ;;  %3502 = vmatmul.msk.f32.gmra.mxu0 %vm80_vm1, %v3895_v5 }
  0x87   :  { %3499 = vmatmul.msk.f32.gmra.mxu3 %vm80_vm1, %v3895_v5  ;;  %3505 = vmatmul.msk.f32.gmra.mxu1 %vm80_vm1, %v3895_v5 }
  0x89   :  { %v4317_v26 = vpop.f32.mrf.mxu2 }
  0x8a   :  { %v4319_v27 = vpop.f32.mrf.mxu3 }
  0x8b   :  { %v4321_v28 = vpop.f32.mrf.mxu0 }
  0x8c   :  { %v4323_v29 = vpop.f32.mrf.mxu1 }
  0x8e   :  { %3507 = vmatmul.msk.f32.vlgmr.msrb.gmra.mxu2 %vm80_vm1, %v3890_v4  ;;  %3513 = vmatmul.msk.f32.vlgmr.msrb.gmra.mxu0 %vm80_vm1, %v3890_v4 }
  0x8f   :  { %3510 = vmatmul.msk.f32.vlgmr.msrb.gmra.mxu3 %vm80_vm1, %v3890_v4  ;;  %3516 = vmatmul.msk.f32.vlgmr.msrb.gmra.mxu1 %vm80_vm1, %v3890_v4 }
  0x90   :  { %3530 = vmatpush.msk.msrb.mxu2 %vm87_vm0, %v1010_v30  ;;  %3533 = vmatpush.msk.msrb.mxu3 %vm87_vm0, %v1011_v31  ;;  %v1471_v30 = vld [vmem:[%s5703_s0 + $0x1b8] sm:$0xff]  ;;  %v1472_v31 = vld [vmem:[%s5703_s0 + $0x1c0] sm:$0xff] }
  0x91   :  { %v4359_v38 = vpop.f32.mrf.mxu2  ;;  %3536 = vmatpush.msk.msrb.mxu0 %vm87_vm0, %v1012_v32  ;;  %3539 = vmatpush.msk.msrb.mxu1 %vm87_vm0, %v1013_v33  ;;  %v1473_v32 = vld [vmem:[%s5703_s0 + $0x1c8] sm:$0xff] }
  0x92   :  { %v4363_v39 = vpop.f32.mrf.mxu3  ;;  %1309 = vmatpush.msrb.mxu2 %v994_v34  ;;  %1332 = vmatpush.msrb.mxu3 %v995_v35 }
  0x93   :  { %v4365_v40 = vpop.f32.mrf.mxu0  ;;  %1355 = vmatpush.msrb.mxu0 %v996_v36  ;;  %1378 = vmatpush.msrb.mxu1 %v997_v37 }
  0x94   :  { %v4367_v41 = vpop.f32.mrf.mxu1 }
  0x96   :  { %3508 = vmatmul.msk.f32.gmra.mxu2 %vm80_vm1, %v3895_v5  ;;  %3514 = vmatmul.msk.f32.gmra.mxu0 %vm80_vm1, %v3895_v5 }
  0x97   :  { %3511 = vmatmul.msk.f32.gmra.mxu3 %vm80_vm1, %v3895_v5  ;;  %3517 = vmatmul.msk.f32.gmra.mxu1 %vm80_vm1, %v3895_v5 }
  0x99   :  { %v4377_v42 = vpop.f32.mrf.mxu2 }
  0x9a   :  { %v4379_v43 = vpop.f32.mrf.mxu3 }
  0x9b   :  { %v4381_v44 = vpop.f32.mrf.mxu0 }
  0x9c   :  { %v4383_v45 = vpop.f32.mrf.mxu1 }
  0x9e   :  { %3519 = vmatmul.msk.f32.vlgmr.msra.gmra.mxu2 %vm80_vm1, %v3890_v4  ;;  %3525 = vmatmul.msk.f32.vlgmr.msra.gmra.mxu0 %vm80_vm1, %v3890_v4 }
  0x9f   :  { %3522 = vmatmul.msk.f32.vlgmr.msra.gmra.mxu3 %vm80_vm1, %v3890_v4  ;;  %3528 = vmatmul.msk.f32.vlgmr.msra.gmra.mxu1 %vm80_vm1, %v3890_v4 }
  0xa0   :  { %3542 = vmatpush.msk.msra.mxu2 %vm87_vm0, %v1014_v46  ;;  %3545 = vmatpush.msk.msra.mxu3 %vm87_vm0, %v1015_v47 }
  0xa1   :  { %v4419_v54 = vpop.f32.mrf.mxu2  ;;  %3548 = vmatpush.msk.msra.mxu0 %vm87_vm0, %v1480_v48  ;;  %3551 = vmatpush.msk.msra.mxu1 %vm87_vm0, %v1481_v49  ;;  %v1490_v49 = vld [vmem:[%s5703_s0 + $0x3d0] sm:$0xf] }
  0xa2   :  { %v4423_v55 = vpop.f32.mrf.mxu3  ;;  %1401 = vmatpush.msra.mxu2 %v998_v50  ;;  %1424 = vmatpush.msra.mxu3 %v999_v51  ;;  %v1491_v50 = vld [vmem:[%s5703_s0 + $0x3d8] sm:$0xf]  ;;  %v1492_v51 = vld [vmem:[%s5703_s0 + $0x3e0] sm:$0xf] }
  0xa3   :  { %5730 = vst [vmem:[#allocation3_spill] sm:$0xff] %v4423_v55  ;;  %v4425_v56 = vpop.f32.mrf.mxu0  ;;  %1559 = vmatpush.msra.mxu0 %v1464_v52  ;;  %1582 = vmatpush.msra.mxu1 %v1465_v53  ;;  %v1493_v52 = vld [vmem:[%s5703_s0 + $0x3e8] sm:$0xf]  ;;  %v2596_v53 = vld [vmem:[%s5706_s5] sm:$0xff] }
  0xa4   :  { %v4427_v57 = vpop.f32.mrf.mxu1  ;;  %2602 = vperm.xlu1 %3713, %v2596_v53   ;;  %v4687_v53 = vld [vmem:[%s5707_s6] sm:$0xff] }
  0xa6   :  { %3520 = vmatmul.msk.f32.gmra.mxu2 %vm80_vm1, %v3895_v5  ;;  %3526 = vmatmul.msk.f32.gmra.mxu0 %vm80_vm1, %v3895_v5 }
  0xa7   :  { %3523 = vmatmul.msk.f32.gmra.mxu3 %vm80_vm1, %v3895_v5  ;;  %3529 = vmatmul.msk.f32.gmra.mxu1 %vm80_vm1, %v3895_v5 }
  0xa9   :  { %v4437_v58 = vpop.f32.mrf.mxu2 }
  0xaa   :  { %5731 = vst [vmem:[#allocation4_spill] sm:$0xff] %v4437_v58  ;;  %v4439_v59 = vpop.f32.mrf.mxu3 }
  0xab   :  { %5732 = vst [vmem:[#allocation5_spill] sm:$0xff] %v4439_v59  ;;  %v4444_v61 = vpop.f32.mrf.mxu0 }
  0xac   :  { %5733 = vst [vmem:[#allocation6_spill] sm:$0xff] %v4444_v61  ;;  %v4448_v63 = vpop.f32.mrf.mxu1 }
  0xad   :  { %5734 = vst [vmem:[#allocation7_spill] sm:$0xff] %v4448_v63 }
  0xae   :  { %3531 = vmatmul.msk.f32.vlgmr.msrb.gmra.mxu2 %vm80_vm1, %v3890_v4  ;;  %3537 = vmatmul.msk.f32.vlgmr.msrb.gmra.mxu0 %vm80_vm1, %v3890_v4 }
  0xaf   :  { %3534 = vmatmul.msk.f32.vlgmr.msrb.gmra.mxu3 %vm80_vm1, %v3890_v4  ;;  %3540 = vmatmul.msk.f32.vlgmr.msrb.gmra.mxu1 %vm80_vm1, %v3890_v4 }
  0xb0   :  { %3554 = vmatpush.msk.msrb.mxu2 %vm87_vm0, %v1482_v0  ;;  %3557 = vmatpush.msk.msrb.mxu3 %vm87_vm0, %v1483_v1  ;;  %v1475_v0 = vld [vmem:[%s5703_s0 + $0x1d8] sm:$0xff]  ;;  %v1476_v1 = vld [vmem:[%s5703_s0 + $0x1e0] sm:$0xff] }
  0xb1   :  { %v4485_v10 = vpop.f32.mrf.mxu2  ;;  %3560 = vmatpush.msk.msrb.mxu0 %vm87_vm0, %v1484_v2  ;;  %3563 = vmatpush.msk.msrb.mxu1 %vm87_vm0, %v1485_v3  ;;  %v1477_v3 = vld [vmem:[%s5703_s0 + $0x1e8] sm:$0xff] }
  0xb2   :  { %5735 = vst [vmem:[#allocation8_spill] sm:$0xff] %v4485_v10  ;;  %v4489_v11 = vpop.f32.mrf.mxu3  ;;  %1605 = vmatpush.msrb.mxu2 %v1466_v6  ;;  %1628 = vmatpush.msrb.mxu3 %v1467_v7 }
  0xb3   :  { %5736 = vst [vmem:[#allocation9_spill] sm:$0xff] %v4489_v11  ;;  %v4491_v12 = vpop.f32.mrf.mxu0  ;;  %1651 = vmatpush.msrb.mxu0 %v1468_v8  ;;  %1674 = vmatpush.msrb.mxu1 %v1469_v9  ;;  %v2597_v9 = vld [vmem:[%s5706_s5 + $0x8] sm:$0xff] }
  0xb4   :  { %5737 = vst [vmem:[#allocation10_spill] sm:$0xff] %v4491_v12  ;;  %v4496_v14 = vpop.f32.mrf.mxu1  ;;  %2607 = vperm.xlu1 %3713, %v2597_v9  }
  0xb5   :  { %5738 = vst [vmem:[#allocation11_spill] sm:$0xff] %v4496_v14 }
  0xb6   :  { %3532 = vmatmul.msk.f32.gmra.mxu2 %vm80_vm1, %v3895_v5  ;;  %3538 = vmatmul.msk.f32.gmra.mxu0 %vm80_vm1, %v3895_v5 }
  0xb7   :  { %3535 = vmatmul.msk.f32.gmra.mxu3 %vm80_vm1, %v3895_v5  ;;  %3541 = vmatmul.msk.f32.gmra.mxu1 %vm80_vm1, %v3895_v5 }
  0xb9   :  { %v4506_v15 = vpop.f32.mrf.mxu2 }
  0xba   :  { %5739 = vst [vmem:[#allocation12_spill] sm:$0xff] %v4506_v15  ;;  %v4508_v16 = vpop.f32.mrf.mxu3 }
  0xbb   :  { %5740 = vst [vmem:[#allocation13_spill] sm:$0xff] %v4508_v16  ;;  %v4510_v17 = vpop.f32.mrf.mxu0 }
  0xbc   :  { %v4512_v18 = vpop.f32.mrf.mxu1 }
  0xbe   :  { %3543 = vmatmul.msk.f32.vlgmr.msra.gmra.mxu2 %vm80_vm1, %v3890_v4  ;;  %3549 = vmatmul.msk.f32.vlgmr.msra.gmra.mxu0 %vm80_vm1, %v3890_v4 }
  0xbf   :  { %3546 = vmatmul.msk.f32.vlgmr.msra.gmra.mxu3 %vm80_vm1, %v3890_v4  ;;  %3552 = vmatmul.msk.f32.vlgmr.msra.gmra.mxu1 %vm80_vm1, %v3890_v4 }
  0xc0   :  { %3566 = vmatpush.msk.msra.mxu2 %vm87_vm0, %v1486_v19  ;;  %3569 = vmatpush.msk.msra.mxu3 %vm87_vm0, %v1487_v20 }
  0xc1   :  { %v4548_v33 = vpop.f32.mrf.mxu2  ;;  %3572 = vmatpush.msk.msra.mxu0 %vm87_vm0, %v1488_v21  ;;  %3575 = vmatpush.msk.msra.mxu1 %vm87_vm0, %v1489_v22  ;;  %v1494_v22 = vld [vmem:[%s5703_s0 + $0x3f0] sm:$0xf] }
  0xc2   :  { %5741 = vst [vmem:[#allocation14_spill] sm:$0xff] %v4548_v33  ;;  %v4552_v34 = vpop.f32.mrf.mxu3  ;;  %1697 = vmatpush.msra.mxu2 %v1470_v23  ;;  %1720 = vmatpush.msra.mxu3 %v1471_v30  ;;  %v1495_v23 = vld [vmem:[%s5703_s0 + $0x3f8] sm:$0xf]  ;;  %v4657_v30 = vld [vmem:[%s5707_s6 + $0x8] sm:$0xff] }
  0xc3   :  { %5742 = vst [vmem:[#allocation15_spill] sm:$0xff] %v4552_v34  ;;  %v4554_v35 = vpop.f32.mrf.mxu0  ;;  %1743 = vmatpush.msra.mxu0 %v1472_v31  ;;  %1766 = vmatpush.msra.mxu1 %v1473_v32  ;;  %v1478_v31 = vld [vmem:[%s5703_s0 + $0x1f0] sm:$0xff]  ;;  %v1479_v32 = vld [vmem:[%s5703_s0 + $0x1f8] sm:$0xff]  ;;  %v5720_v34 = vmov 2   ;;  %s3796_s0 = smov 80  }
  0xc4   :  { %v4556_v36 = vpop.f32.mrf.mxu1  ;;  %2639 = vperm.xlu1 %3713, %v4657_v30  }
  0xc6   :  { %3544 = vmatmul.msk.f32.gmra.mxu2 %vm80_vm1, %v3895_v5  ;;  %3550 = vmatmul.msk.f32.gmra.mxu0 %vm80_vm1, %v3895_v5 }
  0xc7   :  { %3547 = vmatmul.msk.f32.gmra.mxu3 %vm80_vm1, %v3895_v5  ;;  %3553 = vmatmul.msk.f32.gmra.mxu1 %vm80_vm1, %v3895_v5 }
  0xc9   :  { %v4566_v37 = vpop.f32.mrf.mxu2 }
  0xca   :  { %5743 = vst [vmem:[#allocation16_spill] sm:$0xff] %v4566_v37  ;;  %v4568_v46 = vpop.f32.mrf.mxu3 }
  0xcb   :  { %5744 = vst [vmem:[#allocation17_spill] sm:$0xff] %v4568_v46  ;;  %v4570_v47 = vpop.f32.mrf.mxu0 }
  0xcc   :  { %v4572_v48 = vpop.f32.mrf.mxu1  ;;  %v956_v58 = vmax.f32 %v4321_v28, %v4570_v47  ;;  %v969_v28 = vmax.f32 %v4319_v27, %v4556_v36 }
  0xce   :  { %3555 = vmatmul.msk.f32.vlgmr.msrb.gmra.mxu2 %vm80_vm1, %v3890_v4  ;;  %3561 = vmatmul.msk.f32.vlgmr.msrb.gmra.mxu0 %vm80_vm1, %v3890_v4 }
  0xcf   :  { %3558 = vmatmul.msk.f32.vlgmr.msrb.gmra.mxu3 %vm80_vm1, %v3890_v4  ;;  %3564 = vmatmul.msk.f32.vlgmr.msrb.gmra.mxu1 %vm80_vm1, %v3890_v4 }
  0xd0   :  { %3578 = vmatpush.msk.msrb.mxu2 %vm87_vm0, %v1490_v49  ;;  %3581 = vmatpush.msk.msrb.mxu3 %vm87_vm0, %v1491_v50 }
  0xd1   :  { %v4608_v2 = vpop.f32.mrf.mxu2  ;;  %3584 = vmatpush.msk.msrb.mxu0 %vm87_vm0, %v1492_v51  ;;  %3587 = vmatpush.msk.msrb.mxu1 %vm87_vm0, %v1493_v52 }
  0xd2   :  { %v4615_v6 = vpop.f32.mrf.mxu3  ;;  %1789 = vmatpush.msrb.mxu2 %v1474_v60  ;;  %1812 = vmatpush.msrb.mxu3 %v1475_v0  ;;  %v5719_v60 = vmov 1  }
  0xd3   :  { %v4617_v7 = vpop.f32.mrf.mxu0  ;;  %1835 = vmatpush.msrb.mxu0 %v1476_v1  ;;  %1858 = vmatpush.msrb.mxu1 %v1477_v3 }
  0xd4   :  { %v4619_v8 = vpop.f32.mrf.mxu1  ;;  %3717 = vset.pattern.permute.xlu0 %v5719_v60  ;;  %3715 = vset.pattern.permute.xlu1 %v5719_v60 }
  0xd5   :  { %2657 = vperm.xlu1 %3715, %v4687_v53  }
  0xd6   :  { %3556 = vmatmul.msk.f32.gmra.mxu2 %vm80_vm1, %v3895_v5  ;;  %3562 = vmatmul.msk.f32.gmra.mxu0 %vm80_vm1, %v3895_v5 }
  0xd7   :  { %3559 = vmatmul.msk.f32.gmra.mxu3 %vm80_vm1, %v3895_v5  ;;  %3565 = vmatmul.msk.f32.gmra.mxu1 %vm80_vm1, %v3895_v5 }
  0xd9   :  { %v4632_v13 = vpop.f32.mrf.mxu2 }
  0xda   :  { %v4634_v19 = vpop.f32.mrf.mxu3 }
  0xdb   :  { %v4636_v20 = vpop.f32.mrf.mxu0 }
  0xdc   :  { %v4638_v21 = vpop.f32.mrf.mxu1 }
  0xde   :  { %3567 = vmatmul.msk.f32.vlgmr.msra.gmra.mxu2 %vm80_vm1, %v3890_v4  ;;  %3573 = vmatmul.msk.f32.vlgmr.msra.gmra.mxu0 %vm80_vm1, %v3890_v4 }
  0xdf   :  { %3570 = vmatmul.msk.f32.vlgmr.msra.gmra.mxu3 %vm80_vm1, %v3890_v4  ;;  %3576 = vmatmul.msk.f32.vlgmr.msra.gmra.mxu1 %vm80_vm1, %v3890_v4 }
  0xe0   :  { %3590 = vmatpush.msk.msra.mxu2 %vm87_vm0, %v1494_v22  ;;  %3593 = vmatpush.msk.msra.mxu3 %vm87_vm0, %v1495_v23  ;;  %v4711_v22 = vld [vmem:[%s5707_s6 + $0x18] sm:$0xff] }
  0xe1   :  { %v4667_v49 = vpop.f32.mrf.mxu2  ;;  %2669 = vperm.xlu1 %3715, %v4711_v22  }
  0xe2   :  { %v4669_v50 = vpop.f32.mrf.mxu3  ;;  %1881 = vmatpush.msra.mxu2 %v1478_v31  ;;  %1904 = vmatpush.msra.mxu3 %v1479_v32 }
  0xe3   :  { %5745 = vst [vmem:[#allocation18_spill] sm:$0xff] %v4669_v50  ;;  %v4672_v51 = vpop.f32.mrf.mxu0  ;;  %v3777_v50 = vmov 7  }
  0xe4   :  { %v4674_v52 = vpop.f32.mrf.mxu1 }
  0xe6   :  { %3568 = vmatmul.msk.f32.gmra.mxu2 %vm80_vm1, %v3895_v5  ;;  %3574 = vmatmul.msk.f32.gmra.mxu0 %vm80_vm1, %v3895_v5 }
  0xe7   :  { %3571 = vmatmul.msk.f32.gmra.mxu3 %vm80_vm1, %v3895_v5  ;;  %3577 = vmatmul.msk.f32.gmra.mxu1 %vm80_vm1, %v3895_v5 }
  0xe9   :  { %v4690_v0 = vpop.f32.mrf.mxu2  ;;  %3718 = vset.pattern.permute.xlu1 %v5720_v34 }
  0xea   :  { %5746 = vst [vmem:[#allocation19_spill] sm:$0xff] %v4690_v0  ;;  %v4692_v1 = vpop.f32.mrf.mxu3  ;;  %2697 = vperm.xlu1 %3718, %v4687_v53   ;;  %v2599_v0 = vld [vmem:[%s5706_s5 + $0x18] sm:$0xff] }
  0xeb   :  { %5747 = vst [vmem:[#allocation20_spill] sm:$0xff] %v4692_v1  ;;  %v4695_v3 = vpop.f32.mrf.mxu0 }
  0xec   :  { %5748 = vst [vmem:[#allocation21_spill] sm:$0xff] %v4695_v3  ;;  %v4698_v9 = vpop.f32.mrf.mxu1 }
  0xed   :  { %5749 = vst [vmem:[#allocation22_spill] sm:$0xff] %v4698_v9 }
  0xee   :  { %3579 = vmatmul.msk.f32.vlgmr.msrb.gmra.mxu2 %vm80_vm1, %v3890_v4  ;;  %3585 = vmatmul.msk.f32.vlgmr.msrb.gmra.mxu0 %vm80_vm1, %v3890_v4 }
  0xef   :  { %3582 = vmatmul.msk.f32.vlgmr.msrb.gmra.mxu3 %vm80_vm1, %v3890_v4  ;;  %3588 = vmatmul.msk.f32.vlgmr.msrb.gmra.mxu1 %vm80_vm1, %v3890_v4 }
  0xf1   :  { %v4713_v23 = vpop.f32.mrf.mxu2 }
  0xf2   :  { %5750 = vst [vmem:[#allocation23_spill] sm:$0xff] %v4713_v23  ;;  %v4715_v31 = vpop.f32.mrf.mxu3  ;;  %2709 = vperm.xlu1 %3718, %v4711_v22  }
  0xf3   :  { %5751 = vst [vmem:[#allocation24_spill] sm:$0xff] %v4715_v31  ;;  %v4717_v32 = vpop.f32.mrf.mxu0 }
  0xf4   :  { %5752 = vst [vmem:[#allocation25_spill] sm:$0xff] %v4717_v32  ;;  %v4720_v62 = vpop.f32.mrf.mxu1 }
  0xf5   :  { %5753 = vst [vmem:[#allocation26_spill] sm:$0xff] %v4720_v62 }
  0xf6   :  { %3580 = vmatmul.msk.f32.gmra.mxu2 %vm80_vm1, %v3895_v5  ;;  %3586 = vmatmul.msk.f32.gmra.mxu0 %vm80_vm1, %v3895_v5 }
  0xf7   :  { %3583 = vmatmul.msk.f32.gmra.mxu3 %vm80_vm1, %v3895_v5  ;;  %3589 = vmatmul.msk.f32.gmra.mxu1 %vm80_vm1, %v3895_v5 }
  0xf9   :  { %v4730_v60 = vpop.f32.mrf.mxu2 }
  0xfa   :  { %5754 = vst [vmem:[#allocation27_spill] sm:$0xff] %v4730_v60  ;;  %v4732_v46 = vpop.f32.mrf.mxu3 }
  0xfb   :  { %5755 = vst [vmem:[#allocation28_spill] sm:$0xff] %v4732_v46  ;;  %v4734_v37 = vpop.f32.mrf.mxu0 }
  0xfc   :  { %v4737_v33 = vpop.f32.mrf.mxu1 }
  0xfe   :  { %3591 = vmatmul.msk.f32.vlgmr.msra.gmra.mxu2 %vm80_vm1, %v3890_v4 }
  0xff   :  { %3594 = vmatmul.msk.f32.vlgmr.msra.gmra.mxu3 %vm80_vm1, %v3890_v4 }
 0x101   :  { %v4744_v16 = vpop.f32.mrf.mxu2 }
 0x102   :  { %5756 = vst [vmem:[#allocation29_spill] sm:$0xff] %v4744_v16  ;;  %v4746_v15 = vpop.f32.mrf.mxu3 }
 0x103   :  { %5757 = vst [vmem:[#allocation30_spill] sm:$0xff] %v4746_v15  ;;  %v4748_v46 = vpop.f32.mrf.mxu0  ;;  %v5722_v15 = vmov 3  }
 0x104   :  { %v4750_v60 = vpop.f32.mrf.mxu1  ;;  %3721 = vset.pattern.permute.xlu1 %v5722_v15  ;;  %v5724_v15 = vmov 4  }
 0x105   :  { %2737 = vperm.xlu1 %3721, %v4687_v53  }
 0x106   :  { %3592 = vmatmul.msk.f32.gmra.mxu2 %vm80_vm1, %v3895_v5 }
 0x107   :  { %3595 = vmatmul.msk.f32.gmra.mxu3 %vm80_vm1, %v3895_v5 }
 0x109   :  { %v4757_v34 = vpop.f32.mrf.mxu2 }
 0x10a   :  { %5758 = vst [vmem:[#allocation31_spill] sm:$0xff] %v4757_v34  ;;  %v4759_v11 = vpop.f32.mrf.mxu3 }
 0x10b   :  { %5759 = vst [vmem:[#allocation32_spill] sm:$0xff] %v4759_v11  ;;  %v1173_v4 = vpop.f32.mrf.mxu0 }
 0x10c   :  { %v4761_v16 = vpop.f32.mrf.mxu1  ;;  %v1436_v55 = vmax.f32 %v956_v58, %v1173_v4 }
 0x10d   :  { %2749 = vperm.xlu1 %3721, %v4711_v22  }
 0x111   :  { %v4765_v31 = vpop.f32.mrf.mxu2 }
 0x112   :  { %5760 = vst [vmem:[#allocation33_spill] sm:$0xff] %v4765_v31  ;;  %v4767_v10 = vpop.f32.mrf.mxu3 }
 0x113   :  { %5761 = vst [vmem:[#allocation34_spill] sm:$0xff] %v4767_v10  ;;  %v4769_v23 = vpop.f32.mrf.mxu0 }
 0x114   :  { %v4771_v63 = vpop.f32.mrf.mxu1 }
 0x115   :  { %3724 = vset.pattern.permute.xlu1 %v5724_v15  ;;  %v5726_v15 = vmov 5  }
 0x116   :  { %2777 = vperm.xlu1 %3724, %v4687_v53  }
 0x119   :  { %v4774_v5 = vpop.f32.mrf.mxu2 }
 0x11a   :  { %5762 = vst [vmem:[#allocation35_spill] sm:$0xff] %v4774_v5  ;;  %v4776_v11 = vpop.f32.mrf.mxu3 }
 0x11b   :  { %5763 = vst [vmem:[#allocation36_spill] sm:$0xff] %v4776_v11  ;;  %v4778_v34 = vpop.f32.mrf.mxu0 }
 0x11c   :  { %v4780_v9 = vpop.f32.mrf.mxu1 }
 0x11e   :  { %2789 = vperm.xlu1 %3724, %v4711_v22  }
 0x121   :  { %v4784_v61 = vpop.f32.mrf.mxu2 }
 0x122   :  { %5764 = vst [vmem:[#allocation37_spill] sm:$0xff] %v4784_v61  ;;  %v4786_v3 = vpop.f32.mrf.mxu3 }
 0x123   :  { %5765 = vst [vmem:[#allocation38_spill] sm:$0xff] %v4786_v3  ;;  %v4788_v14 = vpop.f32.mrf.mxu0 }
 0x124   :  { %v4790_v62 = vpop.f32.mrf.mxu1 }
 0x126   :  { %3727 = vset.pattern.permute.xlu1 %v5726_v15  ;;  %v5728_v15 = vmov 6  }
 0x127   :  { %2817 = vperm.xlu1 %3727, %v4687_v53  }
 0x129   :  { %v4793_v12 = vpop.f32.mrf.mxu2 }
 0x12a   :  { %5766 = vst [vmem:[#allocation39_spill] sm:$0xff] %v4793_v12  ;;  %v4795_v32 = vpop.f32.mrf.mxu3 }
 0x12b   :  { %5767 = vst [vmem:[#allocation40_spill] sm:$0xff] %v4795_v32  ;;  %v4797_v10 = vpop.f32.mrf.mxu0 }
 0x12c   :  { %5768 = vst [vmem:[#allocation41_spill] sm:$0xff] %v4797_v10  ;;  %v4799_v31 = vpop.f32.mrf.mxu1 }
 0x12d   :  { %5769 = vst [vmem:[#allocation42_spill] sm:$0xff] %v4799_v31 }
 0x12f   :  { %2829 = vperm.xlu1 %3727, %v4711_v22  }
 0x131   :  { %v4803_v11 = vpop.f32.mrf.mxu2 }
 0x132   :  { %5770 = vst [vmem:[#allocation43_spill] sm:$0xff] %v4803_v11  ;;  %v4805_v5 = vpop.f32.mrf.mxu3 }
 0x133   :  { %5771 = vst [vmem:[#allocation44_spill] sm:$0xff] %v4805_v5  ;;  %v4807_v3 = vpop.f32.mrf.mxu0 }
 0x134   :  { %5772 = vst [vmem:[#allocation45_spill] sm:$0xff] %v4807_v3  ;;  %v4809_v59 = vpop.f32.mrf.mxu1 }
 0x135   :  { %5773 = vst [vmem:[#allocation46_spill] sm:$0xff] %v4809_v59 }
 0x137   :  { %3730 = vset.pattern.permute.xlu1 %v5728_v15 }
 0x138   :  { %2857 = vperm.xlu1 %3730, %v4687_v53  }
 0x139   :  { %v4812_v32 = vpop.f32.mrf.mxu2 }
 0x13a   :  { %5774 = vst [vmem:[#allocation47_spill] sm:$0xff] %v4812_v32  ;;  %v4814_v10 = vpop.f32.mrf.mxu3  ;;  %v2598_v32 = vld [vmem:[%s5706_s5 + $0x10] sm:$0xff] }
 0x13b   :  { %5775 = vst [vmem:[#allocation48_spill] sm:$0xff] %v4814_v10  ;;  %v4816_v31 = vpop.f32.mrf.mxu0  ;;  %2612 = vperm.xlu2 %3714, %v2598_v32   ;;  %v4833_v10 = vld [vmem:[%s5707_s6 + $0x10] sm:$0xff]  ;;  %v957_v32 = vmax.f32 %v4323_v29, %v4572_v48  ;;  %v973_v29 = vmax.f32 %v4367_v41, %v4619_v8  ;;  %v953_v41 = vmax.f32 %v4307_v25, %v4512_v18 }
 0x13c   :  { %v4818_v12 = vpop.f32.mrf.mxu1  ;;  %2665 = vperm.xlu0 %3717, %v4833_v10  }
 0x13d   :  { %v1437_v47 = vmax.f32 %v957_v32, %v4761_v16  ;;  %v1449_v16 = vmax.f32 %v969_v28, %v4750_v60  ;;  %v1453_v36 = vmax.f32 %v973_v29, %v4771_v63 }
 0x140   :  { %2869 = vperm.xlu1 %3730, %v4711_v22  }
 0x141   :  { %v4822_v5 = vpop.f32.mrf.mxu2 }
 0x142   :  { %5776 = vst [vmem:[#allocation49_spill] sm:$0xff] %v4822_v5  ;;  %v4824_v11 = vpop.f32.mrf.mxu3 }
 0x143   :  { %5777 = vst [vmem:[#allocation50_spill] sm:$0xff] %v4824_v11  ;;  %v1564_v59 = vpop.f32.mrf.mxu0  ;;  %v4840_v11 = vpop.permute.xlu0 %1948  ;;  %2617 = vperm.xlu2 %3714, %v2599_v0  }
 0x144   :  { %v1587_v3 = vpop.f32.mrf.mxu1 }
 0x148   :  { %3733 = vset.pattern.permute.xlu1 %v3777_v50 }
 0x149   :  { %v4835_v15 = vpop.f32.mrf.mxu2  ;;  %2897 = vperm.xlu1 %3733, %v4687_v53  }
 0x14a   :  { %5778 = vst [vmem:[#allocation51_spill] sm:$0xff] %v4835_v15  ;;  %v4838_v5 = vpop.f32.mrf.mxu3  ;;  %v968_v15 = vmax.f32 %v4317_v26, %v4554_v35  ;;  %v5780_v26 = vmov 2  }
 0x14b   :  { %5779 = vst [vmem:[#allocation52_spill] sm:$0xff] %v4838_v5  ;;  %v1653_v1 = vpop.f32.mrf.mxu0  ;;  %v972_v5 = vmax.f32 %v4365_v40, %v4617_v7  ;;  %3720 = vset.pattern.permute.xlu0 %v5780_v26  ;;  %v952_v40 = vmax.f32 %v4305_v24, %v4510_v17  ;;  %2644 = vperm.xlu2 %3714, %v4833_v10  }
 0x14c   :  { %v1676_v61 = vpop.f32.mrf.mxu1  ;;  %v1448_v58 = vmax.f32 %v968_v15, %v4748_v46  ;;  %v1916_v7 = vmax.f32 %v1436_v55, %v1653_v1  ;;  %2705 = vperm.xlu0 %3720, %v4833_v10   ;;  %v1433_v55 = vmax.f32 %v953_v41, %v4737_v33  ;;  %v1929_v1 = vmax.f32 %v1449_v16, %v1587_v3 }
 0x14d   :  { %v1452_v35 = vmax.f32 %v972_v5, %v4769_v23  ;;  %v1917_v8 = vmax.f32 %v1437_v47, %v1676_v61  ;;  %v1432_v24 = vmax.f32 %v952_v40, %v4734_v37  ;;  %v4876_v23 = vpop.permute.xlu0 %1953  ;;  %v4878_v5 = vpop.permute.xlu1 %2602  ;;  %v5781_v40 = vmov 3  }
 0x14e   :  { %v1928_v17 = vmax.f32 %v1448_v58, %v1564_v59  ;;  %v1960_v18 = vadd.f32 %v4840_v11, %v1916_v7  ;;  %v1913_v63 = vmax.f32 %v1433_v55, %v4818_v12  ;;  %v4897_v12 = vld [vmem:[%s5708_s4 + $0x20] sm:$0xff] }
 0x14f   :  { %v1912_v25 = vmax.f32 %v1432_v24, %v4816_v31  ;;  %v1961_v59 = vadd.f32 %v4840_v11, %v1917_v8  ;;  %v1973_v31 = vadd.f32 %v4876_v23, %v1929_v1  ;;  %v960_v8 = vmax.f32 %v4381_v44, %v4636_v20 }
 0x150   :  { %v1972_v33 = vadd.f32 %v4876_v23, %v1928_v17  ;;  %v1992_v28 = vmax.f32 %v1960_v18, 0.0  ;;  %v1957_v7 = vadd.f32 %v4840_v11, %v1913_v63  ;;  %v961_v24 = vmax.f32 %v4383_v45, %v4638_v21 }
 0x151   :  { %v4859_v48 = vpop.f32.mrf.mxu2  ;;  %2909 = vperm.xlu1 %3733, %v4711_v22   ;;  %v1956_v47 = vadd.f32 %v4840_v11, %v1912_v25  ;;  %v1993_v58 = vmax.f32 %v1961_v59, 0.0  ;;  %v1440_v55 = vmax.f32 %v960_v8, %v4778_v34  ;;  %v5782_v1 = vmov 1  }
 0x152   :  { %v4867_v27 = vpop.f32.mrf.mxu3  ;;  %v2004_v16 = vmax.f32 %v1972_v33, 0.0  ;;  %v1989_v17 = vmax.f32 %v1957_v7, 0.0  ;;  %v977_v44 = vmax.f32 %v4427_v57, %v4674_v52  ;;  %v1441_v20 = vmax.f32 %v961_v24, %v4780_v9  ;;  %v5785_v33 = vld [vmem:[#allocation3_spill] sm:$0xff]  ;;  %v5794_v24 = vld [vmem:[#allocation36_spill] sm:$0xff] }
 0x153   :  { %v1656_v0 = vpop.f32.mrf.mxu0  ;;  %3716 = vset.pattern.permute.xlu2 %v5782_v1  ;;  %v3778_v45 = vmov 8   ;;  %v5783_v52 = vmov 4   ;;  %v955_v9 = vmax.f32 %v4363_v39, %v4615_v6  ;;  %v5786_v39 = vld [vmem:[#allocation19_spill] sm:$0xff]  ;;  %v5788_v6 = vld [vmem:[#allocation37_spill] sm:$0xff] }
 0x154   :  { %v1932_v15 = vmax.f32 %v1452_v35, %v1656_v0  ;;  %v1679_v46 = vpop.f32.mrf.mxu1  ;;  %3723 = vset.pattern.permute.xlu0 %v5781_v40  ;;  %v1988_v0 = vmax.f32 %v1956_v47, 0.0  ;;  %2661 = vperm.xlu2 %3716, %v4657_v30   ;;  %v1457_v57 = vmax.f32 %v977_v44, %v4790_v62  ;;  %v970_v62 = vmax.f32 %v4377_v42, %v4632_v13  ;;  %v5789_v42 = vld [vmem:[#allocation20_spill] sm:$0xff]  ;;  %v5792_v7 = vld [vmem:[#allocation35_spill] sm:$0xff] }
 0x155   :  { %v1933_v4 = vmax.f32 %v1453_v36, %v1679_v46  ;;  %2745 = vperm.xlu0 %3723, %v4833_v10   ;;  %v2005_v36 = vmax.f32 %v1973_v31, 0.0  ;;  %v976_v46 = vmax.f32 %v4425_v56, %v4672_v51  ;;  %v4925_v56 = vld [vmem:[%s5708_s4 + $0x28] sm:$0xff] }
 0x156   :  { %v1976_v61 = vadd.f32 %v4876_v23, %v1932_v15  ;;  %v4911_v15 = vpop.permute.xlu1 %2607 }
 0x157   :  { %v1977_v37 = vadd.f32 %v4876_v23, %v1933_v4  ;;  %v1456_v21 = vmax.f32 %v976_v46, %v4788_v14  ;;  %v954_v14 = vmax.f32 %v4359_v38, %v4608_v2  ;;  %v5787_v2 = vld [vmem:[#allocation4_spill] sm:$0xff] }
 0x158   :  { %v2008_v60 = vmax.f32 %v1976_v61, 0.0  ;;  %v958_v61 = vmax.f32 %v4419_v54, %v4667_v49  ;;  %v974_v54 = vmax.f32 %v5787_v2, %v5786_v39  ;;  %v5795_v46 = vld [vmem:[#allocation40_spill] sm:$0xff]  ;;  %v5799_v2 = vmov 5  }
 0x159   :  { %v2009_v3 = vmax.f32 %v1977_v37, 0.0  ;;  %v4888_v32 = vpop.f32.mrf.mxu2  ;;  %3736 = vset.pattern.permute.xlu1 %v3778_v45  ;;  %v971_v37 = vmax.f32 %v4379_v43, %v4634_v19  ;;  %v5790_v43 = vld [vmem:[#allocation5_spill] sm:$0xff]  ;;  %v5791_v19 = vld [vmem:[#allocation38_spill] sm:$0xff] }
 0x15a   :  { %v4892_v29 = vpop.f32.mrf.mxu3  ;;  %2056 = vmatpush.msra.mxu0 %v2008_v60  ;;  %2937 = vperm.xlu1 %3736, %v4687_v53   ;;  %v5784_v60 = vld [vmem:[#allocation18_spill] sm:$0xff]  ;;  %v1438_v49 = vmax.f32 %v958_v61, %v5788_v6  ;;  %v975_v13 = vmax.f32 %v5790_v43, %v5789_v42 }
 0x15b   :  { %2085 = vmatpush.msra.mxu1 %v2009_v3  ;;  %v1745_v35 = vpop.f32.mrf.mxu0  ;;  %v959_v3 = vmax.f32 %v5785_v33, %v5784_v60  ;;  %v5802_v43 = vld [vmem:[#allocation26_spill] sm:$0xff] }
 0x15c   :  { %v1768_v41 = vpop.f32.mrf.mxu1  ;;  %2057 = vmatpush.msra.mxu0 %v1992_v28  ;;  %v1920_v25 = vmax.f32 %v1440_v55, %v1745_v35  ;;  %v1455_v55 = vmax.f32 %v975_v13, %v5795_v46  ;;  %3719 = vset.pattern.permute.xlu2 %v5780_v26  ;;  %v5803_v13 = vld [vmem:[#allocation11_spill] sm:$0xff]  ;;  %v3779_v46 = vmov 9  }
 0x15d   :  { %2086 = vmatpush.msra.mxu1 %v1993_v58  ;;  %3600 = vmatmul.msk.f32.vlgmr.msra.gmra.mxu0 %vm2029_vm2, %v4897_v12  ;;  %v1921_v34 = vmax.f32 %v1441_v20, %v1768_v41  ;;  %v1439_v47 = vmax.f32 %v959_v3, %v5791_v19  ;;  %v1450_v41 = vmax.f32 %v970_v62, %v5792_v7  ;;  %v5804_v7 = vld [vmem:[#allocation21_spill] sm:$0xff] }
 0x15e   :  { %3604 = vmatmul.msk.f32.vlgmr.msra.gmra.mxu1 %vm2029_vm2, %v4897_v12  ;;  %2184 = vmatpush.msrb.mxu0 %v2004_v16  ;;  %v1964_v31 = vadd.f32 %v4840_v11, %v1920_v25  ;;  %v5793_v16 = vld [vmem:[#allocation39_spill] sm:$0xff]  ;;  %v5797_v25 = vld [vmem:[#allocation33_spill] sm:$0xff]  ;;  %v981_v19 = vmax.f32 %v5803_v13, %v5802_v43  ;;  %v5821_v13 = vld [vmem:[#allocation44_spill] sm:$0xff] }
 0x15f   :  { %2213 = vmatpush.msrb.mxu1 %v2005_v36  ;;  %3726 = vset.pattern.permute.xlu0 %v5783_v52  ;;  %v1965_v58 = vadd.f32 %v4840_v11, %v1921_v34  ;;  %v1454_v36 = vmax.f32 %v974_v54, %v5793_v16  ;;  %v1930_v34 = vmax.f32 %v1450_v41, %v4888_v32  ;;  %v5805_v41 = vld [vmem:[#allocation6_spill] sm:$0xff] }
 0x160   :  { %2185 = vmatpush.msrb.mxu0 %v1988_v0  ;;  %2785 = vperm.xlu0 %3726, %v4833_v10   ;;  %v964_v16 = vmax.f32 %v5805_v41, %v5804_v7 }
 0x161   :  { %2214 = vmatpush.msrb.mxu1 %v1989_v17  ;;  %v1699_v4 = vpop.f32.mrf.mxu2  ;;  %v1451_v17 = vmax.f32 %v971_v37, %v5794_v24  ;;  %v1997_v37 = vmax.f32 %v1965_v58, 0.0  ;;  %2701 = vperm.xlu2 %3719, %v4657_v30  }
 0x162   :  { %v1722_v18 = vpop.f32.mrf.mxu3  ;;  %v1918_v8 = vmax.f32 %v1438_v49, %v1699_v4  ;;  %v4969_v4 = vld [vmem:[%s5708_s4 + $0x30] sm:$0xff]  ;;  %2949 = vperm.xlu1 %3736, %v4711_v22   ;;  %v5801_v49 = vld [vmem:[#allocation10_spill] sm:$0xff] }
 0x163   :  { %v1748_v51 = vpop.f32.mrf.mxu0  ;;  %v1919_v1 = vmax.f32 %v1439_v47, %v1722_v18  ;;  %v5798_v18 = vld [vmem:[#allocation34_spill] sm:$0xff]  ;;  %v1931_v62 = vmax.f32 %v1451_v17, %v4892_v29 }
 0x164   :  { %v1936_v63 = vmax.f32 %v1456_v21, %v1748_v51  ;;  %v1771_v59 = vpop.f32.mrf.mxu1  ;;  %v4962_v21 = vpop.permute.xlu1 %2639  ;;  %v1996_v51 = vmax.f32 %v1964_v31, 0.0  ;;  %v1962_v33 = vadd.f32 %v4840_v11, %v1918_v8  ;;  %v5006_v17 = vld [vmem:[%s5708_s4 + $0x38] sm:$0xff] }
 0x165   :  { %v1937_v38 = vmax.f32 %v1457_v57, %v1771_v59  ;;  %3601 = vmatmul.msk.f32.gmra.mxu0 %vm2029_vm2, %v4925_v56  ;;  %5796 = vst [vmem:[#allocation18_spill] sm:$0xff] %v4962_v21  ;;  %v1434_v57 = vmax.f32 %v954_v14, %v5797_v25  ;;  %v1435_v59 = vmax.f32 %v955_v9, %v5798_v18 }
 0x166   :  { %v1980_v28 = vadd.f32 %v4876_v23, %v1936_v63  ;;  %3605 = vmatmul.msk.f32.gmra.mxu1 %vm2029_vm2, %v4925_v56  ;;  %v1963_v9 = vadd.f32 %v4840_v11, %v1919_v1  ;;  %v1975_v54 = vadd.f32 %v4876_v23, %v1931_v62  ;;  %v1994_v42 = vmax.f32 %v1962_v33, 0.0  ;;  %v5808_v1 = vld [vmem:[#allocation7_spill] sm:$0xff]  ;;  %v5813_v33 = vld [vmem:[#allocation24_spill] sm:$0xff] }
 0x167   :  { %v1981_v35 = vadd.f32 %v4876_v23, %v1937_v38  ;;  %v1914_v32 = vmax.f32 %v1434_v57, %v4859_v48  ;;  %v1915_v29 = vmax.f32 %v1435_v59, %v4867_v27  ;;  %v1974_v48 = vadd.f32 %v4876_v23, %v1930_v34  ;;  %v5800_v27 = vld [vmem:[#allocation25_spill] sm:$0xff] }
 0x168   :  { %v2012_v0 = vmax.f32 %v1980_v28, 0.0  ;;  %3729 = vset.pattern.permute.xlu0 %v5799_v2  ;;  %v980_v31 = vmax.f32 %v5801_v49, %v5800_v27  ;;  %v1995_v58 = vmax.f32 %v1963_v9, 0.0  ;;  %v2007_v57 = vmax.f32 %v1975_v54, 0.0  ;;  %v5812_v59 = vld [vmem:[#allocation41_spill] sm:$0xff]  ;;  %v5815_v9 = vld [vmem:[#allocation42_spill] sm:$0xff]  ;;  %v5816_v54 = vld [vmem:[#allocation27_spill] sm:$0xff] }
 0x169   :  { %v2013_v44 = vmax.f32 %v1981_v35, 0.0  ;;  %v1702_v20 = vpop.f32.mrf.mxu2  ;;  %2825 = vperm.xlu0 %3729, %v4833_v10   ;;  %v1958_v28 = vadd.f32 %v4840_v11, %v1914_v32  ;;  %v1959_v47 = vadd.f32 %v4840_v11, %v1915_v29  ;;  %v1444_v62 = vmax.f32 %v964_v16, %v5812_v59  ;;  %v5818_v49 = vld [vmem:[#allocation43_spill] sm:$0xff]  ;;  %3722 = vset.pattern.permute.xlu2 %v5781_v40 }
 0x16a   :  { %v1934_v61 = vmax.f32 %v1454_v36, %v1702_v20  ;;  %v1725_v63 = vpop.f32.mrf.mxu3  ;;  %2317 = vmatpush.msra.mxu0 %v2012_v0  ;;  %v5806_v36 = vld [vmem:[#allocation45_spill] sm:$0xff]  ;;  %v2006_v0 = vmax.f32 %v1974_v48, 0.0  ;;  %3739 = vset.pattern.permute.xlu1 %v3779_v46  ;;  %v5809_v20 = vld [vmem:[#allocation46_spill] sm:$0xff] }
 0x16b   :  { %v1935_v60 = vmax.f32 %v1455_v55, %v1725_v63  ;;  %2346 = vmatpush.msra.mxu1 %v2013_v44  ;;  %v4974_v14 = vpop.f32.mrf.mxu0  ;;  %v1460_v8 = vmax.f32 %v980_v31, %v5806_v36  ;;  %v5807_v55 = vld [vmem:[#allocation22_spill] sm:$0xff]  ;;  %v1461_v25 = vmax.f32 %v981_v19, %v5809_v20  ;;  %v5811_v63 = vld [vmem:[#allocation8_spill] sm:$0xff]  ;;  %v1991_v48 = vmax.f32 %v1959_v47, 0.0  ;;  %2977 = vperm.xlu1 %3739, %v4687_v53  }
 0x16c   :  { %v1978_v3 = vadd.f32 %v4876_v23, %v1934_v61  ;;  %v4980_v38 = vpop.f32.mrf.mxu1  ;;  %2318 = vmatpush.msra.mxu0 %v1996_v51  ;;  %v965_v44 = vmax.f32 %v5808_v1, %v5807_v55  ;;  %v5014_v51 = vpop.permute.xlu1 %2657  ;;  %v5810_v61 = vld [vmem:[#allocation23_spill] sm:$0xff]  ;;  %v5824_v36 = vld [vmem:[#allocation48_spill] sm:$0xff]  ;;  %2741 = vperm.xlu2 %3722, %v4657_v30  }
 0x16d   :  { %v1979_v39 = vadd.f32 %v4876_v23, %v1935_v60  ;;  %2347 = vmatpush.msra.mxu1 %v1997_v37  ;;  %3602 = vmatmul.msk.f32.gmra.mxu0 %vm2029_vm2, %v4969_v4  ;;  %v962_v18 = vmax.f32 %v5811_v63, %v5810_v61  ;;  %v1990_v37 = vmax.f32 %v1958_v28, 0.0  ;;  %v1924_v28 = vmax.f32 %v1444_v62, %v4974_v14  ;;  %v5049_v40 = vld [vmem:[%s5708_s4] sm:$0xff]  ;;  %v5825_v62 = vld [vmem:[#allocation29_spill] sm:$0xff] }
 0x16e   :  { %v2010_v26 = vmax.f32 %v1978_v3, 0.0  ;;  %3606 = vmatmul.msk.f32.gmra.mxu1 %vm2029_vm2, %v4969_v4  ;;  %v5814_v3 = vld [vmem:[#allocation9_spill] sm:$0xff]  ;;  %v5823_v14 = vmov 6  }
 0x16f   :  { %v2011_v6 = vmax.f32 %v1979_v39, 0.0  ;;  %v963_v29 = vmax.f32 %v5814_v3, %v5813_v33  ;;  %v1445_v39 = vmax.f32 %v965_v44, %v5815_v9  ;;  %v1442_v31 = vmax.f32 %v962_v18, %v5818_v49  ;;  %v5828_v3 = vld [vmem:[#allocation15_spill] sm:$0xff] }
 0x170   :  { %2114 = vmatpush.msrb.mxu2 %v2010_v26 }
 0x171   :  { %2143 = vmatpush.msrb.mxu3 %v2011_v6  ;;  %v1791_v35 = vpop.f32.mrf.mxu2  ;;  %v5817_v6 = vld [vmem:[#allocation12_spill] sm:$0xff]  ;;  %v1443_v19 = vmax.f32 %v963_v29, %v5821_v13  ;;  %v1925_v47 = vmax.f32 %v1445_v39, %v4980_v38  ;;  %3732 = vset.pattern.permute.xlu0 %v5823_v14  ;;  %v1968_v38 = vadd.f32 %v4840_v11, %v1924_v28 }
 0x172   :  { %v1814_v24 = vpop.f32.mrf.mxu3  ;;  %2115 = vmatpush.msrb.mxu2 %v1994_v42  ;;  %v978_v27 = vmax.f32 %v5817_v6, %v5816_v54  ;;  %v5820_v42 = vld [vmem:[#allocation13_spill] sm:$0xff]  ;;  %v1922_v41 = vmax.f32 %v1442_v31, %v1791_v35  ;;  %2865 = vperm.xlu0 %3732, %v4833_v10   ;;  %v5830_v6 = vld [vmem:[#allocation50_spill] sm:$0xff] }
 0x173   :  { %2144 = vmatpush.msrb.mxu3 %v1995_v58  ;;  %v1840_v34 = vpop.f32.mrf.mxu0  ;;  %3608 = vmatmul.msk.f32.vlgmr.msrb.gmra.mxu2 %vm2029_vm2, %v4897_v12  ;;  %v5822_v58 = vld [vmem:[#allocation47_spill] sm:$0xff]  ;;  %v1969_v20 = vadd.f32 %v4840_v11, %v1925_v47 }
 0x174   :  { %v1940_v60 = vmax.f32 %v1460_v8, %v1840_v34  ;;  %v1863_v32 = vpop.f32.mrf.mxu1  ;;  %3612 = vmatmul.msk.f32.vlgmr.msrb.gmra.mxu3 %vm2029_vm2, %v4897_v12  ;;  %2242 = vmatpush.msra.mxu2 %v2006_v0  ;;  %v5819_v12 = vld [vmem:[#allocation28_spill] sm:$0xff]  ;;  %v1458_v7 = vmax.f32 %v978_v27, %v5822_v58  ;;  %v1923_v0 = vmax.f32 %v1443_v19, %v1814_v24  ;;  %v5062_v59 = vpop.permute.xlu1 %2669  ;;  %v5831_v47 = vld [vmem:[#allocation31_spill] sm:$0xff] }
 0x175   :  { %v1941_v26 = vmax.f32 %v1461_v25, %v1863_v32  ;;  %2271 = vmatpush.msra.mxu3 %v2007_v57  ;;  %3603 = vmatmul.msk.f32.gmra.mxu0 %vm2029_vm2, %v5006_v17  ;;  %v979_v43 = vmax.f32 %v5820_v42, %v5819_v12  ;;  %v1966_v24 = vadd.f32 %v4840_v11, %v1922_v41  ;;  %v2000_v32 = vmax.f32 %v1968_v38, 0.0  ;;  %v2021_v42 = vld [vmem:[%s5708_s4 + $0x8] sm:$0xff]  ;;  %v5834_v41 = vld [vmem:[#allocation17_spill] sm:$0xff] }
 0x176   :  { %3607 = vmatmul.msk.f32.gmra.mxu1 %vm2029_vm2, %v5006_v17  ;;  %2243 = vmatpush.msra.mxu2 %v1990_v37  ;;  %v1984_v16 = vadd.f32 %v4876_v23, %v1940_v60  ;;  %v1967_v61 = vadd.f32 %v4840_v11, %v1923_v0  ;;  %v5826_v37 = vld [vmem:[#allocation14_spill] sm:$0xff]  ;;  %v2001_v9 = vmax.f32 %v1969_v20, 0.0  ;;  %v5836_v0 = vld [vmem:[#allocation52_spill] sm:$0xff] }
 0x177   :  { %2272 = vmatpush.msra.mxu3 %v1991_v48  ;;  %v1459_v8 = vmax.f32 %v979_v43, %v5824_v36  ;;  %v1985_v55 = vadd.f32 %v4876_v23, %v1941_v26  ;;  %v966_v60 = vmax.f32 %v5826_v37, %v5825_v62  ;;  %2989 = vperm.xlu1 %3739, %v4711_v22   ;;  %v5829_v48 = vld [vmem:[#allocation49_spill] sm:$0xff]  ;;  %v1998_v54 = vmax.f32 %v1966_v24, 0.0  ;;  %v3633_v62 = vld [vmem:[%s5708_s4 + $0x48] sm:$0xff] }
 0x178   :  { %v2016_v57 = vmax.f32 %v1984_v16, 0.0  ;;  %v1999_v49 = vmax.f32 %v1967_v61, 0.0  ;;  %3725 = vset.pattern.permute.xlu2 %v5783_v52  ;;  %v5832_v52 = vld [vmem:[#allocation16_spill] sm:$0xff]  ;;  %v5837_v37 = vmov 0  }
 0x179   :  { %v1794_v1 = vpop.f32.mrf.mxu2  ;;  %v2017_v63 = vmax.f32 %v1985_v55, 0.0  ;;  %v1446_v26 = vmax.f32 %v966_v60, %v5829_v48  ;;  %2781 = vperm.xlu2 %3725, %v4657_v30   ;;  %v982_v58 = vmax.f32 %v5832_v52, %v5831_v47  ;;  %v3634_v60 = vld [vmem:[%s5708_s4 + $0x50] sm:$0xff]  ;;  %v3653_v48 = vld [vmem:[%s5708_s4 + $0x68] sm:$0xff] }
 0x17a   :  { %v1938_v44 = vmax.f32 %v1458_v7, %v1794_v1  ;;  %v1817_v35 = vpop.f32.mrf.mxu3  ;;  %3735 = vset.pattern.permute.xlu0 %v3777_v50  ;;  %v5833_v7 = vld [vmem:[#allocation32_spill] sm:$0xff] }
 0x17b   :  { %v1939_v25 = vmax.f32 %v1459_v8, %v1817_v35  ;;  %3609 = vmatmul.msk.f32.gmra.mxu2 %vm2029_vm2, %v4925_v56  ;;  %2905 = vperm.xlu0 %3735, %v4833_v10   ;;  %v983_v16 = vmax.f32 %v5834_v41, %v5833_v7  ;;  %v2022_v35 = vld [vmem:[%s5708_s4 + $0x10] sm:$0xff] }
 0x17c   :  { %v1982_v34 = vadd.f32 %v4876_v23, %v1938_v44  ;;  %3613 = vmatmul.msk.f32.gmra.mxu3 %vm2029_vm2, %v4925_v56  ;;  %v5827_v56 = vld [vmem:[#allocation30_spill] sm:$0xff]  ;;  %v5092_v36 = vpop.permute.xlu1 %2697 }
 0x17d   :  { %v1983_v18 = vadd.f32 %v4876_v23, %v1939_v25  ;;  %3616 = vmatmul.msk.f32.vlgmr.msrb.gmra.mxu0 %vm2029_vm2, %v5049_v40  ;;  %v967_v29 = vmax.f32 %v5828_v3, %v5827_v56  ;;  %v1463_v55 = vmax.f32 %v983_v16, %v5836_v0  ;;  %v3782_v56 = vmov 12   ;;  %v3767_v16 = vld [vmem:[%s5707_s6 + $0x8] sm:$0xff] }
 0x17e   :  { %v2014_v33 = vmax.f32 %v1982_v34, 0.0  ;;  %3620 = vmatmul.msk.f32.vlgmr.msrb.gmra.mxu1 %vm2029_vm2, %v5049_v40  ;;  %2466 = vmatpush.msrb.mxu0 %v2016_v57 }
 0x17f   :  { %v2015_v39 = vmax.f32 %v1983_v18, 0.0  ;;  %2495 = vmatpush.msrb.mxu1 %v2017_v63  ;;  %v1447_v27 = vmax.f32 %v967_v29, %v5830_v6  ;;  %v3781_v63 = vmov 11   ;;  %v3652_v29 = vld [vmem:[%s5708_s4 + $0x60] sm:$0xff] }
 0x180   :  { %2467 = vmatpush.msrb.mxu0 %v2000_v32  ;;  %2375 = vmatpush.msrb.mxu2 %v2014_v33  ;;  %v3635_v33 = vld [vmem:[%s5708_s4 + $0x58] sm:$0xff] }
 0x181   :  { %2496 = vmatpush.msrb.mxu1 %v2001_v9  ;;  %2404 = vmatpush.msrb.mxu3 %v2015_v39  ;;  %v1883_v31 = vpop.f32.mrf.mxu2  ;;  %v3783_v9 = vmov 13  }
 0x182   :  { %v1926_v28 = vmax.f32 %v1446_v26, %v1883_v31  ;;  %v1906_v12 = vpop.f32.mrf.mxu3  ;;  %2376 = vmatpush.msrb.mxu2 %v1998_v54  ;;  %3728 = vset.pattern.permute.xlu2 %v5799_v2  ;;  %v2023_v2 = vld [vmem:[%s5708_s4 + $0x18] sm:$0xff]  ;;  %v3784_v54 = vmov 14   ;;  %v3273_v31 = vld [vmem:[%s5709_s8] sm:$0xff] }
 0x183   :  { %v1927_v43 = vmax.f32 %v1447_v27, %v1906_v12  ;;  %2405 = vmatpush.msrb.mxu3 %v1999_v49  ;;  %3610 = vmatmul.msk.f32.gmra.mxu2 %vm2029_vm2, %v4969_v4  ;;  %v3654_v49 = vld [vmem:[%s5708_s4 + $0x70] sm:$0xff]  ;;  %v3655_v12 = vld [vmem:[%s5708_s4 + $0x78] sm:$0xff] }
 0x184   :  { %v1970_v13 = vadd.f32 %v4840_v11, %v1926_v28  ;;  %3614 = vmatmul.msk.f32.gmra.mxu3 %vm2029_vm2, %v4969_v4  ;;  %v3780_v4 = vmov 10   ;;  %2821 = vperm.xlu2 %3728, %v4657_v30   ;;  %v5114_v57 = vpop.permute.xlu1 %2709 }
 0x185   :  { %v1971_v19 = vadd.f32 %v4840_v11, %v1927_v43  ;;  %3617 = vmatmul.msk.f32.gmra.mxu0 %vm2029_vm2, %v2021_v42  ;;  %3742 = vset.pattern.permute.xlu1 %v3780_v4  ;;  %v5835_v11 = vld [vmem:[#allocation51_spill] sm:$0xff] }
 0x186   :  { %3621 = vmatmul.msk.f32.gmra.mxu1 %vm2029_vm2, %v2021_v42  ;;  %v1462_v8 = vmax.f32 %v982_v58, %v5835_v11  ;;  %3017 = vperm.xlu1 %3742, %v4687_v53   ;;  %v2002_v61 = vmax.f32 %v1970_v13, 0.0  ;;  %v3272_v58 = vld [vmem:[%s5710_s1] sm:$0x1f] }
 0x187   :  { %3738 = vset.pattern.permute.xlu0 %v3778_v45 }
 0x188   :  { %2945 = vperm.xlu0 %3738, %v4833_v10  }
 0x189   :  { %v1886_v1 = vpop.f32.mrf.mxu2 }
 0x18a   :  { %v1942_v38 = vmax.f32 %v1462_v8, %v1886_v1  ;;  %v1909_v44 = vpop.f32.mrf.mxu3  ;;  %v3271_v8 = vld [vmem:[%s5711_s7 + $0x8] sm:$0xff] }
 0x18b   :  { %v1943_v20 = vmax.f32 %v1463_v55, %v1909_v44  ;;  %3611 = vmatmul.msk.f32.gmra.mxu2 %vm2029_vm2, %v5006_v17  ;;  %v3769_v55 = vld [vmem:[%s5707_s6] sm:$0xff] }
 0x18c   :  { %3615 = vmatmul.msk.f32.gmra.mxu3 %vm2029_vm2, %v5006_v17  ;;  %v1986_v25 = vadd.f32 %v4876_v23, %v1942_v38  ;;  %3731 = vset.pattern.permute.xlu2 %v5823_v14  ;;  %v5135_v18 = vpop.permute.xlu1 %2737  ;;  %v3274_v14 = vld [vmem:[%s5709_s8 + $0x8] sm:$0xff] }
 0x18d   :  { %3618 = vmatmul.msk.f32.gmra.mxu0 %vm2029_vm2, %v2022_v35  ;;  %v1987_v24 = vadd.f32 %v4876_v23, %v1943_v20  ;;  %v2003_v23 = vmax.f32 %v1971_v19, 0.0  ;;  %2861 = vperm.xlu2 %3731, %v4657_v30  }
 0x18e   :  { %3622 = vmatmul.msk.f32.gmra.mxu1 %vm2029_vm2, %v2022_v35  ;;  %3029 = vperm.xlu1 %3742, %v4711_v22   ;;  %v2018_v17 = vmax.f32 %v1986_v25, 0.0 }
 0x18f   :  { %v2019_v34 = vmax.f32 %v1987_v24, 0.0 }
 0x190   :  { %3741 = vset.pattern.permute.xlu0 %v3779_v46 }
 0x191   :  { %2985 = vperm.xlu0 %3741, %v4833_v10  }
 0x193   :  { %3624 = vmatmul.msk.f32.vlgmr.msra.gmra.mxu2 %vm2029_vm2, %v5049_v40 }
 0x194   :  { %3628 = vmatmul.msk.f32.vlgmr.msra.gmra.mxu3 %vm2029_vm2, %v5049_v40  ;;  %2524 = vmatpush.msra.mxu2 %v2018_v17  ;;  %v3632_v40 = vld [vmem:[%s5708_s4 + $0x40] sm:$0xff]  ;;  %s3800_s4 = smov 48  }
 0x195   :  { %2553 = vmatpush.msra.mxu3 %v2019_v34  ;;  %3619 = vmatmul.msk.f32.gmra.mxu0 %vm2029_vm2, %v2023_v2 }
 0x196   :  { %3623 = vmatmul.msk.f32.gmra.mxu1 %vm2029_vm2, %v2023_v2  ;;  %2525 = vmatpush.msra.mxu2 %v2002_v61 }
 0x197   :  { %2554 = vmatpush.msra.mxu3 %v2003_v23  ;;  %3745 = vset.pattern.permute.xlu1 %v3781_v63 }
 0x198   :  { %3057 = vperm.xlu1 %3745, %v4687_v53   ;;  %3734 = vset.pattern.permute.xlu2 %v3777_v50  ;;  %v5154_v50 = vpop.permute.xlu1 %2749 }
 0x199   :  { %2901 = vperm.xlu2 %3734, %v4657_v30   ;;  %3744 = vset.pattern.permute.xlu0 %v3780_v4  ;;  %5838 = vst [vmem:[#allocation3_spill] sm:$0xff] %v5154_v50 }
 0x19a   :  { %3025 = vperm.xlu0 %3744, %v4833_v10  }
 0x19b   :  { %3625 = vmatmul.msk.f32.gmra.mxu2 %vm2029_vm2, %v2021_v42 }
 0x19c   :  { %3629 = vmatmul.msk.f32.gmra.mxu3 %vm2029_vm2, %v2021_v42 }
 0x19d   :  { %3636 = vmatmul.msk.f32.vlgmr.msra.gmra.mxu0 %vm2029_vm2, %v3632_v40 }
 0x19e   :  { %3640 = vmatmul.msk.f32.vlgmr.msra.gmra.mxu1 %vm2029_vm2, %v3632_v40  ;;  %3672 = vmatpush.msk.msra.mxu0 %vm3292_vm3, %v3272_v58 }
 0x1a0   :  { %3748 = vset.pattern.permute.xlu1 %v5837_v37  ;;  %v5172_v32 = vpop.permute.xlu1 %2777 }
 0x1a1   :  { %3282 = vperm.xlu1 %3748, %v3274_v14   ;;  %3737 = vset.pattern.permute.xlu2 %v3778_v45  ;;  %v5170_v45 = vpop.permute.xlu2 %2612 }
 0x1a2   :  { %2941 = vperm.xlu2 %3737, %v4657_v30   ;;  %3747 = vset.pattern.permute.xlu0 %v3781_v63 }
 0x1a3   :  { %3626 = vmatmul.msk.f32.gmra.mxu2 %vm2029_vm2, %v2022_v35  ;;  %3065 = vperm.xlu0 %3747, %v4833_v10  }
 0x1a4   :  { %3630 = vmatmul.msk.f32.gmra.mxu3 %vm2029_vm2, %v2022_v35 }
 0x1a5   :  { %3637 = vmatmul.msk.f32.gmra.mxu0 %vm2029_vm2, %v3633_v62 }
 0x1a6   :  { %3641 = vmatmul.msk.f32.gmra.mxu1 %vm2029_vm2, %v3633_v62 }
 0x1a9   :  { %3750 = vset.pattern.permute.xlu1 %v3781_v63  ;;  %v5184_v3 = vpop.permute.xlu2 %2617 }
 0x1aa   :  { %3069 = vperm.xlu1 %3750, %v4711_v22   ;;  %3740 = vset.pattern.permute.xlu2 %v3779_v46  ;;  %v5187_v46 = vpop.permute.xlu1 %2789 }
 0x1ab   :  { %3627 = vmatmul.msk.f32.gmra.mxu2 %vm2029_vm2, %v2023_v2  ;;  %2981 = vperm.xlu2 %3740, %v4657_v30   ;;  %5839 = vst [vmem:[#allocation19_spill] sm:$0xff] %v5187_v46 }
 0x1ac   :  { %3631 = vmatmul.msk.f32.gmra.mxu3 %vm2029_vm2, %v2023_v2  ;;  %3751 = vset.pattern.permute.xlu0 %v3782_v56 }
 0x1ad   :  { %3638 = vmatmul.msk.f32.gmra.mxu0 %vm2029_vm2, %v3634_v60  ;;  %3097 = vperm.xlu0 %3751, %v4687_v53  }
 0x1ae   :  { %3642 = vmatmul.msk.f32.gmra.mxu1 %vm2029_vm2, %v3634_v60  ;;  %v5218_v27 = vpop.permute.xlu0 %2665 }
 0x1af   :  { %5841 = vst [vmem:[#allocation37_spill] sm:$0xff] %v5218_v27 }
 0x1b1   :  { %v5198_v39 = vpop.permute.xlu2 %2644 }
 0x1b2   :  { %3752 = vset.pattern.permute.xlu1 %v3782_v56  ;;  %5840 = vst [vmem:[#allocation4_spill] sm:$0xff] %v5198_v39  ;;  %v5206_v26 = vpop.permute.xlu1 %2817 }
 0x1b3   :  { %3644 = vmatmul.msk.f32.vlgmr.msrb.gmra.mxu2 %vm2029_vm2, %v3632_v40  ;;  %3101 = vperm.xlu1 %3752, %v4657_v30  }
 0x1b4   :  { %3648 = vmatmul.msk.f32.vlgmr.msrb.gmra.mxu3 %vm2029_vm2, %v3632_v40  ;;  %3743 = vset.pattern.permute.xlu2 %v3780_v4  ;;  %v3768_v4 = vld [vmem:[%s5707_s6 + $0x18] sm:$0xff]  ;;  %s3786_s6 = smov 8  }
 0x1b5   :  { %3639 = vmatmul.msk.f32.gmra.mxu0 %vm2029_vm2, %v3635_v33  ;;  %3021 = vperm.xlu2 %3743, %v4657_v30  }
 0x1b6   :  { %3643 = vmatmul.msk.f32.gmra.mxu1 %vm2029_vm2, %v3635_v33  ;;  %3754 = vset.pattern.permute.xlu0 %v3783_v9 }
 0x1b7   :  { %3137 = vperm.xlu0 %3754, %v4687_v53  }
 0x1b9   :  { %v5216_v6 = vpop.permute.xlu2 %2661 }
 0x1ba   :  { %v5229_v28 = vpop.permute.xlu1 %2829 }
 0x1bb   :  { %3645 = vmatmul.msk.f32.gmra.mxu2 %vm2029_vm2, %v3633_v62  ;;  %3109 = vperm.xlu1 %3752, %v4711_v22   ;;  %5842 = vst [vmem:[#allocation20_spill] sm:$0xff] %v5229_v28 }
 0x1bc   :  { %3649 = vmatmul.msk.f32.gmra.mxu3 %vm2029_vm2, %v3633_v62 }
 0x1bd   :  { %3656 = vmatmul.msk.f32.vlgmr.msrb.gmra.mxu0 %vm2029_vm2, %v3652_v29  ;;  %3746 = vset.pattern.permute.xlu2 %v3781_v63 }
 0x1be   :  { %3660 = vmatmul.msk.f32.vlgmr.msrb.gmra.mxu1 %vm2029_vm2, %v3652_v29  ;;  %3061 = vperm.xlu2 %3746, %v4657_v30   ;;  %v5241_v43 = vpop.permute.xlu0 %2705 }
 0x1bf   :  { %3758 = vset.pattern.permute.xlu0 %v3784_v54  ;;  %5843 = vst [vmem:[#allocation5_spill] sm:$0xff] %v5241_v43 }
 0x1c0   :  { %3181 = vperm.xlu0 %3758, %v4657_v30  }
 0x1c1   :  { %v5238_v42 = vpop.permute.xlu2 %2701 }
 0x1c3   :  { %3646 = vmatmul.msk.f32.gmra.mxu2 %vm2029_vm2, %v3634_v60  ;;  %3755 = vset.pattern.permute.xlu1 %v3783_v9 }
 0x1c4   :  { %3650 = vmatmul.msk.f32.gmra.mxu3 %vm2029_vm2, %v3634_v60  ;;  %3141 = vperm.xlu1 %3755, %v4657_v30   ;;  %v3785_v30 = vmov 15  }
 0x1c5   :  { %3657 = vmatmul.msk.f32.gmra.mxu0 %vm2029_vm2, %v3653_v48 }
 0x1c6   :  { %3661 = vmatmul.msk.f32.gmra.mxu1 %vm2029_vm2, %v3653_v48  ;;  %3749 = vset.pattern.permute.xlu2 %v5837_v37 }
 0x1c7   :  { %3277 = vperm.xlu2 %3749, %v3273_v31   ;;  %v5259_v52 = vpop.permute.xlu0 %2745 }
 0x1c8   :  { %3763 = vset.pattern.permute.xlu0 %v3785_v30  ;;  %5844 = vst [vmem:[#allocation38_spill] sm:$0xff] %v5259_v52 }
 0x1c9   :  { %3225 = vperm.xlu0 %3763, %v4833_v10   ;;  %v5257_v47 = vpop.permute.xlu2 %2741 }
 0x1cb   :  { %3647 = vmatmul.msk.f32.gmra.mxu2 %vm2029_vm2, %v3635_v33 }
 0x1cc   :  { %3651 = vmatmul.msk.f32.gmra.mxu3 %vm2029_vm2, %v3635_v33  ;;  %3149 = vperm.xlu1 %3755, %v4711_v22   ;;  %v5246_v22 = vpop.permute.xlu1 %2857 }
 0x1cd   :  { %3658 = vmatmul.msk.f32.gmra.mxu0 %vm2029_vm2, %v3654_v49 }
 0x1ce   :  { %3662 = vmatmul.msk.f32.gmra.mxu1 %vm2029_vm2, %v3654_v49 }
 0x1cf   :  { %3753 = vset.pattern.permute.xlu2 %v3782_v56 }
 0x1d0   :  { %3105 = vperm.xlu2 %3753, %v4833_v10  }
 0x1d1   :  { %3764 = vset.pattern.permute.xlu0 %v5837_v37 }
 0x1d2   :  { %2634 = vperm.xlu0 %3764, %v4687_v53   ;;  %v3270_v53 = vld [vmem:[%s5711_s7] sm:$0xff]  ;;  %v5286_v0 = vpop.permute.xlu0 %2785  ;;  %s3787_s7 = smov 120  }
 0x1d3   :  { %3664 = vmatmul.msk.f32.vlgmr.msra.gmra.mxu2 %vm2029_vm2, %v3652_v29  ;;  %5846 = vst [vmem:[#allocation39_spill] sm:$0xff] %v5286_v0 }
 0x1d4   :  { %3668 = vmatmul.msk.f32.vlgmr.msra.gmra.mxu3 %vm2029_vm2, %v3652_v29  ;;  %3759 = vset.pattern.permute.xlu1 %v3784_v54  ;;  %v5269_v7 = vpop.permute.xlu1 %2869 }
 0x1d5   :  { %3659 = vmatmul.msk.f32.gmra.mxu0 %vm2029_vm2, %v3655_v12  ;;  %3185 = vperm.xlu1 %3759, %v4833_v10   ;;  %5845 = vst [vmem:[#allocation35_spill] sm:$0xff] %v5269_v7 }
 0x1d6   :  { %3663 = vmatmul.msk.f32.gmra.mxu1 %vm2029_vm2, %v3655_v12 }
 0x1d8   :  { %3756 = vset.pattern.permute.xlu2 %v3783_v9 }
 0x1d9   :  { %3145 = vperm.xlu2 %3756, %v4833_v10   ;;  %v5281_v10 = vpop.permute.xlu2 %2781 }
 0x1da   :  { %v2059_v13 = vpop.f32.mrf.mxu0  ;;  %2649 = vperm.xlu0 %3764, %v3768_v4  }
 0x1db   :  { %v5253_v19 = vpop.f32.mrf.mxu1  ;;  %3665 = vmatmul.msk.f32.gmra.mxu2 %vm2029_vm2, %v3653_v48  ;;  %v5299_v20 = vpop.permute.xlu0 %2825 }
 0x1dc   :  { %3669 = vmatmul.msk.f32.gmra.mxu3 %vm2029_vm2, %v3653_v48  ;;  %v5293_v38 = vpop.permute.xlu1 %2897  ;;  %5848 = vst [vmem:[#allocation40_spill] sm:$0xff] %v5299_v20 }
 0x1dd   :  { %3673 = vmatmul.msk.f32.vlgmr.msra.gmra.mxu0 %vm3285_vm4, %v3270_v53  ;;  %3761 = vset.pattern.permute.xlu1 %v3785_v30  ;;  %5847 = vst [vmem:[#allocation36_spill] sm:$0xff] %v5293_v38 }
 0x1de   :  { %3221 = vperm.xlu1 %3761, %v3767_v16  }
 0x1e1   :  { %3757 = vset.pattern.permute.xlu2 %v3784_v54  ;;  %v5297_v35 = vpop.permute.xlu2 %2821 }
 0x1e2   :  { %v2062_v41 = vpop.f32.mrf.mxu0  ;;  %3177 = vperm.xlu2 %3757, %v3769_v55  }
 0x1e3   :  { %v5277_v11 = vpop.f32.mrf.mxu1  ;;  %3666 = vmatmul.msk.f32.gmra.mxu2 %vm2029_vm2, %v3654_v49 }
 0x1e4   :  { %3670 = vmatmul.msk.f32.gmra.mxu3 %vm2029_vm2, %v3654_v49  ;;  %v5302_v17 = vpop.permute.xlu1 %2909  ;;  %v5315_v14 = vpop.permute.xlu0 %2865 }
 0x1e5   :  { %3674 = vmatmul.msk.f32.gmra.mxu0 %vm3285_vm4, %v3271_v8  ;;  %5849 = vst [vmem:[#allocation33_spill] sm:$0xff] %v5302_v17 }
 0x1e6   :  { %3229 = vperm.xlu1 %3761, %v3768_v4   ;;  %5850 = vst [vmem:[#allocation34_spill] sm:$0xff] %v5315_v14 }
 0x1e9   :  { %v5308_v23 = vpop.permute.xlu2 %2861 }
 0x1ea   :  { %v2065_v1 = vpop.f32.mrf.mxu0  ;;  %3760 = vset.pattern.permute.xlu2 %v3785_v30 }
 0x1eb   :  { %v2094_v44 = vpop.f32.mrf.mxu1  ;;  %3667 = vmatmul.msk.f32.gmra.mxu2 %vm2029_vm2, %v3655_v12  ;;  %3217 = vperm.xlu2 %3760, %v3769_v55  }
 0x1ec   :  { %3671 = vmatmul.msk.f32.gmra.mxu3 %vm2029_vm2, %v3655_v12  ;;  %v5319_v60 = vpop.permute.xlu1 %2937 }
 0x1ed   :  { %5851 = vst [vmem:[#allocation25_spill] sm:$0xff] %v5319_v60 }
 0x1ee   :  { %3765 = vset.pattern.permute.xlu1 %v5837_v37 }
 0x1f2   :  { %v2068_v25 = vpop.f32.mrf.mxu0 }
 0x1f3   :  { %v2097_v24 = vpop.f32.mrf.mxu1  ;;  %3762 = vset.pattern.permute.xlu2 %v3784_v54  ;;  %v5328_v48 = vpop.permute.xlu2 %2901 }
 0x1f4   :  { %3189 = vperm.xlu2 %3762, %v3768_v4   ;;  %5852 = vst [vmem:[#allocation10_spill] sm:$0xff] %v5328_v48  ;;  %v5330_v54 = vpop.permute.xlu0 %2905  ;;  %v5332_v30 = vpop.permute.xlu1 %2949 }
 0x1f5   :  { %5853 = vst [vmem:[#allocation26_spill] sm:$0xff] %v5330_v54 }
 0x1f6   :  { %v5304_v2 = vpop.f32.mrf.mxu2  ;;  %5854 = vst [vmem:[#allocation11_spill] sm:$0xff] %v5332_v30 }
 0x1f7   :  { %v5306_v34 = vpop.f32.mrf.mxu3 }
 0x1fa   :  { %v2187_v61 = vpop.f32.mrf.mxu0 }
 0x1fb   :  { %v5311_v63 = vadd.f32 %v2187_v61, %v2059_v13  ;;  %v5313_v40 = vpop.f32.mrf.mxu1 }
 0x1fc   :  { %3766 = vset.pattern.permute.xlu2 %v5837_v37  ;;  %v5338_v8 = vpop.permute.xlu0 %2945  ;;  %v5340_v55 = vpop.permute.xlu1 %2977 }
 0x1fd   :  { %5856 = vst [vmem:[#allocation6_spill] sm:$0xff] %v5338_v8 }
 0x1fe   :  { %v5317_v62 = vpop.f32.mrf.mxu2  ;;  %5857 = vst [vmem:[#allocation45_spill] sm:$0xff] %v5340_v55 }
 0x1ff   :  { %v5321_v33 = vpop.f32.mrf.mxu3 }
 0x202   :  { %v2190_v56 = vpop.f32.mrf.mxu0 }
 0x203   :  { %v5323_v29 = vadd.f32 %v2190_v56, %v2062_v41  ;;  %v5325_v9 = vpop.f32.mrf.mxu1  ;;  %v5336_v41 = vpop.permute.xlu2 %2941 }
 0x204   :  { %5855 = vst [vmem:[#allocation21_spill] sm:$0xff] %v5336_v41  ;;  %v5352_v20 = vpop.permute.xlu1 %2989  ;;  %v2220_v48 = vadd.f32 %v5325_v9, %v5277_v11 }
 0x205   :  { %5860 = vst [vmem:[#allocation46_spill] sm:$0xff] %v5352_v20 }
 0x206   :  { %v2123_v49 = vpop.f32.mrf.mxu2 }
 0x207   :  { %v2152_v31 = vpop.f32.mrf.mxu3 }
 0x20a   :  { %v2193_v12 = vpop.f32.mrf.mxu0 }
 0x20b   :  { %v2194_v13 = vadd.f32 %v2193_v12, %v2065_v1  ;;  %v2222_v58 = vpop.f32.mrf.mxu1  ;;  %v5348_v1 = vpop.permute.xlu2 %2981 }
 0x20c   :  { %v5334_v53 = vadd.f32 %v2222_v58, %v2094_v44  ;;  %5858 = vst [vmem:[#allocation22_spill] sm:$0xff] %v5348_v1  ;;  %v5350_v44 = vpop.permute.xlu0 %2985  ;;  %v5362_v43 = vpop.permute.xlu1 %3017 }
 0x20d   :  { %5859 = vst [vmem:[#allocation7_spill] sm:$0xff] %v5350_v44 }
 0x20e   :  { %v2126_v16 = vpop.f32.mrf.mxu2  ;;  %5863 = vst [vmem:[#allocation41_spill] sm:$0xff] %v5362_v43 }
 0x20f   :  { %v2155_v4 = vpop.f32.mrf.mxu3 }
 0x212   :  { %v2196_v37 = vpop.f32.mrf.mxu0 }
 0x213   :  { %v2197_v61 = vadd.f32 %v2196_v37, %v2068_v25  ;;  %v2225_v56 = vpop.f32.mrf.mxu1  ;;  %v5358_v37 = vpop.permute.xlu2 %3021 }
 0x214   :  { %v5342_v39 = vadd.f32 %v2225_v56, %v2097_v24  ;;  %5861 = vst [vmem:[#allocation23_spill] sm:$0xff] %v5358_v37  ;;  %v5360_v56 = vpop.permute.xlu0 %3025  ;;  %v5376_v46 = vpop.permute.xlu1 %3029 }
 0x215   :  { %5862 = vst [vmem:[#allocation8_spill] sm:$0xff] %v5360_v56 }
 0x216   :  { %v5344_v54 = vpop.f32.mrf.mxu2  ;;  %5865 = vst [vmem:[#allocation9_spill] sm:$0xff] %v5376_v46 }
 0x217   :  { %v5346_v14 = vpop.f32.mrf.mxu3 }
 0x21a   :  { %v2320_v12 = vpop.f32.mrf.mxu0 }
 0x21b   :  { %v2349_v58 = vpop.f32.mrf.mxu1  ;;  %v5368_v7 = vpop.permute.xlu2 %3061 }
 0x21c   :  { %v5370_v28 = vpop.permute.xlu0 %3065 }
 0x21d   :  { %5864 = vst [vmem:[#allocation24_spill] sm:$0xff] %v5370_v28  ;;  %v2217_v28 = vadd.f32 %v5313_v40, %v5253_v19 }
 0x21e   :  { %v5354_v8 = vpop.f32.mrf.mxu2 }
 0x21f   :  { %v5356_v0 = vpop.f32.mrf.mxu3 }
 0x222   :  { %v2323_v25 = vpop.f32.mrf.mxu0 }
 0x223   :  { %v2352_v24 = vpop.f32.mrf.mxu1 }
 0x226   :  { %v2251_v52 = vpop.f32.mrf.mxu2 }
 0x227   :  { %v5364_v21 = vadd.f32 %v2251_v52, %v2123_v49  ;;  %v2280_v44 = vpop.f32.mrf.mxu3 }
 0x228   :  { %v5366_v27 = vadd.f32 %v2280_v44, %v2152_v31  ;;  %v5378_v44 = vpop.permute.xlu2 %3277 }
 0x22a   :  { %v2326_v30 = vpop.f32.mrf.mxu0 }
 0x22b   :  { %v2427_v20 = vadd.f32 %v2326_v30, %v2194_v13  ;;  %v2355_v17 = vpop.f32.mrf.mxu1  ;;  %v5380_v13 = vpop.permute.xlu0 %3097 }
 0x22c   :  { %5866 = vst [vmem:[#allocation42_spill] sm:$0xff] %v5380_v13  ;;  %v2423_v13 = vadd.f32 %v2323_v25, %v5323_v29 }
 0x22e   :  { %v2254_v1 = vpop.f32.mrf.mxu2 }
 0x22f   :  { %v5372_v37 = vadd.f32 %v2254_v1, %v2126_v16  ;;  %v2283_v55 = vpop.f32.mrf.mxu3  ;;  %v2419_v16 = vadd.f32 %v2320_v12, %v5311_v63  ;;  %v2420_v1 = vadd.f32 %v2349_v58, %v2217_v28  ;;  %v2424_v63 = vadd.f32 %v2352_v24, %v2220_v48 }
 0x230   :  { %v5374_v56 = vadd.f32 %v2283_v55, %v2155_v4  ;;  %v5385_v4 = vpop.permute.xlu1 %3057  ;;  %v5389_v38 = vpop.permute.xlu2 %3105 }
 0x232   :  { %v2329_v52 = vpop.f32.mrf.mxu0 }
 0x233   :  { %v2431_v49 = vadd.f32 %v2329_v52, %v2197_v61  ;;  %v2358_v43 = vpop.f32.mrf.mxu1  ;;  %v5392_v19 = vpop.permute.xlu0 %3137 }
 0x234   :  { %5867 = vst [vmem:[#allocation27_spill] sm:$0xff] %v5392_v19 }
 0x236   :  { %v2378_v31 = vpop.f32.mrf.mxu2 }
 0x237   :  { %v2407_v30 = vpop.f32.mrf.mxu3 }
 0x238   :  { %v5397_v11 = vpop.permute.xlu2 %3145 }
 0x23a   :  { %v2469_v41 = vpop.f32.mrf.mxu0 }
 0x23b   :  { %v2568_v55 = vadd.f32 %v2469_v41, %v2419_v16  ;;  %v2498_v46 = vpop.f32.mrf.mxu1  ;;  %v5394_v41 = vpop.permute.xlu1 %3282 }
 0x23c   :  { %v2569_v60 = vadd.f32 %v2498_v46, %v2420_v1  ;;  %v2428_v1 = vadd.f32 %v2355_v17, %v5334_v53  ;;  %v5401_v25 = vpop.permute.xlu0 %3181  ;;  %v2432_v17 = vadd.f32 %v2358_v43, %v5342_v39 }
 0x23d   :  { %5868 = vst [vmem:[#allocation12_spill] sm:$0xff] %v5401_v25 }
 0x23e   :  { %v2584_v61 = vmax.f32 %v2568_v55, %v2569_v60  ;;  %v2381_v52 = vpop.f32.mrf.mxu2 }
 0x23f   :  { %v2410_v50 = vpop.f32.mrf.mxu3 }
 0x242   :  { %v2472_v28 = vpop.f32.mrf.mxu0 }
 0x243   :  { %v2572_v40 = vadd.f32 %v2472_v28, %v2423_v13  ;;  %v2501_v12 = vpop.f32.mrf.mxu1 }
 0x244   :  { %v2573_v58 = vadd.f32 %v2501_v12, %v2424_v63  ;;  %v5409_v63 = vpop.permute.xlu1 %3069  ;;  %v5422_v24 = vpop.permute.xlu0 %3225 }
 0x245   :  { %5869 = vst [vmem:[#allocation43_spill] sm:$0xff] %v5409_v63 }
 0x246   :  { %v2585_v46 = vmax.f32 %v2572_v40, %v2573_v58  ;;  %v2384_v60 = vpop.f32.mrf.mxu2  ;;  %v2275_v58 = vadd.f32 %v5346_v14, %v5306_v34  ;;  %v2278_v34 = vadd.f32 %v5356_v0, %v5321_v33 }
 0x247   :  { %v2413_v16 = vpop.f32.mrf.mxu3 }
 0x248   :  { %v2422_v63 = vadd.f32 %v2407_v30, %v2275_v58 }
 0x24a   :  { %v2475_v55 = vpop.f32.mrf.mxu0 }
 0x24b   :  { %v5399_v9 = vadd.f32 %v2475_v55, %v2427_v20  ;;  %v2504_v29 = vpop.f32.mrf.mxu1  ;;  %v2246_v20 = vadd.f32 %v5344_v54, %v5304_v2  ;;  %v3178_v55 = vpop.permute.xlu2 %3177 }
 0x24c   :  { %v5403_v48 = vadd.f32 %v2504_v29, %v2428_v1  ;;  %v3102_v54 = vpop.permute.xlu1 %3101 }
 0x24d   :  { %v2421_v29 = vadd.f32 %v2378_v31, %v2246_v20  ;;  %v2426_v20 = vadd.f32 %v2410_v50, %v2278_v34 }
 0x24e   :  { %v5407_v13 = vpop.f32.mrf.mxu2 }
 0x24f   :  { %v5411_v28 = vpop.f32.mrf.mxu3 }
 0x252   :  { %v2478_v53 = vpop.f32.mrf.mxu0 }
 0x253   :  { %v5416_v40 = vadd.f32 %v2478_v53, %v2431_v49  ;;  %v2507_v12 = vpop.f32.mrf.mxu1  ;;  %v2249_v53 = vadd.f32 %v5354_v8, %v5317_v62  ;;  %v3218_v58 = vpop.permute.xlu2 %3217 }
 0x254   :  { %v5420_v1 = vadd.f32 %v2507_v12, %v2432_v17  ;;  %v5440_v50 = vpop.permute.xlu1 %3109 }
 0x255   :  { %v2425_v31 = vadd.f32 %v2381_v52, %v2249_v53 }
 0x256   :  { %v2527_v43 = vpop.f32.mrf.mxu2 }
 0x257   :  { %v2570_v19 = vadd.f32 %v2527_v43, %v2421_v29  ;;  %v2556_v25 = vpop.f32.mrf.mxu3  ;;  %v2635_v43 = vpop.permute.xlu0 %2634 }
 0x258   :  { %v2571_v2 = vadd.f32 %v2556_v25, %v2422_v63 }
 0x25a   :  { %v2588_v49 = vmax.f32 %v2570_v19, %v2571_v2  ;;  %v3313_v17 = vpop.f32.mrf.mxu0 }
 0x25b   :  { %v3314_v52 = vadd.f32 %v3313_v17, %v5378_v44 }
 0x25c   :  { %v2592_v14 = vmax.f32 %v2584_v61, %v2588_v49  ;;  %v2429_v61 = vadd.f32 %v2384_v60, %v5364_v21 }
 0x25d   :  { %v3319_v21 = vmax.f32 %v3314_v52, 0.0 }
 0x25e   :  { %v2620_v30 = vadd.f32 %v4878_v5, %v2592_v14  ;;  %v2530_v12 = vpop.f32.mrf.mxu2 }
 0x25f   :  { %v2574_v39 = vadd.f32 %v2530_v12, %v2425_v31  ;;  %v2559_v29 = vpop.f32.mrf.mxu3 }
 0x260   :  { %v5431_v25 = vmax.f32 %v2620_v30, 0.0  ;;  %v2575_v19 = vadd.f32 %v2559_v29, %v2426_v20 }
 0x262   :  { %v5434_v63 = vmul.f32 %v3178_v55, %v5431_v25  ;;  %v2589_v62 = vmax.f32 %v2574_v39, %v2575_v19  ;;  %v3232_v0 = vmul.f32 %v3218_v58, %v5431_v25  ;;  %v5438_v33 = vmul.f32 %v2635_v43, %v5431_v25  ;;  %v3316_v55 = vpop.f32.mrf.mxu0 }
 0x263   :  { %v2672_v5 = vmul.f32 %v5014_v51, %v5431_v25  ;;  %v2430_v39 = vadd.f32 %v2413_v16, %v5366_v27  ;;  %v3317_v53 = vadd.f32 %v3316_v55, %v5394_v41  ;;  %v5870_v27 = vmax.f32 %v5399_v9, %v5403_v48 }
 0x264   :  { %v2593_v8 = vmax.f32 %v2585_v46, %v2589_v62  ;;  %3240 = vrot.lane.b32.xlu1 %v3232_v0, %s3786_s6  ;;  %v2433_v16 = vadd.f32 %v5407_v13, %v5372_v37 }
 0x265   :  { %2680 = vrot.lane.b32.xlu2 %v2672_v5, %s3787_s7  ;;  %v3320_v31 = vmax.f32 %v3317_v53, 0.0  ;;  %v5878_v53 = vld [vmem:[#allocation45_spill] sm:$0xff] }
 0x266   :  { %v2621_v2 = vadd.f32 %v4911_v15, %v2593_v8  ;;  %v2533_v49 = vpop.f32.mrf.mxu2  ;;  %v2712_v15 = vmul.f32 %v5092_v36, %v5431_v25  ;;  %v2434_v36 = vadd.f32 %v5411_v28, %v5374_v56  ;;  %v2752_v56 = vmul.f32 %v5135_v18, %v5431_v25 }
 0x267   :  { %v2578_v51 = vadd.f32 %v2533_v49, %v2429_v61  ;;  %v2562_v46 = vpop.f32.mrf.mxu3  ;;  %3355 = vmatpush.msra.mxu1 %v3320_v31  ;;  %v5871_v28 = vmax.f32 %v5416_v40, %v5420_v1  ;;  %v2792_v40 = vmul.f32 %v5172_v32, %v5431_v25  ;;  %v2832_v32 = vmul.f32 %v5206_v26, %v5431_v25  ;;  %v5874_v61 = vld [vmem:[#allocation3_spill] sm:$0xff]  ;;  %v5880_v31 = vld [vmem:[#allocation20_spill] sm:$0xff] }
 0x268   :  { %v5451_v34 = vmax.f32 %v2621_v2, 0.0  ;;  %v2579_v14 = vadd.f32 %v2562_v46, %v2430_v39  ;;  %v5877_v2 = vld [vmem:[#allocation19_spill] sm:$0xff]  ;;  %v5879_v46 = vld [vmem:[#allocation22_spill] sm:$0xff] }
 0x269   :  { %3356 = vmatpush.msra.mxu1 %v3319_v21 }
 0x26a   :  { %v2590_v60 = vmax.f32 %v2578_v51, %v2579_v14  ;;  %v3073_v20 = vmul.f32 %v5368_v7, %v5451_v34  ;;  %v2673_v44 = vmul.f32 %v5216_v6, %v5451_v34  ;;  %v3142_v7 = vpop.permute.xlu1 %3141  ;;  %v3113_v29 = vmul.f32 %v3102_v54, %v5451_v34 }
 0x26b   :  { %v2713_v37 = vmul.f32 %v5238_v42, %v5451_v34  ;;  %v2753_v54 = vmul.f32 %v5257_v47, %v5451_v34  ;;  %v2793_v19 = vmul.f32 %v5281_v10, %v5451_v34  ;;  %v2833_v62 = vmul.f32 %v5297_v35, %v5451_v34  ;;  %v5872_v35 = vld [vmem:[#allocation36_spill] sm:$0xff] }
 0x26c   :  { %v2594_v41 = vmax.f32 %v5870_v27, %v2590_v60  ;;  %3082 = vrot.lane.b32.xlu0 %v3073_v20, %s3788_s3  ;;  %2682 = vrot.lane.b32.xlu1 %v2673_v44, %s3787_s7  ;;  %v2872_v10 = vmul.f32 %v5246_v22, %v5431_v25  ;;  %v2873_v26 = vmul.f32 %v5308_v23, %v5451_v34  ;;  %v5875_v23 = vld [vmem:[#allocation25_spill] sm:$0xff]  ;;  %v3321_v44 = vld [vmem:[%s5712_s9] sm:$0xff] }
 0x26d   :  { %2720 = vrot.lane.b32.xlu2 %v2712_v15, %s3789_s16  ;;  %v2912_v8 = vmul.f32 %v5872_v35, %v5431_v25  ;;  %v2952_v55 = vmul.f32 %v5875_v23, %v5431_v25  ;;  %v2992_v51 = vmul.f32 %v5878_v53, %v5431_v25  ;;  %v2993_v14 = vmul.f32 %v5879_v46, %v5451_v34  ;;  %v5881_v60 = vld [vmem:[#allocation41_spill] sm:$0xff]  ;;  %v5882_v15 = vld [vmem:[#allocation23_spill] sm:$0xff] }
 0x26e   :  { %v2622_v6 = vadd.f32 %v5170_v45, %v2594_v41  ;;  %v2536_v9 = vpop.f32.mrf.mxu2  ;;  %v3032_v20 = vmul.f32 %v5881_v60, %v5431_v25  ;;  %3675 = vmatmul.msk.f32.vlgmr.msra.gmra.mxu1 %vm2029_vm2, %v3321_v44  ;;  %v3033_v27 = vmul.f32 %v5882_v15, %v5451_v34  ;;  %v5883_v41 = vld [vmem:[#allocation35_spill] sm:$0xff] }
 0x26f   :  { %v2582_v48 = vadd.f32 %v2536_v9, %v2433_v16  ;;  %v2565_v17 = vpop.f32.mrf.mxu3  ;;  %v3323_v35 = vld [vmem:[%s5713_s10] sm:$0xff] }
 0x270   :  { %v5470_v30 = vmax.f32 %v2622_v6, 0.0  ;;  %v2583_v12 = vadd.f32 %v2565_v17, %v2434_v36  ;;  %v5571_v36 = vpop.permute.xlu2 %3189  ;;  %v5884_v6 = vld [vmem:[#allocation12_spill] sm:$0xff]  ;;  %v5896_v15 = vld [vmem:[#allocation39_spill] sm:$0xff] }
 0x271   :  { %v3193_v9 = vmul.f32 %v5884_v6, %v5451_v34 }
 0x272   :  { %v2591_v58 = vmax.f32 %v2582_v48, %v2583_v12  ;;  %v5477_v13 = vmul.f32 %v5389_v38, %v5470_v30  ;;  %v5483_v45 = vmul.f32 %v5397_v11, %v5470_v30  ;;  %v3150_v38 = vpop.permute.xlu1 %3149  ;;  %v3153_v11 = vmul.f32 %v3142_v7, %v5451_v34  ;;  %v5885_v48 = vld [vmem:[#allocation33_spill] sm:$0xff]  ;;  %v5886_v12 = vld [vmem:[#allocation42_spill] sm:$0xff] }
 0x273   :  { %v3072_v7 = vmul.f32 %v5385_v4, %v5431_v25  ;;  %v3322_v4 = vld [vmem:[%s5712_s9 + $0x8] sm:$0xff] }
 0x274   :  { %v2595_v43 = vmax.f32 %v5871_v28, %v2591_v58  ;;  %3122 = vrot.lane.b32.xlu0 %v3113_v29, %s3790_s17  ;;  %2722 = vrot.lane.b32.xlu1 %v2713_v37, %s3789_s16  ;;  %v3112_v58 = vmul.f32 %v5886_v12, %v5431_v25 }
 0x275   :  { %2760 = vrot.lane.b32.xlu2 %v2752_v56, %s3791_s18  ;;  %v5887_v56 = vld [vmem:[#allocation24_spill] sm:$0xff] }
 0x276   :  { %v2623_v42 = vadd.f32 %v5184_v3, %v2595_v43  ;;  %3676 = vmatmul.msk.f32.gmra.mxu1 %vm2029_vm2, %v3322_v4  ;;  %v3074_v28 = vmul.f32 %v5887_v56, %v5470_v30  ;;  %v5888_v43 = vld [vmem:[#allocation11_spill] sm:$0xff]  ;;  %v5898_v56 = vld [vmem:[#allocation34_spill] sm:$0xff] }
 0x278   :  { %v5492_v18 = vmax.f32 %v2623_v42, 0.0 }
 0x27a   :  { %v5503_v3 = vmul.f32 %v3150_v38, %v5492_v18  ;;  %v3186_v1 = vpop.permute.xlu1 %3185  ;;  %v2675_v0 = vmul.f32 %v5062_v59, %v5492_v18  ;;  %v2715_v5 = vmul.f32 %v5114_v57, %v5492_v18  ;;  %v5873_v59 = vld [vmem:[#allocation10_spill] sm:$0xff]  ;;  %v2755_v52 = vmul.f32 %v5874_v61, %v5492_v18  ;;  %v5876_v57 = vld [vmem:[#allocation21_spill] sm:$0xff]  ;;  %v5889_v38 = vld [vmem:[#allocation27_spill] sm:$0xff] }
 0x27b   :  { %v3194_v47 = vmul.f32 %v3186_v1, %v5470_v30  ;;  %v2913_v22 = vmul.f32 %v5873_v59, %v5451_v34  ;;  %v2953_v39 = vmul.f32 %v5876_v57, %v5451_v34  ;;  %v2795_v49 = vmul.f32 %v5877_v2, %v5492_v18  ;;  %v3366_v57 = vld [vmem:[%s5714_s11] sm:$0xff]  ;;  %v5894_v2 = vld [vmem:[#allocation5_spill] sm:$0xff] }
 0x27c   :  { %3162 = vrot.lane.b32.xlu0 %v3153_v11, %s3792_s19  ;;  %2762 = vrot.lane.b32.xlu1 %v2753_v54, %s3791_s18  ;;  %v2835_v21 = vmul.f32 %v5880_v31, %v5492_v18  ;;  %v2875_v16 = vmul.f32 %v5883_v41, %v5492_v18  ;;  %v2915_v17 = vmul.f32 %v5885_v48, %v5492_v18  ;;  %v5895_v31 = vld [vmem:[#allocation38_spill] sm:$0xff]  ;;  %v5897_v48 = vld [vmem:[#allocation40_spill] sm:$0xff] }
 0x27d   :  { %2800 = vrot.lane.b32.xlu2 %v2792_v40, %s3793_s20  ;;  %v2955_v42 = vmul.f32 %v5888_v43, %v5492_v18  ;;  %v3152_v11 = vmul.f32 %v5889_v38, %v5431_v25 }
 0x282   :  { %v3222_v54 = vpop.permute.xlu1 %3221 }
 0x284   :  { %2802 = vrot.lane.b32.xlu1 %v2793_v19, %s3793_s20  ;;  %3204 = vrot.lane.b32.xlu0 %v3194_v47, %s3794_s21 }
 0x285   :  { %2840 = vrot.lane.b32.xlu2 %v2832_v32, %s3795_s22 }
 0x28a   :  { %v5603_v25 = vpop.permute.xlu1 %3229 }
 0x28c   :  { %2842 = vrot.lane.b32.xlu1 %v2833_v62, %s3795_s22  ;;  %2686 = vrot.lane.b32.xlu0 %v2675_v0, %s3787_s7  ;;  %v5891_v62 = vld [vmem:[#allocation9_spill] sm:$0xff] }
 0x28d   :  { %2880 = vrot.lane.b32.xlu2 %v2872_v10, %s3796_s0  ;;  %v3035_v0 = vmul.f32 %v5891_v62, %v5492_v18  ;;  %v3233_v10 = vmul.f32 %v3222_v54, %v5451_v34 }
 0x294   :  { %2882 = vrot.lane.b32.xlu1 %v2873_v26, %s3796_s0  ;;  %2726 = vrot.lane.b32.xlu0 %v2715_v5, %s3789_s16  ;;  %v3324_v5 = vld [vmem:[%s5713_s10 + $0x8] sm:$0xff] }
 0x295   :  { %2920 = vrot.lane.b32.xlu2 %v2912_v8, %s3797_s23  ;;  %v5892_v8 = vld [vmem:[#allocation37_spill] sm:$0xff] }
 0x296   :  { %v2674_v59 = vmul.f32 %v5892_v8, %v5470_v30 }
 0x29c   :  { %2922 = vrot.lane.b32.xlu1 %v2913_v22, %s3797_s23  ;;  %2766 = vrot.lane.b32.xlu0 %v2755_v52, %s3791_s18 }
 0x29d   :  { %2960 = vrot.lane.b32.xlu2 %v2952_v55, %s3798_s2 }
 0x2a4   :  { %2962 = vrot.lane.b32.xlu1 %v2953_v39, %s3798_s2  ;;  %2806 = vrot.lane.b32.xlu0 %v2795_v49, %s3793_s20  ;;  %v3234_v39 = vmul.f32 %v5422_v24, %v5470_v30  ;;  %v2714_v49 = vmul.f32 %v5894_v2, %v5470_v30 }
 0x2a5   :  { %3000 = vrot.lane.b32.xlu2 %v2992_v51, %s3799_s24 }
 0x2ac   :  { %3002 = vrot.lane.b32.xlu1 %v2993_v14, %s3799_s24  ;;  %2846 = vrot.lane.b32.xlu0 %v2835_v21, %s3795_s22  ;;  %v3367_v14 = vld [vmem:[%s5714_s11 + $0x8] sm:$0xff]  ;;  %v2754_v21 = vmul.f32 %v5895_v31, %v5470_v30 }
 0x2ad   :  { %3040 = vrot.lane.b32.xlu2 %v3032_v20, %s3800_s4 }
 0x2b4   :  { %3042 = vrot.lane.b32.xlu1 %v3033_v27, %s3800_s4  ;;  %2886 = vrot.lane.b32.xlu0 %v2875_v16, %s3796_s0  ;;  %v2794_v27 = vmul.f32 %v5896_v15, %v5470_v30 }
 0x2b5   :  { %3080 = vrot.lane.b32.xlu2 %v3072_v7, %s3788_s3 }
 0x2bc   :  { %3202 = vrot.lane.b32.xlu1 %v3193_v9, %s3794_s21  ;;  %2926 = vrot.lane.b32.xlu0 %v2915_v17, %s3797_s23  ;;  %v5643_v9 = vpop.permute.xlu0 %2649  ;;  %v2834_v17 = vmul.f32 %v5897_v48, %v5470_v30  ;;  %v5904_v48 = vld [vmem:[#allocation4_spill] sm:$0xff] }
 0x2bd   :  { %3120 = vrot.lane.b32.xlu2 %v3112_v58, %s3790_s17 }
 0x2bf   :  { %v2681_v29 = vpop.permute.xlu2 %2680 }
 0x2c0   :  { %v2692_v37 = vadd.f32 %v2681_v29, %v5438_v33  ;;  %v5890_v33 = vld [vmem:[#allocation46_spill] sm:$0xff] }
 0x2c1   :  { %v2995_v19 = vmul.f32 %v5890_v33, %v5492_v18 }
 0x2c4   :  { %3084 = vrot.lane.b32.xlu1 %v3074_v28, %s3788_s3  ;;  %2966 = vrot.lane.b32.xlu0 %v2955_v42, %s3798_s2  ;;  %v2874_v28 = vmul.f32 %v5898_v56, %v5470_v30 }
 0x2c5   :  { %3160 = vrot.lane.b32.xlu2 %v3152_v11, %s3792_s19 }
 0x2c7   :  { %v2721_v40 = vpop.permute.xlu2 %2720 }
 0x2c8   :  { %v2732_v1 = vadd.f32 %v2721_v40, %v2692_v37  ;;  %v5899_v40 = vld [vmem:[#allocation26_spill] sm:$0xff] }
 0x2cc   :  { %3124 = vrot.lane.b32.xlu1 %v5477_v13, %s3790_s17  ;;  %3006 = vrot.lane.b32.xlu0 %v2995_v19, %s3799_s24 }
 0x2cd   :  { %3200 = vrot.lane.b32.xlu2 %v5434_v63, %s3794_s21 }
 0x2cf   :  { %v2761_v47 = vpop.permute.xlu2 %2760 }
 0x2d0   :  { %v2772_v32 = vadd.f32 %v2761_v47, %v2732_v1  ;;  %v2914_v1 = vmul.f32 %v5899_v40, %v5470_v30 }
 0x2d4   :  { %3164 = vrot.lane.b32.xlu1 %v5483_v45, %s3792_s19  ;;  %3046 = vrot.lane.b32.xlu0 %v3035_v0, %s3800_s4  ;;  %v5893_v45 = vld [vmem:[#allocation18_spill] sm:$0xff] }
 0x2d5   :  { %3242 = vrot.lane.b32.xlu2 %v3233_v10, %s3786_s6  ;;  %v2653_v22 = vmul.f32 %v5893_v45, %v5451_v34 }
 0x2d6   :  { %v5612_v13 = vpop.permute.xlu1 %3240 }
 0x2d7   :  { %v2801_v26 = vpop.permute.xlu2 %2800 }
 0x2d8   :  { %v2812_v63 = vadd.f32 %v2801_v26, %v2772_v32  ;;  %v5900_v32 = vld [vmem:[#allocation6_spill] sm:$0xff] }
 0x2d9   :  { %v2954_v62 = vmul.f32 %v5900_v32, %v5470_v30 }
 0x2dc   :  { %3332 = vperm.xlu1 %3765, %v3324_v5   ;;  %3327 = vperm.xlu0 %3764, %v3323_v35   ;;  %v5901_v5 = vld [vmem:[#allocation7_spill] sm:$0xff] }
 0x2dd   :  { %2684 = vrot.lane.b32.xlu2 %v2674_v59, %s3787_s7  ;;  %v2994_v35 = vmul.f32 %v5901_v5, %v5470_v30 }
 0x2de   :  { %v2683_v61 = vpop.permute.xlu1 %2682  ;;  %v3083_v37 = vpop.permute.xlu0 %3082 }
 0x2df   :  { %v2841_v52 = vpop.permute.xlu2 %2840  ;;  %v2693_v23 = vadd.f32 %v2683_v61, %v2653_v22 }
 0x2e0   :  { %v2852_v55 = vadd.f32 %v2841_v52, %v2812_v63 }
 0x2e4   :  { %3244 = vrot.lane.b32.xlu1 %v3234_v39, %s3786_s6  ;;  %3370 = vperm.xlu0 %3764, %v3366_v57  }
 0x2e5   :  { %2724 = vrot.lane.b32.xlu2 %v2714_v49, %s3789_s16 }
 0x2e6   :  { %v2723_v34 = vpop.permute.xlu1 %2722  ;;  %v3123_v54 = vpop.permute.xlu0 %3122 }
 0x2e7   :  { %v2881_v53 = vpop.permute.xlu2 %2880  ;;  %v2733_v51 = vadd.f32 %v2723_v34, %v2693_v23  ;;  %v5902_v23 = vld [vmem:[#allocation8_spill] sm:$0xff] }
 0x2e8   :  { %v2892_v46 = vadd.f32 %v2881_v53, %v2852_v55  ;;  %v3034_v55 = vmul.f32 %v5902_v23, %v5470_v30 }
 0x2ec   :  { %3375 = vperm.xlu1 %3765, %v3367_v14  }
 0x2ed   :  { %2764 = vrot.lane.b32.xlu2 %v2754_v21, %s3791_s18 }
 0x2ee   :  { %v2763_v24 = vpop.permute.xlu1 %2762  ;;  %v3163_v0 = vpop.permute.xlu0 %3162 }
 0x2ef   :  { %v2921_v60 = vpop.permute.xlu2 %2920  ;;  %v2773_v20 = vadd.f32 %v2763_v24, %v2733_v51 }
 0x2f0   :  { %v2932_v44 = vadd.f32 %v2921_v60, %v2892_v46  ;;  %v5903_v46 = vld [vmem:[#allocation43_spill] sm:$0xff] }
 0x2f1   :  { %v3075_v14 = vmul.f32 %v5903_v46, %v5492_v18 }
 0x2f5   :  { %2804 = vrot.lane.b32.xlu2 %v2794_v27, %s3793_s20 }
 0x2f6   :  { %v2803_v41 = vpop.permute.xlu1 %2802  ;;  %v5660_v59 = vpop.permute.xlu0 %3204 }
 0x2f7   :  { %v2961_v16 = vpop.permute.xlu2 %2960  ;;  %v2813_v7 = vadd.f32 %v2803_v41, %v2773_v20 }
 0x2f8   :  { %v2972_v6 = vadd.f32 %v2961_v16, %v2932_v44 }
 0x2fd   :  { %2844 = vrot.lane.b32.xlu2 %v2834_v17, %s3795_s22  ;;  %v2654_v17 = vmul.f32 %v5904_v48, %v5470_v30 }
 0x2fe   :  { %v2843_v12 = vpop.permute.xlu1 %2842  ;;  %v5665_v53 = vpop.permute.xlu0 %2686 }
 0x2ff   :  { %v3001_v58 = vpop.permute.xlu2 %3000  ;;  %v2853_v4 = vadd.f32 %v2843_v12, %v2813_v7  ;;  %v3115_v7 = vmul.f32 %v5440_v50, %v5492_v18  ;;  %v3195_v50 = vmul.f32 %v5571_v36, %v5492_v18 }
 0x300   :  { %v3012_v29 = vadd.f32 %v3001_v58, %v2972_v6  ;;  %v18_v58 = vstv %s5715_s12 }
 0x301   :  { %19 = vst [vmem:[#allocation2] sm:$0x1] %v18_v58 }
 0x305   :  { %2884 = vrot.lane.b32.xlu2 %v2874_v28, %s3796_s0 }
 0x306   :  { %v2883_v43 = vpop.permute.xlu1 %2882  ;;  %v5671_v27 = vpop.permute.xlu0 %2726 }
 0x307   :  { %v3041_v42 = vpop.permute.xlu2 %3040  ;;  %v2893_v38 = vadd.f32 %v2883_v43, %v2853_v4  ;;  %v3235_v43 = vmul.f32 %v5603_v25, %v5492_v18 }
 0x308   :  { %v3052_v11 = vadd.f32 %v3041_v42, %v3012_v29 }
 0x30d   :  { %2924 = vrot.lane.b32.xlu2 %v2914_v1, %s3797_s23 }
 0x30e   :  { %v2923_v33 = vpop.permute.xlu1 %2922  ;;  %v2767_v4 = vpop.permute.xlu0 %2766 }
 0x30f   :  { %v3081_v19 = vpop.permute.xlu2 %3080  ;;  %v2933_v61 = vadd.f32 %v2923_v33, %v2893_v38 }
 0x310   :  { %v3092_v47 = vadd.f32 %v3081_v19, %v3052_v11 }
 0x315   :  { %2964 = vrot.lane.b32.xlu2 %v2954_v62, %s3798_s2 }
 0x316   :  { %v2963_v10 = vpop.permute.xlu1 %2962  ;;  %v2807_v56 = vpop.permute.xlu0 %2806 }
 0x317   :  { %v3121_v26 = vpop.permute.xlu2 %3120  ;;  %v2973_v52 = vadd.f32 %v2963_v10, %v2933_v61 }
 0x318   :  { %v3132_v63 = vadd.f32 %v3121_v26, %v3092_v47 }
 0x31d   :  { %3004 = vrot.lane.b32.xlu2 %v2994_v35, %s3799_s24 }
 0x31e   :  { %v3003_v8 = vpop.permute.xlu1 %3002  ;;  %v2847_v11 = vpop.permute.xlu0 %2846 }
 0x31f   :  { %v3161_v45 = vpop.permute.xlu2 %3160  ;;  %v3013_v57 = vadd.f32 %v3003_v8, %v2973_v52 }
 0x320   :  { %v3172_v22 = vadd.f32 %v3161_v45, %v3132_v63 }
 0x325   :  { %3044 = vrot.lane.b32.xlu2 %v3034_v55, %s3800_s4 }
 0x326   :  { %v3043_v39 = vpop.permute.xlu1 %3042  ;;  %v2887_v40 = vpop.permute.xlu0 %2886 }
 0x327   :  { %v3201_v2 = vpop.permute.xlu2 %3200  ;;  %v3053_v49 = vadd.f32 %v3043_v39, %v3013_v57  ;;  %v3358_v57 = vpop.f32.mrf.mxu1 }
 0x328   :  { %v3212_v34 = vadd.f32 %v3201_v2, %v3172_v22 }
 0x329   :  { %v3093_v51 = vadd.f32 %v3083_v37, %v3053_v49 }
 0x32a   :  { %v3252_v60 = vadd.f32 %v5612_v13, %v3212_v34 }
 0x32b   :  { %v3133_v31 = vadd.f32 %v3123_v54, %v3093_v51  ;;  %v3390_v54 = vld [vmem:[#allocation2] sm:$0x1]  ;;  %v2655_v51 = vmul.f32 %v5643_v9, %v5492_v18 }
 0x32c   :  { %v3257_v41 = vsel %vm3256_vm5, %v3252_v60, 0.0 }
 0x32d   :  { %3086 = vrot.lane.b32.xlu2 %v3075_v14, %s3788_s3  ;;  %v3173_v21 = vadd.f32 %v3163_v0, %v3133_v31  ;;  %v2695_v14 = vadd.f32 %v5665_v53, %v2655_v51 }
 0x32e   :  { %v3203_v24 = vpop.permute.xlu1 %3202  ;;  %v2927_v36 = vpop.permute.xlu0 %2926 }
 0x32f   :  { %v3243_v20 = vpop.permute.xlu2 %3242  ;;  %v3213_v44 = vadd.f32 %v3203_v24, %v3173_v21  ;;  %v3361_v24 = vpop.f32.mrf.mxu1 }
 0x331   :  { %v3253_v15 = vadd.f32 %v3243_v20, %v3213_v44  ;;  %v2735_v20 = vadd.f32 %v5671_v27, %v2695_v14 }
 0x333   :  { %v3258_v16 = vsel %vm3256_vm5, %v3253_v15, 0.0  ;;  %v2775_v15 = vadd.f32 %v2767_v4, %v2735_v20 }
 0x334   :  { %v3259_v6 = vadd.f32 %v3258_v16, %v3257_v41 }
 0x335   :  { %3126 = vrot.lane.b32.xlu2 %v3115_v7, %s3790_s17  ;;  %v2815_v16 = vadd.f32 %v2807_v56, %v2775_v15 }
 0x336   :  { %v3085_v33 = vpop.permute.xlu1 %3084  ;;  %v2967_v32 = vpop.permute.xlu0 %2966 }
 0x337   :  { %v2685_v13 = vpop.permute.xlu2 %2684  ;;  %v2855_v7 = vadd.f32 %v2847_v11, %v2815_v16 }
 0x338   :  { %v2694_v12 = vadd.f32 %v2685_v13, %v2654_v17 }
 0x339   :  { %v2895_v13 = vadd.f32 %v2887_v40, %v2855_v7 }
 0x33d   :  { %3166 = vrot.lane.b32.xlu2 %v5503_v3, %s3792_s19 }
 0x33e   :  { %v3125_v47 = vpop.permute.xlu1 %3124  ;;  %v3007_v63 = vpop.permute.xlu0 %3006 }
 0x33f   :  { %v2725_v29 = vpop.permute.xlu2 %2724 }
 0x340   :  { %v2734_v37 = vadd.f32 %v2725_v29, %v2694_v12  ;;  %v2935_v12 = vadd.f32 %v2927_v36, %v2895_v13 }
 0x342   :  { %v2975_v29 = vadd.f32 %v2967_v32, %v2935_v12 }
 0x345   :  { %3206 = vrot.lane.b32.xlu2 %v3195_v50, %s3794_s21  ;;  %v3015_v50 = vadd.f32 %v3007_v63, %v2975_v29 }
 0x346   :  { %v3165_v0 = vpop.permute.xlu1 %3164  ;;  %v3047_v23 = vpop.permute.xlu0 %3046 }
 0x347   :  { %v2765_v30 = vpop.permute.xlu2 %2764  ;;  %v3055_v27 = vadd.f32 %v3047_v23, %v3015_v50 }
 0x348   :  { %v2774_v28 = vadd.f32 %v2765_v30, %v2734_v37 }
 0x34d   :  { %3246 = vrot.lane.b32.xlu2 %v3235_v43, %s3786_s6 }
 0x34e   :  { %v3333_v45 = vpop.permute.xlu1 %3332  ;;  %v3328_v21 = vpop.permute.xlu0 %3327 }
 0x34f   :  { %v2805_v42 = vpop.permute.xlu2 %2804  ;;  %v3362_v41 = vadd.f32 %v3361_v24, %v3333_v45 }
 0x350   :  { %v2814_v38 = vadd.f32 %v2805_v42, %v2774_v28 }
 0x351   :  { %v3365_v48 = vmax.f32 %v3362_v41, 0.0 }
 0x355   :  { %3393 = vperm.xlu2 %3766, %v3390_v54  }
 0x356   :  { %v3245_v34 = vpop.permute.xlu1 %3244  ;;  %v3371_v18 = vpop.permute.xlu0 %3370 }
 0x357   :  { %v2845_v3 = vpop.permute.xlu2 %2844 }
 0x358   :  { %v2854_v10 = vadd.f32 %v2845_v3, %v2814_v38 }
 0x35e   :  { %v3376_v17 = vpop.permute.xlu1 %3375 }
 0x35f   :  { %v2885_v1 = vpop.permute.xlu2 %2884  ;;  %v3379_v58 = vmul.f32 %v3376_v17, %v3365_v48 }
 0x360   :  { %v2894_v25 = vadd.f32 %v2885_v1, %v2854_v10 }
 0x367   :  { %v2925_v19 = vpop.permute.xlu2 %2924 }
 0x368   :  { %v2934_v5 = vadd.f32 %v2925_v19, %v2894_v25 }
 0x36f   :  { %v2965_v62 = vpop.permute.xlu2 %2964 }
 0x370   :  { %v2974_v35 = vadd.f32 %v2965_v62, %v2934_v5 }
 0x377   :  { %v3005_v26 = vpop.permute.xlu2 %3004 }
 0x378   :  { %v3014_v8 = vadd.f32 %v3005_v26, %v2974_v35 }
 0x37f   :  { %v3045_v22 = vpop.permute.xlu2 %3044 }
 0x380   :  { %v3054_v61 = vadd.f32 %v3045_v22, %v3014_v8 }
 0x382   :  { %v3094_v52 = vadd.f32 %v3085_v33, %v3054_v61 }
 0x384   :  { %v3134_v55 = vadd.f32 %v3125_v47, %v3094_v52 }
 0x386   :  { %v3174_v39 = vadd.f32 %v3165_v0, %v3134_v55 }
 0x387   :  { %v3087_v2 = vpop.permute.xlu2 %3086 }
 0x388   :  { %v3214_v49 = vadd.f32 %v5660_v59, %v3174_v39  ;;  %v3359_v59 = vadd.f32 %v3358_v57, %v3328_v21  ;;  %v3095_v28 = vadd.f32 %v3087_v2, %v3055_v27 }
 0x38a   :  { %v3254_v46 = vadd.f32 %v3245_v34, %v3214_v49  ;;  %v3364_v53 = vmax.f32 %v3359_v59, 0.0 }
 0x38c   :  { %v3260_v31 = vsel %vm3256_vm5, %v3254_v46, 0.0  ;;  %v3378_v37 = vmul.f32 %v3371_v18, %v3364_v53 }
 0x38d   :  { %v3261_v60 = vadd.f32 %v3260_v31, %v3259_v6  ;;  %v3381_v6 = vsel %vm3256_vm5, %v3379_v58, 0.0 }
 0x38e   :  { %v3380_v4 = vsel %vm3256_vm5, %v3378_v37, 0.0 }
 0x38f   :  { %v3127_v44 = vpop.permute.xlu2 %3126  ;;  %v3382_v30 = vadd.f32 %v3381_v6, %v3380_v4 }
 0x390   :  { %v3135_v43 = vadd.f32 %v3127_v44, %v3095_v28 }
 0x391   :  { %v3383_v42 = vrot.slane %v3382_v30, 4 }
 0x393   :  { %v3384_v54 = vadd.f32 %v3383_v42, %v3382_v30 }
 0x395   :  { %v3385_v33 = vrot.slane %v3384_v54, 2 }
 0x397   :  { %v3167_v9 = vpop.permute.xlu2 %3166  ;;  %v3386_v47 = vadd.f32 %v3385_v33, %v3384_v54 }
 0x398   :  { %v3175_v38 = vadd.f32 %v3167_v9, %v3135_v43 }
 0x399   :  { %v3387_v10 = vrot.slane %v3386_v47, 1 }
 0x39b   :  { %v3388_v5 = vadd.f32 %v3387_v10, %v3386_v47 }
 0x39f   :  { %v3207_v56 = vpop.permute.xlu2 %3206 }
 0x3a0   :  { %v3215_v11 = vadd.f32 %v3207_v56, %v3175_v38 }
 0x3a7   :  { %v3247_v3 = vpop.permute.xlu2 %3246 }
 0x3a8   :  { %v3255_v40 = vadd.f32 %v3247_v3, %v3215_v11 }
 0x3aa   :  { %v3262_v1 = vsel %vm3256_vm5, %v3255_v40, 0.0 }
 0x3ab   :  { %v3263_v36 = vadd.f32 %v3262_v1, %v3261_v60 }
 0x3ad   :  { %v3264_v19 = vrot.slane %v3263_v36, 4 }
 0x3af   :  { %v3265_v32 = vadd.f32 %v3264_v19, %v3263_v36  ;;  %v3394_v26 = vpop.permute.xlu2 %3393 }
 0x3b0   :  { %v3396_v35 = vperm.slane %v3394_v26, 0 }
 0x3b1   :  { %v3266_v62 = vrot.slane %v3265_v32, 2 }
 0x3b3   :  { %v3267_v0 = vadd.f32 %v3266_v62, %v3265_v32 }
 0x3b5   :  { %v3268_v25 = vrot.slane %v3267_v0, 1 }
 0x3b7   :  { %v3269_v63 = vadd.f32 %v3268_v25, %v3267_v0 }
 0x3b9   :  { %v3389_v8 = vadd.f32 %v3388_v5, %v3269_v63 }
 0x3bb   :  { %v3397_v45 = vadd.f32 %v3396_v35, %v3389_v8 }
 0x3bd   :  { %3399 = vst.msk [vmem:[%s5716_s13] sm:$0x1] %vm3398_vm6, %v3397_v45 }

</bundles_post_ra>
